<compile_context>
chip_gen: v7x
topology: tpu7x:2x2x1
jax: 0.10.0
libtpu: 0.0.40
codegen_flags: <defaults>
</compile_context>

<pallas_src>
import functools

import jax
import jax.numpy as jnp
from jax.experimental import pallas as pl
from jax.experimental.pallas import tpu as pltpu


def _round_up(v, m):
    return (v + m - 1) // m * m


def _silu(x):
    # SiLU(x) = x * sigmoid(x);  sigmoid(x) = 0.5 * (1 + tanh(0.5 x)).
    # tanh is a single EUP push; the two muls/add ride the otherwise idle VPU.
    return x * (0.5 * (1.0 + jnp.tanh(0.5 * x)))


def mlp_kernel(x_ref, w_in_ref, b_in_ref, w_mid_ref, b_mid_ref,
               w_out_ref, b_out_ref, o_ref, *, num_mid, narrow_out):
    cdt = w_in_ref.dtype  # MXU input dtype (bf16)

    # Input layer: (tm, d_in) @ (d_in, H_p) + (1, H_p); f32 accumulation.
    # x is cast to the compute dtype here (no padded copy in the wrapper).
    h = jnp.dot(x_ref[...].astype(cdt), w_in_ref[...],
                preferred_element_type=jnp.float32) + b_in_ref[...]
    h = _silu(h)

    # Hidden layers, statically unrolled (num_mid is small and fixed).
    for l in range(num_mid):
        h = jnp.dot(h.astype(cdt), w_mid_ref[l],
                    preferred_element_type=jnp.float32) + b_mid_ref[l]
        h = _silu(h)

    if narrow_out:
        # d_out == 1: the last Linear is a per-row dot product.  Do it as a
        # VPU multiply + lane reduction (XLU) in f32 and store a (tm, 1)
        # column - 4 B/row of output HBM traffic, no wasted MXU columns.
        col = jnp.sum(h * w_out_ref[...], axis=-1, keepdims=True) + b_out_ref[...]
        o_ref[...] = col.astype(o_ref.dtype)
    else:
        # General d_out: padded lane-dense matmul path.
        out = jnp.dot(h.astype(cdt), w_out_ref[...],
                      preferred_element_type=jnp.float32) + b_out_ref[...]
        o_ref[...] = out.astype(o_ref.dtype)


def prepare_params(params, *, compute_dtype=jnp.bfloat16):
    """Pad feature dims to the 128-lane width and cast MXU weights to bf16.

    Call ONCE at parameter-load time (not per forward call): per-call padding
    re-reads and re-writes every weight in HBM ahead of the kernel.
    """
    w_in, b_in, w_mid, b_mid, w_out, b_out = params
    d_in, hid = w_in.shape
    d_out = w_out.shape[1]
    num_mid = w_mid.shape[0]
    assert num_mid >= 1, "need at least one hidden->hidden layer"

    lane = 128
    h_p = _round_up(hid, lane)
    cdt, f32 = compute_dtype, jnp.float32

    # NOTE: w_in keeps its native (un-padded) contraction dim d_in; the MXU
    # lowering zero-pads ragged contraction dims internally.
    w_in_p = jnp.zeros((d_in, h_p), cdt).at[:, :hid].set(w_in.astype(cdt))
    b_in_p = jnp.zeros((1, h_p), f32).at[:, :hid].set(
        b_in.reshape(1, hid).astype(f32))
    w_mid_p = jnp.zeros((num_mid, h_p, h_p), cdt).at[:, :hid, :hid].set(
        w_mid.astype(cdt))
    b_mid_p = jnp.zeros((num_mid, 1, h_p), f32).at[:, :, :hid].set(
        b_mid.reshape(num_mid, 1, hid).astype(f32))

    if d_out == 1:
        # Row vector for the VPU multiply + lane-reduce final layer (kept in
        # f32; it never goes through the MXU).
        w_out_p = jnp.zeros((1, h_p), f32).at[:, :hid].set(
            w_out.reshape(1, hid).astype(f32))
        b_out_p = b_out.reshape(1, 1).astype(f32)
    else:
        d_out_p = _round_up(d_out, lane)
        w_out_p = jnp.zeros((h_p, d_out_p), cdt).at[:hid, :d_out].set(
            w_out.astype(cdt))
        b_out_p = jnp.zeros((1, d_out_p), f32).at[:, :d_out].set(
            b_out.reshape(1, d_out).astype(f32))

    meta = dict(d_in=d_in, hid=hid, d_out=d_out, num_mid=num_mid, h_p=h_p)
    return (w_in_p, b_in_p, w_mid_p, b_mid_p, w_out_p, b_out_p), meta


def mhp_forward(x, prepared, meta, *, tile_m=512,
                vmem_limit_bytes=48 * 1024 * 1024,
                single_buffer_weights=True):
    """MHP forward pass with a Pallas TPU kernel, tiled over rows."""
    w_in_p, b_in_p, w_mid_p, b_mid_p, w_out_p, b_out_p = prepared
    n, d_in = x.shape
    assert d_in == meta["d_in"]
    d_out = meta["d_out"]
    h_p = meta["h_p"]
    num_mid = meta["num_mid"]
    narrow_out = d_out == 1

    lane = 128
    # Row tile: multiple of 128 (MXU M dimension), capped at tile_m, and
    # chosen so batches spanning more than one tile get >= 2 grid steps
    # (keeps both v7x TensorCores busy on the "parallel" axis).
    tm_cap = max(lane, _round_up(tile_m, lane))
    tm = min(tm_cap, max(lane, _round_up((n + 1) // 2, lane)))
    grid = (pl.cdiv(n, tm),)

    kernel = functools.partial(mlp_kernel, num_mid=num_mid,
                               narrow_out=narrow_out)

    def wspec(shape, single):
        # Whole (padded) weight/bias array resident in VMEM; index_map is
        # constant, so a second pipeline buffer is pure VMEM waste.
        idx = lambda i: (0,) * len(shape)
        if single:
            return pl.BlockSpec(shape, idx, pipeline_mode=pl.Buffered(1))
        return pl.BlockSpec(shape, idx)

    if narrow_out:
        out_shape = jax.ShapeDtypeStruct((n, 1), jnp.float32)
        out_spec = pl.BlockSpec((tm, 1), lambda i: (i, 0))
        w_out_blk, b_out_blk = (1, h_p), (1, 1)
    else:
        d_out_p = w_out_p.shape[1]
        out_shape = jax.ShapeDtypeStruct((n, d_out_p), jnp.float32)
        out_spec = pl.BlockSpec((tm, d_out_p), lambda i: (i, 0))
        w_out_blk, b_out_blk = (h_p, d_out_p), (1, d_out_p)

    def run(single):
        grid_spec = pltpu.PrefetchScalarGridSpec(
            num_scalar_prefetch=0,
            grid=grid,
            in_specs=[
                # Activations: un-padded, row-tiled. Last dim == full array
                # dim (legal although d_in % 128 != 0).  The ragged last
                # row-tile is handled by Pallas: garbage rows only produce
                # garbage rows, and output writes are bounds-masked.
                pl.BlockSpec((tm, d_in), lambda i: (i, 0)),
                wspec((d_in, h_p), single),
                wspec((1, h_p), single),
                wspec((num_mid, h_p, h_p), single),
                wspec((num_mid, 1, h_p), single),
                wspec(w_out_blk, single),
                wspec(b_out_blk, single),
            ],
            out_specs=out_spec,
        )
        return pl.pallas_call(
            kernel,
            out_shape=out_shape,
            grid_spec=grid_spec,
            compiler_params=pltpu.CompilerParams(
                dimension_semantics=("parallel",),
                vmem_limit_bytes=vmem_limit_bytes),
        )(x, w_in_p, b_in_p, w_mid_p, b_mid_p, w_out_p, b_out_p)

    if single_buffer_weights:
        try:
            out = run(True)
        except Exception:
            # pipeline_mode=pl.Buffered(1) not honored by this JAX build;
            # fall back to default (double-buffered) weight specs.
            out = run(False)
    else:
        out = run(False)

    if narrow_out:
        return out.astype(x.dtype)
    return out[:, :d_out].astype(x.dtype)


def init_params(key, input_dim, hidden_dim, output_dim, num_hidden_layers):
    """Deterministic init mimicking nn.Linear's U(-1/sqrt(fan_in), 1/sqrt(fan_in))."""
    num_mid = num_hidden_layers - 1
    ks = jax.random.split(key, 6)

    def uni(k, shape, fan_in):
        bound = 1.0 / jnp.sqrt(jnp.float32(fan_in))
        return jax.random.uniform(k, shape, jnp.float32, -bound, bound)

    w_in = uni(ks[0], (input_dim, hidden_dim), input_dim)
    b_in = uni(ks[1], (1, hidden_dim), input_dim)
    w_mid = uni(ks[2], (num_mid, hidden_dim, hidden_dim), hidden_dim)
    b_mid = uni(ks[3], (num_mid, 1, hidden_dim), hidden_dim)
    w_out = uni(ks[4], (hidden_dim, output_dim), hidden_dim)
    b_out = uni(ks[5], (1, output_dim), hidden_dim)
    return (w_in, b_in, w_mid, b_mid, w_out, b_out)


def mhp_reference(x, params, compute_dtype=jnp.bfloat16):
    """Pure-JAX reference mirroring the kernel's bf16 MXU inputs / f32 accumulation."""
    w_in, b_in, w_mid, b_mid, w_out, b_out = params

    def lin(a, w, b, cdt):
        return jnp.dot(a.astype(cdt), w.astype(cdt),
                       preferred_element_type=jnp.float32) + b.astype(jnp.float32)

    h = jax.nn.silu(lin(x, w_in, b_in, compute_dtype))
    for l in range(w_mid.shape[0]):
        h = jax.nn.silu(lin(h, w_mid[l], b_mid[l], compute_dtype))
    # Final layer in f32: mirrors the kernel's VPU multiply+reduce for d_out == 1.
    return lin(h, w_out, b_out, jnp.float32)


if __name__ == "__main__":
    # Small shapes consistent with the module (defaults input_dim=11,
    # output_dim=1, num_hidden_layers=5; hidden shrunk 256 -> 32 for the demo).
    INPUT_DIM = 11
    HIDDEN_DIM = 32
    OUTPUT_DIM = 1
    NUM_HIDDEN_LAYERS = 5
    BATCH = 300  # spans two row tiles (128-multiple tiles), ragged last tile

    key = jax.random.PRNGKey(0)
    kx, kp = jax.random.split(key)
    x = jax.random.normal(kx, (BATCH, INPUT_DIM), jnp.float32)
    params = init_params(kp, INPUT_DIM, HIDDEN_DIM, OUTPUT_DIM,
                         NUM_HIDDEN_LAYERS)

    # Pad / cast the weights ONCE (not per forward call).
    prepared, meta = prepare_params(params)

    out = mhp_forward(x, prepared, meta)
    out = jax.block_until_ready(out)
    assert out.shape == (BATCH, OUTPUT_DIM)

    ref = mhp_reference(x, params)
    assert jnp.allclose(out, ref, atol=2e-2, rtol=2e-2), "mismatch vs reference"

    print("KERNEL_OK")
</pallas_src>

<mosaic_0001>
module attributes {stable_mosaic.version = 11 : i64} {
  func.func @mlp_kernel(%arg0: i32, %arg1: memref<256x11xf32, #tpu.memory_space<vmem>>, %arg2: memref<11x128xbf16, #tpu.memory_space<vmem>>, %arg3: memref<1x128xf32, #tpu.memory_space<vmem>>, %arg4: memref<4x128x128xbf16, #tpu.memory_space<vmem>>, %arg5: memref<4x1x128xf32, #tpu.memory_space<vmem>>, %arg6: memref<1x128xf32, #tpu.memory_space<vmem>>, %arg7: memref<1x1xf32, #tpu.memory_space<vmem>>, %arg8: memref<256x1xf32, #tpu.memory_space<vmem>>) attributes {dimension_semantics = [#tpu.dimension_semantics<parallel>], iteration_bounds = array<i64: 2>, scalar_prefetch = 0 : i64, scratch_operands = 0 : i64, tpu.core_type = #tpu.core_type<tc>, window_params = [{transform_indices = @transform_0, window_bounds = array<i64: 256, 11>}, {pipeline_mode = #tpu.pipeline_mode<synchronous>, transform_indices = @transform_1, window_bounds = array<i64: 11, 128>}, {pipeline_mode = #tpu.pipeline_mode<synchronous>, transform_indices = @transform_2, window_bounds = array<i64: 1, 128>}, {pipeline_mode = #tpu.pipeline_mode<synchronous>, transform_indices = @transform_3, window_bounds = array<i64: 4, 128, 128>}, {pipeline_mode = #tpu.pipeline_mode<synchronous>, transform_indices = @transform_4, window_bounds = array<i64: 4, 1, 128>}, {pipeline_mode = #tpu.pipeline_mode<synchronous>, transform_indices = @transform_5, window_bounds = array<i64: 1, 128>}, {pipeline_mode = #tpu.pipeline_mode<synchronous>, transform_indices = @transform_6, window_bounds = array<i64: 1, 1>}, {transform_indices = @transform_7, window_bounds = array<i64: 256, 1>}]} {
    %c0 = arith.constant 0 : index
    %c0_0 = arith.constant 0 : index
    %0 = vector.load %arg1[%c0, %c0_0] : memref<256x11xf32, #tpu.memory_space<vmem>>, vector<256x11xf32>
    %1 = arith.truncf %0 : vector<256x11xf32> to vector<256x11xbf16>
    %c0_1 = arith.constant 0 : index
    %c0_2 = arith.constant 0 : index
    %2 = vector.load %arg2[%c0_1, %c0_2] : memref<11x128xbf16, #tpu.memory_space<vmem>>, vector<11x128xbf16>
    %cst = arith.constant dense<0.000000e+00> : vector<256x128xf32>
    %3 = tpu.matmul %1, %2, %cst {dimension_numbers = #tpu.dot_dimension_numbers<[1], [0], [0], [1], [0, 0, 1, 1], [], []>} : vector<256x11xbf16>, vector<11x128xbf16>, vector<256x128xf32> -> vector<256x128xf32>
    %c0_3 = arith.constant 0 : index
    %c0_4 = arith.constant 0 : index
    %4 = vector.load %arg3[%c0_3, %c0_4] : memref<1x128xf32, #tpu.memory_space<vmem>>, vector<1x128xf32>
    %5 = vector.broadcast %4 : vector<1x128xf32> to vector<256x128xf32>
    %6 = arith.addf %3, %5 : vector<256x128xf32>
    %cst_5 = arith.constant 5.000000e-01 : f32
    %7 = vector.broadcast %cst_5 : f32 to vector<256x128xf32>
    %8 = arith.mulf %7, %6 : vector<256x128xf32>
    %9 = math.tanh %8 : vector<256x128xf32>
    %cst_6 = arith.constant 1.000000e+00 : f32
    %10 = vector.broadcast %cst_6 : f32 to vector<256x128xf32>
    %11 = arith.addf %10, %9 : vector<256x128xf32>
    %cst_7 = arith.constant 5.000000e-01 : f32
    %12 = vector.broadcast %cst_7 : f32 to vector<256x128xf32>
    %13 = arith.mulf %12, %11 : vector<256x128xf32>
    %14 = arith.mulf %6, %13 : vector<256x128xf32>
    %15 = arith.truncf %14 : vector<256x128xf32> to vector<256x128xbf16>
    %c0_8 = arith.constant 0 : index
    %c0_9 = arith.constant 0 : index
    %c0_10 = arith.constant 0 : index
    %16 = vector.load %arg4[%c0_8, %c0_9, %c0_10] : memref<4x128x128xbf16, #tpu.memory_space<vmem>>, vector<1x128x128xbf16>
    %17 = vector.shape_cast %16 : vector<1x128x128xbf16> to vector<128x128xbf16>
    %cst_11 = arith.constant dense<0.000000e+00> : vector<256x128xf32>
    %18 = tpu.matmul %15, %17, %cst_11 {dimension_numbers = #tpu.dot_dimension_numbers<[1], [0], [0], [1], [0, 0, 1, 1], [], []>} : vector<256x128xbf16>, vector<128x128xbf16>, vector<256x128xf32> -> vector<256x128xf32>
    %c0_12 = arith.constant 0 : index
    %c0_13 = arith.constant 0 : index
    %c0_14 = arith.constant 0 : index
    %19 = vector.load %arg5[%c0_12, %c0_13, %c0_14] : memref<4x1x128xf32, #tpu.memory_space<vmem>>, vector<1x1x128xf32>
    %20 = vector.shape_cast %19 : vector<1x1x128xf32> to vector<1x128xf32>
    %21 = vector.broadcast %20 : vector<1x128xf32> to vector<256x128xf32>
    %22 = arith.addf %18, %21 : vector<256x128xf32>
    %cst_15 = arith.constant 5.000000e-01 : f32
    %23 = vector.broadcast %cst_15 : f32 to vector<256x128xf32>
    %24 = arith.mulf %23, %22 : vector<256x128xf32>
    %25 = math.tanh %24 : vector<256x128xf32>
    %cst_16 = arith.constant 1.000000e+00 : f32
    %26 = vector.broadcast %cst_16 : f32 to vector<256x128xf32>
    %27 = arith.addf %26, %25 : vector<256x128xf32>
    %cst_17 = arith.constant 5.000000e-01 : f32
    %28 = vector.broadcast %cst_17 : f32 to vector<256x128xf32>
    %29 = arith.mulf %28, %27 : vector<256x128xf32>
    %30 = arith.mulf %22, %29 : vector<256x128xf32>
    %31 = arith.truncf %30 : vector<256x128xf32> to vector<256x128xbf16>
    %c1 = arith.constant 1 : index
    %c0_18 = arith.constant 0 : index
    %c0_19 = arith.constant 0 : index
    %32 = vector.load %arg4[%c1, %c0_18, %c0_19] : memref<4x128x128xbf16, #tpu.memory_space<vmem>>, vector<1x128x128xbf16>
    %33 = vector.shape_cast %32 : vector<1x128x128xbf16> to vector<128x128xbf16>
    %cst_20 = arith.constant dense<0.000000e+00> : vector<256x128xf32>
    %34 = tpu.matmul %31, %33, %cst_20 {dimension_numbers = #tpu.dot_dimension_numbers<[1], [0], [0], [1], [0, 0, 1, 1], [], []>} : vector<256x128xbf16>, vector<128x128xbf16>, vector<256x128xf32> -> vector<256x128xf32>
    %c1_21 = arith.constant 1 : index
    %c0_22 = arith.constant 0 : index
    %c0_23 = arith.constant 0 : index
    %35 = vector.load %arg5[%c1_21, %c0_22, %c0_23] : memref<4x1x128xf32, #tpu.memory_space<vmem>>, vector<1x1x128xf32>
    %36 = vector.shape_cast %35 : vector<1x1x128xf32> to vector<1x128xf32>
    %37 = vector.broadcast %36 : vector<1x128xf32> to vector<256x128xf32>
    %38 = arith.addf %34, %37 : vector<256x128xf32>
    %cst_24 = arith.constant 5.000000e-01 : f32
    %39 = vector.broadcast %cst_24 : f32 to vector<256x128xf32>
    %40 = arith.mulf %39, %38 : vector<256x128xf32>
    %41 = math.tanh %40 : vector<256x128xf32>
    %cst_25 = arith.constant 1.000000e+00 : f32
    %42 = vector.broadcast %cst_25 : f32 to vector<256x128xf32>
    %43 = arith.addf %42, %41 : vector<256x128xf32>
    %cst_26 = arith.constant 5.000000e-01 : f32
    %44 = vector.broadcast %cst_26 : f32 to vector<256x128xf32>
    %45 = arith.mulf %44, %43 : vector<256x128xf32>
    %46 = arith.mulf %38, %45 : vector<256x128xf32>
    %47 = arith.truncf %46 : vector<256x128xf32> to vector<256x128xbf16>
    %c2 = arith.constant 2 : index
    %c0_27 = arith.constant 0 : index
    %c0_28 = arith.constant 0 : index
    %48 = vector.load %arg4[%c2, %c0_27, %c0_28] : memref<4x128x128xbf16, #tpu.memory_space<vmem>>, vector<1x128x128xbf16>
    %49 = vector.shape_cast %48 : vector<1x128x128xbf16> to vector<128x128xbf16>
    %cst_29 = arith.constant dense<0.000000e+00> : vector<256x128xf32>
    %50 = tpu.matmul %47, %49, %cst_29 {dimension_numbers = #tpu.dot_dimension_numbers<[1], [0], [0], [1], [0, 0, 1, 1], [], []>} : vector<256x128xbf16>, vector<128x128xbf16>, vector<256x128xf32> -> vector<256x128xf32>
    %c2_30 = arith.constant 2 : index
    %c0_31 = arith.constant 0 : index
    %c0_32 = arith.constant 0 : index
    %51 = vector.load %arg5[%c2_30, %c0_31, %c0_32] : memref<4x1x128xf32, #tpu.memory_space<vmem>>, vector<1x1x128xf32>
    %52 = vector.shape_cast %51 : vector<1x1x128xf32> to vector<1x128xf32>
    %53 = vector.broadcast %52 : vector<1x128xf32> to vector<256x128xf32>
    %54 = arith.addf %50, %53 : vector<256x128xf32>
    %cst_33 = arith.constant 5.000000e-01 : f32
    %55 = vector.broadcast %cst_33 : f32 to vector<256x128xf32>
    %56 = arith.mulf %55, %54 : vector<256x128xf32>
    %57 = math.tanh %56 : vector<256x128xf32>
    %cst_34 = arith.constant 1.000000e+00 : f32
    %58 = vector.broadcast %cst_34 : f32 to vector<256x128xf32>
    %59 = arith.addf %58, %57 : vector<256x128xf32>
    %cst_35 = arith.constant 5.000000e-01 : f32
    %60 = vector.broadcast %cst_35 : f32 to vector<256x128xf32>
    %61 = arith.mulf %60, %59 : vector<256x128xf32>
    %62 = arith.mulf %54, %61 : vector<256x128xf32>
    %63 = arith.truncf %62 : vector<256x128xf32> to vector<256x128xbf16>
    %c3 = arith.constant 3 : index
    %c0_36 = arith.constant 0 : index
    %c0_37 = arith.constant 0 : index
    %64 = vector.load %arg4[%c3, %c0_36, %c0_37] : memref<4x128x128xbf16, #tpu.memory_space<vmem>>, vector<1x128x128xbf16>
    %65 = vector.shape_cast %64 : vector<1x128x128xbf16> to vector<128x128xbf16>
    %cst_38 = arith.constant dense<0.000000e+00> : vector<256x128xf32>
    %66 = tpu.matmul %63, %65, %cst_38 {dimension_numbers = #tpu.dot_dimension_numbers<[1], [0], [0], [1], [0, 0, 1, 1], [], []>} : vector<256x128xbf16>, vector<128x128xbf16>, vector<256x128xf32> -> vector<256x128xf32>
    %c3_39 = arith.constant 3 : index
    %c0_40 = arith.constant 0 : index
    %c0_41 = arith.constant 0 : index
    %67 = vector.load %arg5[%c3_39, %c0_40, %c0_41] : memref<4x1x128xf32, #tpu.memory_space<vmem>>, vector<1x1x128xf32>
    %68 = vector.shape_cast %67 : vector<1x1x128xf32> to vector<1x128xf32>
    %69 = vector.broadcast %68 : vector<1x128xf32> to vector<256x128xf32>
    %70 = arith.addf %66, %69 : vector<256x128xf32>
    %cst_42 = arith.constant 5.000000e-01 : f32
    %71 = vector.broadcast %cst_42 : f32 to vector<256x128xf32>
    %72 = arith.mulf %71, %70 : vector<256x128xf32>
    %73 = math.tanh %72 : vector<256x128xf32>
    %cst_43 = arith.constant 1.000000e+00 : f32
    %74 = vector.broadcast %cst_43 : f32 to vector<256x128xf32>
    %75 = arith.addf %74, %73 : vector<256x128xf32>
    %cst_44 = arith.constant 5.000000e-01 : f32
    %76 = vector.broadcast %cst_44 : f32 to vector<256x128xf32>
    %77 = arith.mulf %76, %75 : vector<256x128xf32>
    %78 = arith.mulf %70, %77 : vector<256x128xf32>
    %c0_45 = arith.constant 0 : index
    %c0_46 = arith.constant 0 : index
    %79 = vector.load %arg6[%c0_45, %c0_46] : memref<1x128xf32, #tpu.memory_space<vmem>>, vector<1x128xf32>
    %80 = vector.broadcast %79 : vector<1x128xf32> to vector<256x128xf32>
    %81 = arith.mulf %78, %80 : vector<256x128xf32>
    %cst_47 = arith.constant dense<0.000000e+00> : vector<256xf32>
    %82 = vector.multi_reduction <add>, %81, %cst_47 [1] : vector<256x128xf32> to vector<256xf32>
    %83 = vector.shape_cast %82 : vector<256xf32> to vector<256x1xf32>
    %c0_48 = arith.constant 0 : index
    %c0_49 = arith.constant 0 : index
    %84 = vector.load %arg7[%c0_48, %c0_49] : memref<1x1xf32, #tpu.memory_space<vmem>>, vector<1x1xf32>
    %85 = vector.broadcast %84 : vector<1x1xf32> to vector<256x1xf32>
    %86 = arith.addf %83, %85 : vector<256x1xf32>
    %c0_50 = arith.constant 0 : index
    %c0_51 = arith.constant 0 : index
    %87 = vector.load %arg8[%c0_50, %c0_51] : memref<256x1xf32, #tpu.memory_space<vmem>>, vector<256x1xf32>
    tpu.vector_store %arg8[%c0_50, %c0_51], %86 {strides = array<i32>} : memref<256x1xf32, #tpu.memory_space<vmem>>, vector<256x1xf32>,
    return
  }
  func.func @transform_0(%arg0: i32) -> (i32, i32) {
    %c0_i32 = arith.constant 0 : i32
    %c0_i32_0 = arith.constant 0 : i32
    return %arg0, %c0_i32 : i32, i32
  }
  func.func @transform_1(%arg0: i32) -> (i32, i32) {
    %c0_i32 = arith.constant 0 : i32
    %c0_i32_0 = arith.constant 0 : i32
    %c0_i32_1 = arith.constant 0 : i32
    return %c0_i32, %c0_i32_0 : i32, i32
  }
  func.func @transform_2(%arg0: i32) -> (i32, i32) {
    %c0_i32 = arith.constant 0 : i32
    %c0_i32_0 = arith.constant 0 : i32
    %c0_i32_1 = arith.constant 0 : i32
    return %c0_i32, %c0_i32_0 : i32, i32
  }
  func.func @transform_3(%arg0: i32) -> (i32, i32, i32) {
    %c0_i32 = arith.constant 0 : i32
    %c0_i32_0 = arith.constant 0 : i32
    %c0_i32_1 = arith.constant 0 : i32
    %c0_i32_2 = arith.constant 0 : i32
    return %c0_i32, %c0_i32_0, %c0_i32_1 : i32, i32, i32
  }
  func.func @transform_4(%arg0: i32) -> (i32, i32, i32) {
    %c0_i32 = arith.constant 0 : i32
    %c0_i32_0 = arith.constant 0 : i32
    %c0_i32_1 = arith.constant 0 : i32
    %c0_i32_2 = arith.constant 0 : i32
    return %c0_i32, %c0_i32_0, %c0_i32_1 : i32, i32, i32
  }
  func.func @transform_5(%arg0: i32) -> (i32, i32) {
    %c0_i32 = arith.constant 0 : i32
    %c0_i32_0 = arith.constant 0 : i32
    %c0_i32_1 = arith.constant 0 : i32
    return %c0_i32, %c0_i32_0 : i32, i32
  }
  func.func @transform_6(%arg0: i32) -> (i32, i32) {
    %c0_i32 = arith.constant 0 : i32
    %c0_i32_0 = arith.constant 0 : i32
    %c0_i32_1 = arith.constant 0 : i32
    return %c0_i32, %c0_i32_0 : i32, i32
  }
  func.func @transform_7(%arg0: i32) -> (i32, i32) {
    %c0_i32 = arith.constant 0 : i32
    %c0_i32_0 = arith.constant 0 : i32
    return %arg0, %c0_i32 : i32, i32
  }
}

module attributes {stable_mosaic.version = 11 : i64} {
  func.func @mlp_kernel(%arg0: i32, %arg1: memref<256x11xf32, #tpu.memory_space<vmem>>, %arg2: memref<11x128xbf16, #tpu.memory_space<vmem>>, %arg3: memref<1x128xf32, #tpu.memory_space<vmem>>, %arg4: memref<4x128x128xbf16, #tpu.memory_space<vmem>>, %arg5: memref<4x1x128xf32, #tpu.memory_space<vmem>>, %arg6: memref<1x128xf32, #tpu.memory_space<vmem>>, %arg7: memref<1x1xf32, #tpu.memory_space<vmem>>, %arg8: memref<256x1xf32, #tpu.memory_space<vmem>>) attributes {dimension_semantics = [#tpu.dimension_semantics<parallel>], iteration_bounds = array<i64: 2>, scalar_prefetch = 0 : i64, scratch_operands = 0 : i64, tpu.core_type = #tpu.core_type<tc>, window_params = [{transform_indices = @transform_0, window_bounds = array<i64: 256, 11>}, {pipeline_mode = #tpu.pipeline_mode<synchronous>, transform_indices = @transform_1, window_bounds = array<i64: 11, 128>}, {pipeline_mode = #tpu.pipeline_mode<synchronous>, transform_indices = @transform_2, window_bounds = array<i64: 1, 128>}, {pipeline_mode = #tpu.pipeline_mode<synchronous>, transform_indices = @transform_3, window_bounds = array<i64: 4, 128, 128>}, {pipeline_mode = #tpu.pipeline_mode<synchronous>, transform_indices = @transform_4, window_bounds = array<i64: 4, 1, 128>}, {pipeline_mode = #tpu.pipeline_mode<synchronous>, transform_indices = @transform_5, window_bounds = array<i64: 1, 128>}, {pipeline_mode = #tpu.pipeline_mode<synchronous>, transform_indices = @transform_6, window_bounds = array<i64: 1, 1>}, {transform_indices = @transform_7, window_bounds = array<i64: 256, 1>}]} {
    %c0 = arith.constant 0 : index
    %c0_0 = arith.constant 0 : index
    %0 = vector.load %arg1[%c0, %c0_0] : memref<256x11xf32, #tpu.memory_space<vmem>>, vector<256x11xf32>
    %1 = arith.truncf %0 : vector<256x11xf32> to vector<256x11xbf16>
    %c0_1 = arith.constant 0 : index
    %c0_2 = arith.constant 0 : index
    %2 = vector.load %arg2[%c0_1, %c0_2] : memref<11x128xbf16, #tpu.memory_space<vmem>>, vector<11x128xbf16>
    %cst = arith.constant dense<0.000000e+00> : vector<256x128xf32>
    %3 = tpu.matmul %1, %2, %cst {dimension_numbers = #tpu.dot_dimension_numbers<[1], [0], [0], [1], [0, 0, 1, 1], [], []>} : vector<256x11xbf16>, vector<11x128xbf16>, vector<256x128xf32> -> vector<256x128xf32>
    %c0_3 = arith.constant 0 : index
    %c0_4 = arith.constant 0 : index
    %4 = vector.load %arg3[%c0_3, %c0_4] : memref<1x128xf32, #tpu.memory_space<vmem>>, vector<1x128xf32>
    %5 = vector.broadcast %4 : vector<1x128xf32> to vector<256x128xf32>
    %6 = arith.addf %3, %5 : vector<256x128xf32>
    %cst_5 = arith.constant 5.000000e-01 : f32
    %7 = vector.broadcast %cst_5 : f32 to vector<256x128xf32>
    %8 = arith.mulf %7, %6 : vector<256x128xf32>
    %9 = math.tanh %8 : vector<256x128xf32>
    %cst_6 = arith.constant 1.000000e+00 : f32
    %10 = vector.broadcast %cst_6 : f32 to vector<256x128xf32>
    %11 = arith.addf %10, %9 : vector<256x128xf32>
    %cst_7 = arith.constant 5.000000e-01 : f32
    %12 = vector.broadcast %cst_7 : f32 to vector<256x128xf32>
    %13 = arith.mulf %12, %11 : vector<256x128xf32>
    %14 = arith.mulf %6, %13 : vector<256x128xf32>
    %15 = arith.truncf %14 : vector<256x128xf32> to vector<256x128xbf16>
    %c0_8 = arith.constant 0 : index
    %c0_9 = arith.constant 0 : index
    %c0_10 = arith.constant 0 : index
    %16 = vector.load %arg4[%c0_8, %c0_9, %c0_10] : memref<4x128x128xbf16, #tpu.memory_space<vmem>>, vector<1x128x128xbf16>
    %17 = vector.shape_cast %16 : vector<1x128x128xbf16> to vector<128x128xbf16>
    %cst_11 = arith.constant dense<0.000000e+00> : vector<256x128xf32>
    %18 = tpu.matmul %15, %17, %cst_11 {dimension_numbers = #tpu.dot_dimension_numbers<[1], [0], [0], [1], [0, 0, 1, 1], [], []>} : vector<256x128xbf16>, vector<128x128xbf16>, vector<256x128xf32> -> vector<256x128xf32>
    %c0_12 = arith.constant 0 : index
    %c0_13 = arith.constant 0 : index
    %c0_14 = arith.constant 0 : index
    %19 = vector.load %arg5[%c0_12, %c0_13, %c0_14] : memref<4x1x128xf32, #tpu.memory_space<vmem>>, vector<1x1x128xf32>
    %20 = vector.shape_cast %19 : vector<1x1x128xf32> to vector<1x128xf32>
    %21 = vector.broadcast %20 : vector<1x128xf32> to vector<256x128xf32>
    %22 = arith.addf %18, %21 : vector<256x128xf32>
    %cst_15 = arith.constant 5.000000e-01 : f32
    %23 = vector.broadcast %cst_15 : f32 to vector<256x128xf32>
    %24 = arith.mulf %23, %22 : vector<256x128xf32>
    %25 = math.tanh %24 : vector<256x128xf32>
    %cst_16 = arith.constant 1.000000e+00 : f32
    %26 = vector.broadcast %cst_16 : f32 to vector<256x128xf32>
    %27 = arith.addf %26, %25 : vector<256x128xf32>
    %cst_17 = arith.constant 5.000000e-01 : f32
    %28 = vector.broadcast %cst_17 : f32 to vector<256x128xf32>
    %29 = arith.mulf %28, %27 : vector<256x128xf32>
    %30 = arith.mulf %22, %29 : vector<256x128xf32>
    %31 = arith.truncf %30 : vector<256x128xf32> to vector<256x128xbf16>
    %c1 = arith.constant 1 : index
    %c0_18 = arith.constant 0 : index
    %c0_19 = arith.constant 0 : index
    %32 = vector.load %arg4[%c1, %c0_18, %c0_19] : memref<4x128x128xbf16, #tpu.memory_space<vmem>>, vector<1x128x128xbf16>
    %33 = vector.shape_cast %32 : vector<1x128x128xbf16> to vector<128x128xbf16>
    %cst_20 = arith.constant dense<0.000000e+00> : vector<256x128xf32>
    %34 = tpu.matmul %31, %33, %cst_20 {dimension_numbers = #tpu.dot_dimension_numbers<[1], [0], [0], [1], [0, 0, 1, 1], [], []>} : vector<256x128xbf16>, vector<128x128xbf16>, vector<256x128xf32> -> vector<256x128xf32>
    %c1_21 = arith.constant 1 : index
    %c0_22 = arith.constant 0 : index
    %c0_23 = arith.constant 0 : index
    %35 = vector.load %arg5[%c1_21, %c0_22, %c0_23] : memref<4x1x128xf32, #tpu.memory_space<vmem>>, vector<1x1x128xf32>
    %36 = vector.shape_cast %35 : vector<1x1x128xf32> to vector<1x128xf32>
    %37 = vector.broadcast %36 : vector<1x128xf32> to vector<256x128xf32>
    %38 = arith.addf %34, %37 : vector<256x128xf32>
    %cst_24 = arith.constant 5.000000e-01 : f32
    %39 = vector.broadcast %cst_24 : f32 to vector<256x128xf32>
    %40 = arith.mulf %39, %38 : vector<256x128xf32>
    %41 = math.tanh %40 : vector<256x128xf32>
    %cst_25 = arith.constant 1.000000e+00 : f32
    %42 = vector.broadcast %cst_25 : f32 to vector<256x128xf32>
    %43 = arith.addf %42, %41 : vector<256x128xf32>
    %cst_26 = arith.constant 5.000000e-01 : f32
    %44 = vector.broadcast %cst_26 : f32 to vector<256x128xf32>
    %45 = arith.mulf %44, %43 : vector<256x128xf32>
    %46 = arith.mulf %38, %45 : vector<256x128xf32>
    %47 = arith.truncf %46 : vector<256x128xf32> to vector<256x128xbf16>
    %c2 = arith.constant 2 : index
    %c0_27 = arith.constant 0 : index
    %c0_28 = arith.constant 0 : index
    %48 = vector.load %arg4[%c2, %c0_27, %c0_28] : memref<4x128x128xbf16, #tpu.memory_space<vmem>>, vector<1x128x128xbf16>
    %49 = vector.shape_cast %48 : vector<1x128x128xbf16> to vector<128x128xbf16>
    %cst_29 = arith.constant dense<0.000000e+00> : vector<256x128xf32>
    %50 = tpu.matmul %47, %49, %cst_29 {dimension_numbers = #tpu.dot_dimension_numbers<[1], [0], [0], [1], [0, 0, 1, 1], [], []>} : vector<256x128xbf16>, vector<128x128xbf16>, vector<256x128xf32> -> vector<256x128xf32>
    %c2_30 = arith.constant 2 : index
    %c0_31 = arith.constant 0 : index
    %c0_32 = arith.constant 0 : index
    %51 = vector.load %arg5[%c2_30, %c0_31, %c0_32] : memref<4x1x128xf32, #tpu.memory_space<vmem>>, vector<1x1x128xf32>
    %52 = vector.shape_cast %51 : vector<1x1x128xf32> to vector<1x128xf32>
    %53 = vector.broadcast %52 : vector<1x128xf32> to vector<256x128xf32>
    %54 = arith.addf %50, %53 : vector<256x128xf32>
    %cst_33 = arith.constant 5.000000e-01 : f32
    %55 = vector.broadcast %cst_33 : f32 to vector<256x128xf32>
    %56 = arith.mulf %55, %54 : vector<256x128xf32>
    %57 = math.tanh %56 : vector<256x128xf32>
    %cst_34 = arith.constant 1.000000e+00 : f32
    %58 = vector.broadcast %cst_34 : f32 to vector<256x128xf32>
    %59 = arith.addf %58, %57 : vector<256x128xf32>
    %cst_35 = arith.constant 5.000000e-01 : f32
    %60 = vector.broadcast %cst_35 : f32 to vector<256x128xf32>
    %61 = arith.mulf %60, %59 : vector<256x128xf32>
    %62 = arith.mulf %54, %61 : vector<256x128xf32>
    %63 = arith.truncf %62 : vector<256x128xf32> to vector<256x128xbf16>
    %c3 = arith.constant 3 : index
    %c0_36 = arith.constant 0 : index
    %c0_37 = arith.constant 0 : index
    %64 = vector.load %arg4[%c3, %c0_36, %c0_37] : memref<4x128x128xbf16, #tpu.memory_space<vmem>>, vector<1x128x128xbf16>
    %65 = vector.shape_cast %64 : vector<1x128x128xbf16> to vector<128x128xbf16>
    %cst_38 = arith.constant dense<0.000000e+00> : vector<256x128xf32>
    %66 = tpu.matmul %63, %65, %cst_38 {dimension_numbers = #tpu.dot_dimension_numbers<[1], [0], [0], [1], [0, 0, 1, 1], [], []>} : vector<256x128xbf16>, vector<128x128xbf16>, vector<256x128xf32> -> vector<256x128xf32>
    %c3_39 = arith.constant 3 : index
    %c0_40 = arith.constant 0 : index
    %c0_41 = arith.constant 0 : index
    %67 = vector.load %arg5[%c3_39, %c0_40, %c0_41] : memref<4x1x128xf32, #tpu.memory_space<vmem>>, vector<1x1x128xf32>
    %68 = vector.shape_cast %67 : vector<1x1x128xf32> to vector<1x128xf32>
    %69 = vector.broadcast %68 : vector<1x128xf32> to vector<256x128xf32>
    %70 = arith.addf %66, %69 : vector<256x128xf32>
    %cst_42 = arith.constant 5.000000e-01 : f32
    %71 = vector.broadcast %cst_42 : f32 to vector<256x128xf32>
    %72 = arith.mulf %71, %70 : vector<256x128xf32>
    %73 = math.tanh %72 : vector<256x128xf32>
    %cst_43 = arith.constant 1.000000e+00 : f32
    %74 = vector.broadcast %cst_43 : f32 to vector<256x128xf32>
    %75 = arith.addf %74, %73 : vector<256x128xf32>
    %cst_44 = arith.constant 5.000000e-01 : f32
    %76 = vector.broadcast %cst_44 : f32 to vector<256x128xf32>
    %77 = arith.mulf %76, %75 : vector<256x128xf32>
    %78 = arith.mulf %70, %77 : vector<256x128xf32>
    %c0_45 = arith.constant 0 : index
    %c0_46 = arith.constant 0 : index
    %79 = vector.load %arg6[%c0_45, %c0_46] : memref<1x128xf32, #tpu.memory_space<vmem>>, vector<1x128xf32>
    %80 = vector.broadcast %79 : vector<1x128xf32> to vector<256x128xf32>
    %81 = arith.mulf %78, %80 : vector<256x128xf32>
    %cst_47 = arith.constant dense<0.000000e+00> : vector<256xf32>
    %82 = vector.multi_reduction <add>, %81, %cst_47 [1] : vector<256x128xf32> to vector<256xf32>
    %83 = vector.shape_cast %82 : vector<256xf32> to vector<256x1xf32>
    %c0_48 = arith.constant 0 : index
    %c0_49 = arith.constant 0 : index
    %84 = vector.load %arg7[%c0_48, %c0_49] : memref<1x1xf32, #tpu.memory_space<vmem>>, vector<1x1xf32>
    %85 = vector.broadcast %84 : vector<1x1xf32> to vector<256x1xf32>
    %86 = arith.addf %83, %85 : vector<256x1xf32>
    %c0_50 = arith.constant 0 : index
    %c0_51 = arith.constant 0 : index
    %87 = vector.load %arg8[%c0_50, %c0_51] : memref<256x1xf32, #tpu.memory_space<vmem>>, vector<256x1xf32>
    tpu.vector_store %arg8[%c0_50, %c0_51], %86 {strides = array<i32>} : memref<256x1xf32, #tpu.memory_space<vmem>>, vector<256x1xf32>,
    return
  }
  func.func @transform_0(%arg0: i32) -> (i32, i32) {
    %c0_i32 = arith.constant 0 : i32
    %c0_i32_0 = arith.constant 0 : i32
    return %arg0, %c0_i32 : i32, i32
  }
  func.func @transform_1(%arg0: i32) -> (i32, i32) {
    %c0_i32 = arith.constant 0 : i32
    %c0_i32_0 = arith.constant 0 : i32
    %c0_i32_1 = arith.constant 0 : i32
    return %c0_i32, %c0_i32_0 : i32, i32
  }
  func.func @transform_2(%arg0: i32) -> (i32, i32) {
    %c0_i32 = arith.constant 0 : i32
    %c0_i32_0 = arith.constant 0 : i32
    %c0_i32_1 = arith.constant 0 : i32
    return %c0_i32, %c0_i32_0 : i32, i32
  }
  func.func @transform_3(%arg0: i32) -> (i32, i32, i32) {
    %c0_i32 = arith.constant 0 : i32
    %c0_i32_0 = arith.constant 0 : i32
    %c0_i32_1 = arith.constant 0 : i32
    %c0_i32_2 = arith.constant 0 : i32
    return %c0_i32, %c0_i32_0, %c0_i32_1 : i32, i32, i32
  }
  func.func @transform_4(%arg0: i32) -> (i32, i32, i32) {
    %c0_i32 = arith.constant 0 : i32
    %c0_i32_0 = arith.constant 0 : i32
    %c0_i32_1 = arith.constant 0 : i32
    %c0_i32_2 = arith.constant 0 : i32
    return %c0_i32, %c0_i32_0, %c0_i32_1 : i32, i32, i32
  }
  func.func @transform_5(%arg0: i32) -> (i32, i32) {
    %c0_i32 = arith.constant 0 : i32
    %c0_i32_0 = arith.constant 0 : i32
    %c0_i32_1 = arith.constant 0 : i32
    return %c0_i32, %c0_i32_0 : i32, i32
  }
  func.func @transform_6(%arg0: i32) -> (i32, i32) {
    %c0_i32 = arith.constant 0 : i32
    %c0_i32_0 = arith.constant 0 : i32
    %c0_i32_1 = arith.constant 0 : i32
    return %c0_i32, %c0_i32_0 : i32, i32
  }
  func.func @transform_7(%arg0: i32) -> (i32, i32) {
    %c0_i32 = arith.constant 0 : i32
    %c0_i32_0 = arith.constant 0 : i32
    return %arg0, %c0_i32 : i32, i32
  }
}

</mosaic_0001>

<bundles_post_ra>
// kernel: tpu_custom_call.1
= control target key start
LH: loop header
LB: loop body
LE: loop exit
PB: predicated region body
PF: predicated region fallthrough
CT: control target
= control target key end

     0   :  { %s5196_s0 = inlined_call_operand.vmem [shape: f32[300,11], index: 0, kind: input, shape index: {}]   ;;  %s5197_s1 = inlined_call_operand.vmem [shape: bf16[11,128], index: 1, kind: input, shape index: {}]   ;;  %s5198_s2 = inlined_call_operand.vmem [shape: f32[1,128], index: 2, kind: input, shape index: {}]   ;;  %s5199_s3 = inlined_call_operand.vmem [shape: bf16[4,128,128], index: 3, kind: input, shape index: {}]   ;;  %s5200_s4 = inlined_call_operand.vmem [shape: f32[4,1,128], index: 4, kind: input, shape index: {}]   ;;  %s5201_s5 = inlined_call_operand.vmem [shape: f32[1,128], index: 5, kind: input, shape index: {}]   ;;  %s5202_s6 = inlined_call_operand.<no memory space> [shape: f32[1,1], index: 6, kind: input, shape index: {}]   ;;  %s5203_s7 = inlined_call_operand.vmem [shape: f32[300,1], index: 7, kind: output, shape index: {}]  }
   0x1   :  { %v12_v0 = vstv %s5202_s6 }
   0x2   :  { %13 = vst [vmem:[#allocation2] sm:$0x1] %v12_v0 }
   0x3   :  { %s3943_s26 = smov 0   ;;  %s3945_s27 = smov 0  }
   0x4   :  { %s3947_s28 = smov 0  }
   0x5 LB: > { %s3956_s6 = sadd.s32 4294967295, %s3865_s28   ;;  %s3958_s29 = sadd.s32 1, %s3865_s28   ;;  %s3865_s28 = sphi %s3947_s28, %s5212_s28   ;;  %s3861_s27 = sphi %s3945_s27, %s5211_s27   ;;  %s3857_s26 = sphi %s3943_s26, %s5210_s26  }
   0x6   : > { %s175_s30 = ssub.s32 %s3865_s28, %s3958_s29  ;;  %s178_s8 = sadd.s32 1, %s3861_s27 }
   0x7   : > { %p176_p0 = scmp.eq.s32.totalorder %s175_s30, 0  ;;  %p188_p1 = scmp.ne.s32.totalorder %s3861_s27, %s3857_s26 }
   0x8   : > { %p189_p2 = scmp.eq.s32.totalorder %s3956_s6, 1  ;;  %p2897_p3 = scmp.ge.s32.totalorder %s3865_s28, 1 }
   0x9   : > { %s3966_s9 = scalar_select %p176_p0, %s3861_s27, %s178_s8  }
   0xa   : > { %p3968_p4 = por %p189_p2, %p188_p1  ;;  %p248_p5 = scmp.lt.s32.totalorder %s3865_s28, 3 }
   0xc   : > { %p249_p6 = pnand %p2897_p3, %p248_p5 }
   0xd   : > { %v3458_v1 = vld [vmem:[%s5197_s1] sm:$0x3f] (!%p249_p6)   ;;  %vm414_vm0 = vcmask (!%p249_p6), 1044480   ;;  %vm415_vm1 = vcmask (!%p249_p6), 1045504   ;;  %s3976_s13 = sshll.u32 (!%p249_p6), %s3956_s6, 5  ;;  %v3899_v2 = vmov (!%p249_p6), 65535  }
   0xe   : > { %252 = sbr.rel (%p249_p6) target bundleno = 1493 (0x5d5), region = 48  ;;  %v416_v3 = vsel (!%p249_p6), %vm414_vm0, 4294967295, %v3899_v2  ;;  %p288_p7 = scmp.lt.s32.totalorder (!%p249_p6), %s3976_s13, 37  ;;  %v3459_v6 = vld [vmem:[%s5199_s3] sm:$0xff] (!%p249_p6)   ;;  %vm365_vm2 = vcmask (!%p249_p6), 89088   ;;  %v3460_v23 = vld [vmem:[%s5199_s3 + $0x8] sm:$0xff] (!%p249_p6)  }
   0xf   : > { %v417_v4 = vsel (!%p249_p6), %vm415_vm1, %v416_v3, 0  ;;  %v3461_v56 = vld [vmem:[%s5199_s3 + $0x10] sm:$0xff] (!%p249_p6)   ;;  %v3462_v57 = vld [vmem:[%s5199_s3 + $0x18] sm:$0xff] (!%p249_p6)   ;;  %v3463_v58 = vld [vmem:[%s5199_s3 + $0x20] sm:$0xff] (!%p249_p6)   ;;  %s280_s30 = sand.u32 (!%p249_p6), 1, %s3857_s26   ;;  %vm2522_vm3 = vcmask (!%p249_p6), 7168  }
  0x10   : > { %v419_v5 = vand.u32 (!%p249_p6), %v3458_v1, %v417_v4  ;;  %v3464_v59 = vld [vmem:[%s5199_s3 + $0x28] sm:$0xff] (!%p249_p6)   ;;  %v3465_v60 = vld [vmem:[%s5199_s3 + $0x30] sm:$0xff] (!%p249_p6)   ;;  %v3466_v61 = vld [vmem:[%s5199_s3 + $0x38] sm:$0xff] (!%p249_p6)   ;;  %s2898_s8 = sshll.u32 (!%p249_p6), %s280_s30, 8 }
  0x11   : > { %v3467_v62 = vld [vmem:[%s5199_s3 + $0x40] sm:$0xff] (!%p249_p6)   ;;  %v3468_v63 = vld [vmem:[%s5199_s3 + $0x48] sm:$0xff] (!%p249_p6)   ;;  %s4961_s11 = scalar_lea.vmem (!%p249_p6), [#allocation3], %s2898_s8  }
  0x12   : > { %3141 = vmatprep.subr.bf16.mxu0 (!%p249_p6), %v419_v5  ;;  %3367 = vmatprep.subr.bf16.mxu1 (!%p249_p6), %v419_v5  ;;  %v4066_v0 = vld [vmem:[%s5198_s2] ss:$0 sm:$0xff] (!%p249_p6) }
  0x13   : > { %3142 = vmatpush3.bf16.msra.mxu0 (!%p249_p6), %v419_v5  ;;  %3368 = vmatpush3.bf16.msra.mxu1 (!%p249_p6), %v419_v5 }
  0x14   : > { %3175 = vmatprep.subr.bf16.mxu1 (!%p249_p6), %v3459_v6  ;;  %3223 = vmatprep.subr.bf16.mxu0 (!%p249_p6), %v3467_v62 }
  0x15   : > { %s289_s14 = scalar_select %p288_p7, %s3976_s13, 37 }
  0x16   : > { %s2563_s26 = ssub.s32 (%p3968_p4), 38, %s3976_s13  ;;  %s3025_s12 = sshll.u32 (%p3968_p4), %s3956_s6, 8 }
  0x17   : > { %s2900_s17 = sshll.u32 %s289_s14, 3  ;;  %p2564_p8 = scmp.lt.s32.totalorder (%p3968_p4), %s2563_s26, 32 }
  0x18   : > { %s3986_s20 = scalar_lea.vmem %s5196_s0, %s2900_s17  ;;  %s5064_s16 = scalar_lea.vmem (%p3968_p4), %s5203_s7, %s3025_s12  }
  0x19   : > { %v303_v7 = vld [vmem:[%s3986_s20] sm:$0xff]  ;;  %v304_v8 = vld [vmem:[%s3986_s20 + $0x8] sm:$0xff]  ;;  %v305_v9 = vld [vmem:[%s3986_s20 + $0x10] sm:$0xff] }
  0x1a   : > { %v335_v10 = vpack.c.bf16 %v304_v8, %v303_v7  ;;  %v306_v11 = vld [vmem:[%s3986_s20 + $0x18] sm:$0xff]  ;;  %v307_v12 = vld [vmem:[%s3986_s20 + $0x20] sm:$0xff]  ;;  %v308_v13 = vld [vmem:[%s3986_s20 + $0x28] sm:$0xff] }
  0x1b   : > { %v336_v14 = vpack.c.bf16 %v306_v11, %v305_v9  ;;  %v337_v15 = vpack.c.bf16 %v308_v13, %v307_v12  ;;  %v319_v16 = vld [vmem:[%s3986_s20 + $0x80] sm:$0xff]  ;;  %v320_v17 = vld [vmem:[%s3986_s20 + $0x88] sm:$0xff]  ;;  %v321_v18 = vld [vmem:[%s3986_s20 + $0x90] sm:$0xff] }
  0x1c   : > { %3143 = vmatprep.mubr.msk.bf16.mxu0 %vm365_vm2, %v335_v10  ;;  %v322_v19 = vld [vmem:[%s3986_s20 + $0x98] sm:$0xff]  ;;  %v309_v20 = vld [vmem:[%s3986_s20 + $0x30] sm:$0xff]  ;;  %v343_v21 = vpack.c.bf16 %v320_v17, %v319_v16  ;;  %v323_v25 = vld [vmem:[%s3986_s20 + $0xa0] sm:$0xff] }
  0x1d   : > { %3144 = vmatmul.mubr.msk.bf16.vlgmr.msra.gmra.mrb[0].mxu0 %vm365_vm2, %v336_v14  ;;  %v344_v22 = vpack.c.bf16 %v322_v19, %v321_v18  ;;  %v310_v24 = vld [vmem:[%s3986_s20 + $0x38] sm:$0xff]  ;;  %v324_v26 = vld [vmem:[%s3986_s20 + $0xa8] sm:$0xff]  ;;  %v311_v27 = vld [vmem:[%s3986_s20 + $0x40] sm:$0xff] }
  0x1e   : > { %3147 = vmatprep.mubr.msk.bf16.mxu0 %vm365_vm2, %v337_v15  ;;  %3159 = vmatprep.mubr.msk.bf16.mxu1 %vm365_vm2, %v343_v21  ;;  %v312_v28 = vld [vmem:[%s3986_s20 + $0x48] sm:$0xff]  ;;  %v345_v29 = vpack.c.bf16 %v324_v26, %v323_v25  ;;  %v338_v30 = vpack.c.bf16 %v310_v24, %v309_v20  ;;  %v325_v31 = vld [vmem:[%s3986_s20 + $0xb0] sm:$0xff]  ;;  %v326_v32 = vld [vmem:[%s3986_s20 + $0xb8] sm:$0xff] }
  0x1f   : > { %3160 = vmatmul.mubr.msk.bf16.vlgmr.msra.gmra.mrb[0].mxu1 %vm365_vm2, %v344_v22  ;;  %v339_v33 = vpack.c.bf16 %v312_v28, %v311_v27  ;;  %v327_v34 = vld [vmem:[%s3986_s20 + $0xc0] sm:$0xff]  ;;  %v328_v35 = vld [vmem:[%s3986_s20 + $0xc8] sm:$0xff]  ;;  %v313_v36 = vld [vmem:[%s3986_s20 + $0x50] sm:$0xff]  ;;  %v346_v38 = vpack.c.bf16 %v326_v32, %v325_v31  ;;  %3224 = vmatpush3.bf16.msra.mxu0 %v3467_v62 }
  0x20   : > { %3163 = vmatprep.mubr.msk.bf16.mxu1 %vm365_vm2, %v345_v29  ;;  %3176 = vmatpush3.bf16.msra.mxu1 %v3459_v6  ;;  %v314_v37 = vld [vmem:[%s3986_s20 + $0x58] sm:$0xff]  ;;  %v315_v39 = vld [vmem:[%s3986_s20 + $0x60] sm:$0xff]  ;;  %v316_v40 = vld [vmem:[%s3986_s20 + $0x68] sm:$0xff]  ;;  %v347_v41 = vpack.c.bf16 %v328_v35, %v327_v34 }
  0x21   : > { %3177 = vmatprep.subr.bf16.mxu1 %v3460_v23  ;;  %v329_v42 = vld [vmem:[%s3986_s20 + $0xd0] sm:$0xff]  ;;  %v330_v43 = vld [vmem:[%s3986_s20 + $0xd8] sm:$0xff]  ;;  %v331_v44 = vld [vmem:[%s3986_s20 + $0xe0] sm:$0xff]  ;;  %v340_v46 = vpack.c.bf16 %v314_v37, %v313_v36  ;;  %v341_v47 = vpack.c.bf16 %v316_v40, %v315_v39  ;;  %3225 = vmatprep.subr.bf16.mxu0 %v3468_v63 }
  0x22   : > { %v332_v45 = vld [vmem:[%s3986_s20 + $0xe8] sm:$0xff]  ;;  %v317_v48 = vld [vmem:[%s3986_s20 + $0x70] sm:$0xff]  ;;  %v318_v49 = vld [vmem:[%s3986_s20 + $0x78] sm:$0xff]  ;;  %v348_v50 = vpack.c.bf16 %v330_v43, %v329_v42 }
  0x23   : > { %v349_v51 = vpack.c.bf16 %v332_v45, %v331_v44  ;;  %v333_v52 = vld [vmem:[%s3986_s20 + $0xf0] sm:$0xff]  ;;  %v334_v53 = vld [vmem:[%s3986_s20 + $0xf8] sm:$0xff]  ;;  %v342_v54 = vpack.c.bf16 %v318_v49, %v317_v48  ;;  %3226 = vmatpush3.bf16.msra.mxu0 %v3468_v63 }
  0x24   : > { %3178 = vmatpush3.bf16.msra.mxu1 %v3460_v23  ;;  %v350_v55 = vpack.c.bf16 %v334_v53, %v333_v52 }
  0x25   : > { %3148 = vmatmul.mubr.msk.bf16.gmra.mrb[4].mxu0 %vm365_vm2, %v338_v30  ;;  %3179 = vmatprep.subr.bf16.mxu1 %v3461_v56 }
  0x26   : > { %3151 = vmatprep.mubr.msk.bf16.mxu0 %vm365_vm2, %v339_v33 }
  0x27   : > { %3164 = vmatmul.mubr.msk.bf16.gmra.mrb[4].mxu1 %vm365_vm2, %v346_v38 }
  0x28   : > { %3167 = vmatprep.mubr.msk.bf16.mxu1 %vm365_vm2, %v347_v41  ;;  %3180 = vmatpush3.bf16.msra.mxu1 %v3461_v56 }
  0x29   : > { %3181 = vmatprep.subr.bf16.mxu1 %v3462_v57 }
  0x2c   : > { %3182 = vmatpush3.bf16.msra.mxu1 %v3462_v57 }
  0x2d   : > { %3152 = vmatmul.mubr.msk.bf16.gmra.mrb[8].mxu0 %vm365_vm2, %v340_v46  ;;  %3183 = vmatprep.subr.bf16.mxu1 %v3463_v58 }
  0x2e   : > { %3155 = vmatprep.mubr.msk.bf16.mxu0 %vm365_vm2, %v341_v47 }
  0x2f   : > { %3168 = vmatmul.mubr.msk.bf16.gmra.mrb[8].mxu1 %vm365_vm2, %v348_v50 }
  0x30   : > { %3171 = vmatprep.mubr.msk.bf16.mxu1 %vm365_vm2, %v349_v51  ;;  %3184 = vmatpush3.bf16.msra.mxu1 %v3463_v58 }
  0x31   : > { %3185 = vmatprep.subr.bf16.mxu1 %v3464_v59 }
  0x34   : > { %3186 = vmatpush3.bf16.msra.mxu1 %v3464_v59 }
  0x35   : > { %3156 = vmatmul.mubr.msk.bf16.gmra.mrb[12].mxu0 %vm365_vm2, %v342_v54  ;;  %3187 = vmatprep.subr.bf16.mxu1 %v3465_v60 }
  0x37   : > { %3172 = vmatmul.mubr.msk.bf16.gmra.mrb[12].mxu1 %vm365_vm2, %v350_v55 }
  0x38   : > { %3188 = vmatpush3.bf16.msra.mxu1 %v3465_v60 }
  0x39   : > { %3189 = vmatprep.subr.bf16.mxu1 %v3466_v61 }
  0x3c   : > { %3190 = vmatpush3.bf16.msra.mxu1 %v3466_v61 }
  0xf0   : > { %v3145_v1 = vpop.f32.mrb[0].mxu0 }
  0xf1   : > { %v4069_v2 = vadd.f32 %v3145_v1, %v4066_v0  ;;  %v455_v3 = vpop.f32.mrb[1].mxu0 }
  0xf2   : > { %v4072_v4 = vadd.f32 %v4066_v0, %v455_v3  ;;  %v3146_v5 = vpop.f32.mrb[2].mxu0  ;;  %v3161_v9 = vpop.f32.mrb[0].mxu1 }
  0xf3   : > { %v584_v6 = vmul.f32 0.5, %v4069_v2  ;;  %v4076_v7 = vadd.f32 %v3146_v5, %v4066_v0  ;;  %v458_v8 = vpop.f32.mrb[3].mxu0  ;;  %v4083_v12 = vadd.f32 %v3161_v9, %v4066_v0  ;;  %v519_v13 = vpop.f32.mrb[1].mxu1 }
  0xf4   : > { %v582_v10 = vmul.f32 0.5, %v4072_v4  ;;  %v4080_v11 = vadd.f32 %v4066_v0, %v458_v8  ;;  %v4087_v15 = vadd.f32 %v4066_v0, %v519_v13  ;;  %v3162_v16 = vpop.f32.mrb[2].mxu1 }
  0xf5   : > { %3491 = vtanh.f32 %v584_v6  ;;  %v585_v14 = vmul.f32 0.5, %v4076_v7  ;;  %v600_v18 = vmul.f32 0.5, %v4083_v12  ;;  %v4092_v19 = vadd.f32 %v3162_v16, %v4066_v0  ;;  %v522_v20 = vpop.f32.mrb[3].mxu1 }
  0xf6   : > { %3493 = vtanh.f32 %v582_v10  ;;  %v583_v17 = vmul.f32 0.5, %v4080_v11  ;;  %v598_v21 = vmul.f32 0.5, %v4087_v15  ;;  %v4096_v22 = vadd.f32 %v4066_v0, %v522_v20 }
  0xf7   : > { %3495 = vtanh.f32 %v585_v14  ;;  %v601_v24 = vmul.f32 0.5, %v4092_v19 }
  0xf8   : > { %3497 = vtanh.f32 %v583_v17  ;;  %v3149_v23 = vpop.f32.mrb[4].mxu0  ;;  %v599_v27 = vmul.f32 0.5, %v4096_v22 }
  0xf9   : > { %v4100_v25 = vadd.f32 %v3149_v23, %v4066_v0  ;;  %v471_v26 = vpop.f32.mrb[5].mxu0  ;;  %3499 = vtanh.f32 %v600_v18 }
  0xfa   : > { %v4104_v28 = vadd.f32 %v4066_v0, %v471_v26  ;;  %v3150_v29 = vpop.f32.mrb[6].mxu0  ;;  %3501 = vtanh.f32 %v598_v21  ;;  %v3165_v33 = vpop.f32.mrb[4].mxu1 }
  0xfb   : > { %v588_v30 = vmul.f32 0.5, %v4100_v25  ;;  %v4108_v31 = vadd.f32 %v3150_v29, %v4066_v0  ;;  %v474_v32 = vpop.f32.mrb[7].mxu0  ;;  %3503 = vtanh.f32 %v601_v24  ;;  %v4115_v36 = vadd.f32 %v3165_v33, %v4066_v0  ;;  %v535_v37 = vpop.f32.mrb[5].mxu1 }
  0xfc   : > { %v586_v34 = vmul.f32 0.5, %v4104_v28  ;;  %v4112_v35 = vadd.f32 %v4066_v0, %v474_v32  ;;  %3505 = vtanh.f32 %v599_v27  ;;  %v4119_v39 = vadd.f32 %v4066_v0, %v535_v37  ;;  %v3166_v40 = vpop.f32.mrb[6].mxu1 }
  0xfd   : > { %3507 = vtanh.f32 %v588_v30  ;;  %v589_v38 = vmul.f32 0.5, %v4108_v31  ;;  %v604_v42 = vmul.f32 0.5, %v4115_v36  ;;  %v4124_v43 = vadd.f32 %v3166_v40, %v4066_v0  ;;  %v538_v44 = vpop.f32.mrb[7].mxu1 }
  0xfe   : > { %3509 = vtanh.f32 %v586_v34  ;;  %v587_v41 = vmul.f32 0.5, %v4112_v35  ;;  %v602_v46 = vmul.f32 0.5, %v4119_v39  ;;  %v4128_v47 = vadd.f32 %v4066_v0, %v538_v44 }
  0xff   : > { %v3492_v45 = vpop.eup %3491  ;;  %3511 = vtanh.f32 %v589_v38  ;;  %v4131_v51 = vmul.f32 0.5, %v4124_v43 }
 0x100   : > { %v3494_v48 = vpop.eup %3493  ;;  %v648_v49 = vadd.f32 1.0, %v3492_v45  ;;  %3513 = vtanh.f32 %v587_v41  ;;  %v3153_v50 = vpop.f32.mrb[8].mxu0  ;;  %v4137_v56 = vmul.f32 0.5, %v4128_v47 }
 0x101   : > { %v3496_v52 = vpop.eup %3495  ;;  %v646_v53 = vadd.f32 1.0, %v3494_v48  ;;  %v4134_v54 = vadd.f32 %v3153_v50, %v4066_v0  ;;  %v487_v55 = vpop.f32.mrb[9].mxu0  ;;  %3515 = vtanh.f32 %v604_v42 }
 0x102   : > { %v3498_v57 = vpop.eup %3497  ;;  %v680_v58 = vmul.f32 0.5, %v648_v49  ;;  %v649_v59 = vadd.f32 1.0, %v3496_v52  ;;  %v4140_v60 = vadd.f32 %v4066_v0, %v487_v55  ;;  %v3154_v61 = vpop.f32.mrb[10].mxu0  ;;  %3517 = vtanh.f32 %v602_v46 }
 0x103   : > { %v3500_v62 = vpop.eup %3499  ;;  %v678_v63 = vmul.f32 0.5, %v646_v53  ;;  %v647_v1 = vadd.f32 1.0, %v3498_v57  ;;  %v592_v3 = vmul.f32 0.5, %v4134_v54  ;;  %v4144_v5 = vadd.f32 %v3154_v61, %v4066_v0  ;;  %v490_v6 = vpop.f32.mrb[11].mxu0 }
 0x104   : > { %v4146_v8 = vpop.f32.mrb[8].mxu1  ;;  %v3502_v9 = vpop.eup %3501  ;;  %v4149_v10 = vmul.f32 %v680_v58, %v4069_v2  ;;  %v681_v13 = vmul.f32 0.5, %v649_v59  ;;  %v664_v14 = vadd.f32 1.0, %v3500_v62  ;;  %v590_v16 = vmul.f32 0.5, %v4140_v60 }
 0x105   : > { %v4152_v17 = vpop.f32.mrb[9].mxu1  ;;  %v3504_v18 = vpop.eup %3503  ;;  %v4155_v20 = vmul.f32 %v678_v63, %v4072_v4  ;;  %v679_v21 = vmul.f32 0.5, %v647_v1  ;;  %v662_v23 = vadd.f32 1.0, %v3502_v9  ;;  %3519 = vtanh.f32 %v592_v3 }
 0x106   : > { %v4157_v24 = vpop.f32.mrb[10].mxu1  ;;  %v3506_v26 = vpop.eup %3505  ;;  %v4160_v27 = vmul.f32 %v681_v13, %v4076_v7  ;;  %v696_v2 = vmul.f32 0.5, %v664_v14  ;;  %v665_v29 = vadd.f32 1.0, %v3504_v18  ;;  %3521 = vtanh.f32 %v590_v16 }
 0x107   : > { %v4162_v30 = vpop.f32.mrb[11].mxu1  ;;  %v3508_v32 = vpop.eup %3507  ;;  %v4165_v33 = vmul.f32 %v679_v21, %v4080_v11  ;;  %v694_v4 = vmul.f32 0.5, %v662_v23  ;;  %v663_v34 = vadd.f32 1.0, %v3506_v26  ;;  %v593_v37 = vmul.f32 0.5, %v4144_v5 }
 0x108   : > { %v3510_v38 = vpop.eup %3509  ;;  %v743_v40 = vpack.c.bf16 %v4160_v27, %v4149_v10  ;;  %v652_v41 = vadd.f32 1.0, %v3508_v32  ;;  %v4171_v7 = vmul.f32 %v696_v2, %v4083_v12  ;;  %v697_v42 = vmul.f32 0.5, %v665_v29  ;;  %v3157_v44 = vpop.f32.mrb[12].mxu0 }
 0x109   : > { %v3512_v45 = vpop.eup %3511  ;;  %v650_v46 = vadd.f32 1.0, %v3510_v38  ;;  %v4174_v48 = vmul.f32 %v694_v4, %v4087_v15  ;;  %v695_v11 = vmul.f32 0.5, %v663_v34  ;;  %3523 = vtanh.f32 %v593_v37  ;;  %v503_v49 = vpop.f32.mrb[13].mxu0 }
 0x10a   : > { %v3514_v50 = vpop.eup %3513  ;;  %v684_v52 = vmul.f32 0.5, %v652_v41  ;;  %v653_v53 = vadd.f32 1.0, %v3512_v45  ;;  %v4177_v55 = vmul.f32 %v697_v42, %v4092_v19  ;;  %v4180_v57 = vadd.f32 %v4066_v0, %v490_v6  ;;  %v3158_v12 = vpop.f32.mrb[14].mxu0 }
 0x10b   : > { %v3516_v58 = vpop.eup %3515  ;;  %v682_v59 = vmul.f32 0.5, %v650_v46  ;;  %v651_v61 = vadd.f32 1.0, %v3514_v50  ;;  %v4183_v62 = vmul.f32 %v695_v11, %v4096_v22  ;;  %3525 = vtanh.f32 %v4131_v51  ;;  %v506_v15 = vpop.f32.mrb[15].mxu0 }
 0x10c   : > { %v3173_v63 = vpop.f32.mrb[12].mxu1  ;;  %v3518_v1 = vpop.eup %3517  ;;  %v4187_v3 = vmul.f32 %v684_v52, %v4100_v25  ;;  %v685_v19 = vmul.f32 0.5, %v653_v53  ;;  %v591_v9 = vmul.f32 0.5, %v4180_v57  ;;  %v668_v6 = vadd.f32 1.0, %v3516_v58 }
 0x10d   : > { %v4190_v13 = vpop.f32.mrb[13].mxu1  ;;  %v714_v14 = vmul.f32 %v682_v59, %v4104_v28  ;;  %v683_v16 = vmul.f32 0.5, %v651_v61  ;;  %v666_v18 = vadd.f32 1.0, %v3518_v1  ;;  %3527 = vtanh.f32 %v4137_v56 }
 0x10e   : > { %v3174_v22 = vpop.f32.mrb[14].mxu1  ;;  %v4195_v51 = vmul.f32 %v685_v19, %v4108_v31  ;;  %3529 = vtanh.f32 %v591_v9  ;;  %v700_v21 = vmul.f32 0.5, %v668_v6  ;;  %v4198_v25 = vadd.f32 %v3157_v44, %v4066_v0 }
 0x10f   : > { %v570_v23 = vpop.f32.mrb[15].mxu1  ;;  %v3520_v26 = vpop.eup %3519  ;;  %v715_v2 = vmul.f32 %v683_v16, %v4112_v35  ;;  %v698_v29 = vmul.f32 0.5, %v666_v18  ;;  %v4202_v28 = vadd.f32 %v4066_v0, %v503_v49  ;;  %v4205_v32 = vadd.f32 %v3158_v12, %v4066_v0 }
 0x110   : > { %v3522_v56 = vpop.eup %3521  ;;  %v656_v4 = vadd.f32 1.0, %v3520_v26  ;;  %v4208_v31 = vmul.f32 %v700_v21, %v4115_v36  ;;  %v596_v34 = vmul.f32 0.5, %v4198_v25  ;;  %v4212_v37 = vadd.f32 %v4066_v0, %v506_v15 }
 0x111   : > { %v654_v38 = vadd.f32 1.0, %v3522_v56  ;;  %v4215_v35 = vmul.f32 %v698_v29, %v4119_v39  ;;  %v594_v41 = vmul.f32 0.5, %v4202_v28  ;;  %v597_v42 = vmul.f32 0.5, %v4205_v32 }
 0x112   : > { %v688_v44 = vmul.f32 0.5, %v656_v4  ;;  %3531 = vtanh.f32 %v596_v34  ;;  %v595_v45 = vmul.f32 0.5, %v4212_v37  ;;  %v742_v36 = vpack.c.bf16 %v4165_v33, %v4155_v20 }
 0x113   : > { %v3524_v46 = vpop.eup %3523  ;;  %v686_v11 = vmul.f32 0.5, %v654_v38  ;;  %3533 = vtanh.f32 %v594_v41  ;;  %v4224_v49 = vadd.f32 %v4146_v8, %v4066_v0  ;;  %v4228_v39 = vadd.f32 %v4066_v0, %v4152_v17 }
 0x114   : > { %v4231_v50 = vmul.f32 %v688_v44, %v4134_v54  ;;  %v657_v52 = vadd.f32 1.0, %v3524_v46  ;;  %3535 = vtanh.f32 %v597_v42  ;;  %3191 = vmatprep.mubr.bf16.mxu1 %v742_v36  ;;  %v4235_v20 = vadd.f32 %v4157_v24, %v4066_v0 }
 0x115   : > { %v3526_v33 = vpop.eup %3525  ;;  %v718_v53 = vmul.f32 %v686_v11, %v4140_v60  ;;  %3537 = vtanh.f32 %v595_v45  ;;  %v608_v8 = vmul.f32 0.5, %v4224_v49  ;;  %3192 = vmatmul.mubr.bf16.vlgmr.msra.gmra.mrb[16].mxu1 %v743_v40  ;;  %v606_v54 = vmul.f32 0.5, %v4228_v39 }
 0x116   : > { %v689_v17 = vmul.f32 0.5, %v657_v52  ;;  %v669_v12 = vadd.f32 1.0, %v3526_v33  ;;  %v609_v58 = vmul.f32 0.5, %v4235_v20  ;;  %v4246_v24 = vadd.f32 %v4066_v0, %v4162_v30 }
 0x117   : > { %v3528_v59 = vpop.eup %3527  ;;  %3539 = vtanh.f32 %v608_v8  ;;  %v744_v60 = vpack.c.bf16 %v715_v2, %v714_v14  ;;  %v4249_v61 = vadd.f32 %v3173_v63, %v4066_v0  ;;  %v745_v10 = vpack.c.bf16 %v4195_v51, %v4187_v3 }
 0x118   : > { %v3530_v27 = vpop.eup %3529  ;;  %v721_v40 = vmul.f32 %v689_v17, %v4144_v5  ;;  %v701_v15 = vmul.f32 0.5, %v669_v12  ;;  %v667_v1 = vadd.f32 1.0, %v3528_v59  ;;  %3541 = vtanh.f32 %v606_v54 }
 0x119   : > { %v655_v19 = vadd.f32 1.0, %v3530_v27  ;;  %3543 = vtanh.f32 %v609_v58  ;;  %v607_v30 = vmul.f32 0.5, %v4246_v24  ;;  %3195 = vmatprep.mubr.bf16.mxu1 %v744_v60  ;;  %v612_v9 = vmul.f32 0.5, %v4249_v61 }
 0x11a   : > { %v4257_v6 = vmul.f32 %v701_v15, %v4124_v43  ;;  %v699_v63 = vmul.f32 0.5, %v667_v1  ;;  %v4261_v3 = vadd.f32 %v4066_v0, %v4190_v13  ;;  %v4264_v5 = vadd.f32 %v3174_v22, %v4066_v0 }
 0x11b   : > { %v687_v14 = vmul.f32 0.5, %v655_v19  ;;  %3545 = vtanh.f32 %v607_v30  ;;  %v4267_v16 = vadd.f32 %v4066_v0, %v570_v23  ;;  %v747_v18 = vpack.c.bf16 %v721_v40, %v4231_v50 }
 0x11c   : > { %v3532_v51 = vpop.eup %3531  ;;  %v4271_v21 = vmul.f32 %v699_v63, %v4128_v47  ;;  %3547 = vtanh.f32 %v612_v9  ;;  %v610_v43 = vmul.f32 0.5, %v4261_v3  ;;  %v613_v13 = vmul.f32 0.5, %v4264_v5 }
 0x11d   : > { %v3534_v26 = vpop.eup %3533  ;;  %v719_v22 = vmul.f32 %v687_v14, %v4180_v57  ;;  %v660_v2 = vadd.f32 1.0, %v3532_v51  ;;  %3196 = vmatmul.mubr.bf16.gmra.mrb[20].mxu1 %v745_v10  ;;  %v611_v29 = vmul.f32 0.5, %v4267_v16  ;;  %v750_v0 = vpack.c.bf16 %v4183_v62, %v4174_v48 }
 0x11e   : > { %v3536_v23 = vpop.eup %3535  ;;  %v658_v56 = vadd.f32 1.0, %v3534_v26  ;;  %3549 = vtanh.f32 %v610_v43  ;;  %v751_v47 = vpack.c.bf16 %v4177_v55, %v4171_v7  ;;  %v752_v4 = vpack.c.bf16 %v4271_v21, %v4215_v35 }
 0x11f   : > { %v3538_v34 = vpop.eup %3537  ;;  %v692_v38 = vmul.f32 0.5, %v660_v2  ;;  %v661_v41 = vadd.f32 1.0, %v3536_v23  ;;  %3551 = vtanh.f32 %v613_v13  ;;  %v746_v57 = vpack.c.bf16 %v719_v22, %v718_v53  ;;  %v3474_v22 = vld [vmem:[%s5199_s3 + $0x78] sm:$0xff]   ;;  %v3475_v2 = vld [vmem:[%s5199_s3 + $0x80] sm:$0xff]  }
 0x120   : > { %v690_v42 = vmul.f32 0.5, %v658_v56  ;;  %v659_v44 = vadd.f32 1.0, %v3538_v34  ;;  %3553 = vtanh.f32 %v611_v29  ;;  %v753_v48 = vpack.c.bf16 %v4257_v6, %v4208_v31  ;;  %v3476_v29 = vld [vmem:[%s5199_s3 + $0x88] sm:$0xff]   ;;  %3271 = vmatprep.subr.bf16.mxu1 %v3475_v2  ;;  %v3478_v23 = vld [vmem:[%s5199_s3 + $0x98] sm:$0xff]   ;;  %v3479_v56 = vld [vmem:[%s5199_s3 + $0xa0] sm:$0xff]  }
 0x121   : > { %v3540_v62 = vpop.eup %3539  ;;  %v693_v45 = vmul.f32 0.5, %v661_v41  ;;  %3199 = vmatprep.mubr.bf16.mxu1 %v746_v57  ;;  %v724_v35 = vmul.f32 %v692_v38, %v4198_v25  ;;  %3272 = vmatpush3.bf16.msra.mxu1 %v3475_v2 }
 0x122   : > { %v3542_v36 = vpop.eup %3541  ;;  %v691_v46 = vmul.f32 0.5, %v659_v44  ;;  %v672_v7 = vadd.f32 1.0, %v3540_v62  ;;  %v722_v52 = vmul.f32 %v690_v42, %v4202_v28  ;;  %3273 = vmatprep.subr.bf16.mxu1 %v3476_v29 }
 0x123   : > { %v3544_v55 = vpop.eup %3543  ;;  %v725_v11 = vmul.f32 %v693_v45, %v4205_v32  ;;  %v670_v50 = vadd.f32 1.0, %v3542_v36 }
 0x124   : > { %v723_v33 = vmul.f32 %v691_v46, %v4212_v37  ;;  %v704_v53 = vmul.f32 0.5, %v672_v7  ;;  %v673_v8 = vadd.f32 1.0, %v3544_v55 }
 0x125   : > { %v3546_v54 = vpop.eup %3545  ;;  %v702_v31 = vmul.f32 0.5, %v670_v50  ;;  %3200 = vmatmul.mubr.bf16.gmra.mrb[24].mxu1 %v747_v18  ;;  %v749_v17 = vpack.c.bf16 %v725_v11, %v724_v35 }
 0x126   : > { %v3548_v12 = vpop.eup %3547  ;;  %v736_v58 = vmul.f32 %v704_v53, %v4224_v49  ;;  %v705_v59 = vmul.f32 0.5, %v673_v8  ;;  %v671_v60 = vadd.f32 1.0, %v3546_v54  ;;  %v748_v10 = vpack.c.bf16 %v723_v33, %v722_v52  ;;  %3274 = vmatpush3.bf16.msra.mxu1 %v3476_v29 }
 0x127   : > { %v676_v25 = vadd.f32 1.0, %v3548_v12  ;;  %v734_v32 = vmul.f32 %v702_v31, %v4228_v39 }
 0x128   : > { %v3550_v27 = vpop.eup %3549  ;;  %v737_v28 = vmul.f32 %v705_v59, %v4235_v20  ;;  %v703_v40 = vmul.f32 0.5, %v671_v60  ;;  %3203 = vmatprep.mubr.bf16.mxu1 %v748_v10 }
 0x129   : > { %v3552_v37 = vpop.eup %3551  ;;  %v708_v15 = vmul.f32 0.5, %v676_v25  ;;  %v674_v1 = vadd.f32 1.0, %v3550_v27 }
 0x12a   : > { %v3554_v19 = vpop.eup %3553  ;;  %v735_v30 = vmul.f32 %v703_v40, %v4246_v24  ;;  %v677_v9 = vadd.f32 1.0, %v3552_v37  ;;  %v755_v6 = vpack.c.bf16 %v737_v28, %v736_v58  ;;  %v3469_v24 = vld [vmem:[%s5199_s3 + $0x50] sm:$0xff]  }
 0x12b   : > { %v706_v49 = vmul.f32 0.5, %v674_v1  ;;  %v675_v63 = vadd.f32 1.0, %v3554_v19  ;;  %v740_v14 = vmul.f32 %v708_v15, %v4249_v61  ;;  %3227 = vmatprep.subr.bf16.mxu0 %v3469_v24  ;;  %v3470_v61 = vld [vmem:[%s5199_s3 + $0x58] sm:$0xff]  }
 0x12c   : > { %v709_v18 = vmul.f32 0.5, %v677_v9  ;;  %v754_v51 = vpack.c.bf16 %v735_v30, %v734_v32  ;;  %3228 = vmatpush3.bf16.msra.mxu0 %v3469_v24 }
 0x12d   : > { %v738_v39 = vmul.f32 %v706_v49, %v4261_v3  ;;  %v707_v21 = vmul.f32 0.5, %v675_v63  ;;  %3204 = vmatmul.mubr.bf16.gmra.mrb[28].mxu1 %v749_v17  ;;  %3229 = vmatprep.subr.bf16.mxu0 %v3470_v61  ;;  %v3471_v3 = vld [vmem:[%s5199_s3 + $0x60] sm:$0xff]  }
 0x12e   : > { %v741_v20 = vmul.f32 %v709_v18, %v4264_v5  ;;  %3207 = vmatprep.mubr.bf16.mxu1 %v750_v0  ;;  %v3472_v5 = vld [vmem:[%s5199_s3 + $0x68] sm:$0xff]   ;;  %v3477_v0 = vld [vmem:[%s5199_s3 + $0x90] sm:$0xff]  }
 0x12f   : > { %v739_v43 = vmul.f32 %v707_v21, %v4267_v16  ;;  %v3473_v16 = vld [vmem:[%s5199_s3 + $0x70] sm:$0xff]   ;;  %3275 = vmatprep.subr.bf16.mxu1 %v3477_v0 }
 0x130   : > { %v757_v13 = vpack.c.bf16 %v741_v20, %v740_v14  ;;  %3230 = vmatpush3.bf16.msra.mxu0 %v3470_v61  ;;  %3276 = vmatpush3.bf16.msra.mxu1 %v3477_v0 }
 0x131   : > { %v756_v26 = vpack.c.bf16 %v739_v43, %v738_v39  ;;  %3231 = vmatprep.subr.bf16.mxu0 %v3471_v3  ;;  %3277 = vmatprep.subr.bf16.mxu1 %v3478_v23 }
 0x134   : > { %3232 = vmatpush3.bf16.msra.mxu0 %v3471_v3  ;;  %3278 = vmatpush3.bf16.msra.mxu1 %v3478_v23 }
 0x135   : > { %3208 = vmatmul.mubr.bf16.gmra.mrb[32].mxu1 %v751_v47  ;;  %3233 = vmatprep.subr.bf16.mxu0 %v3472_v5  ;;  %v4333_v47 = vld [vmem:[%s5200_s4] ss:$0 sm:$0xff] }
 0x136   : > { %3211 = vmatprep.mubr.bf16.mxu1 %v752_v4  ;;  %3279 = vmatprep.subr.bf16.mxu1 %v3479_v56 }
 0x138   : > { %3234 = vmatpush3.bf16.msra.mxu0 %v3472_v5  ;;  %3280 = vmatpush3.bf16.msra.mxu1 %v3479_v56 }
 0x139   : > { %3235 = vmatprep.subr.bf16.mxu0 %v3473_v16 }
 0x13c   : > { %3236 = vmatpush3.bf16.msra.mxu0 %v3473_v16 }
 0x13d   : > { %3212 = vmatmul.mubr.bf16.gmra.mrb[36].mxu1 %v753_v48  ;;  %3237 = vmatprep.subr.bf16.mxu0 %v3474_v22 }
 0x13e   : > { %3215 = vmatprep.mubr.bf16.mxu1 %v754_v51 }
 0x140   : > { %3238 = vmatpush3.bf16.msra.mxu0 %v3474_v22 }
 0x145   : > { %3216 = vmatmul.mubr.bf16.gmra.mrb[40].mxu1 %v755_v6 }
 0x146   : > { %3219 = vmatprep.mubr.bf16.mxu1 %v756_v26 }
 0x14d   : > { %3220 = vmatmul.mubr.bf16.gmra.mrb[44].mxu1 %v757_v13 }
 0x1e8   : > { %v3193_v4 = vpop.f32.mrb[16].mxu1 }
 0x1e9   : > { %v872_v34 = vadd.f32 %v3193_v4, %v4333_v47  ;;  %v863_v38 = vpop.f32.mrb[17].mxu1 }
 0x1ea   : > { %v864_v41 = vadd.f32 %v4333_v47, %v863_v38  ;;  %v3194_v57 = vpop.f32.mrb[18].mxu1 }
 0x1eb   : > { %v992_v42 = vmul.f32 0.5, %v872_v34  ;;  %v875_v44 = vadd.f32 %v3194_v57, %v4333_v47  ;;  %v866_v48 = vpop.f32.mrb[19].mxu1 }
 0x1ec   : > { %v990_v62 = vmul.f32 0.5, %v864_v41  ;;  %v867_v45 = vadd.f32 %v4333_v47, %v866_v48 }
 0x1ed   : > { %3555 = vtanh.f32 %v992_v42  ;;  %v993_v36 = vmul.f32 0.5, %v875_v44 }
 0x1ee   : > { %3557 = vtanh.f32 %v990_v62  ;;  %v991_v46 = vmul.f32 0.5, %v867_v45 }
 0x1ef   : > { %3559 = vtanh.f32 %v993_v36 }
 0x1f0   : > { %3561 = vtanh.f32 %v991_v46  ;;  %v3197_v7 = vpop.f32.mrb[20].mxu1 }
 0x1f1   : > { %v4340_v55 = vadd.f32 %v3197_v7, %v4333_v47  ;;  %v879_v35 = vpop.f32.mrb[21].mxu1 }
 0x1f2   : > { %v4343_v11 = vadd.f32 %v4333_v47, %v879_v35  ;;  %v3198_v50 = vpop.f32.mrb[22].mxu1 }
 0x1f3   : > { %v996_v52 = vmul.f32 0.5, %v4340_v55  ;;  %v4347_v33 = vadd.f32 %v3198_v50, %v4333_v47  ;;  %v882_v53 = vpop.f32.mrb[23].mxu1 }
 0x1f4   : > { %v994_v8 = vmul.f32 0.5, %v4343_v11  ;;  %v4351_v54 = vadd.f32 %v4333_v47, %v882_v53 }
 0x1f5   : > { %3563 = vtanh.f32 %v996_v52  ;;  %v997_v31 = vmul.f32 0.5, %v4347_v33 }
 0x1f6   : > { %3565 = vtanh.f32 %v994_v8  ;;  %v995_v17 = vmul.f32 0.5, %v4351_v54 }
 0x1f7   : > { %v3556_v12 = vpop.eup %3555  ;;  %3567 = vtanh.f32 %v997_v31 }
 0x1f8   : > { %v3558_v58 = vpop.eup %3557  ;;  %v1056_v59 = vadd.f32 1.0, %v3556_v12  ;;  %3569 = vtanh.f32 %v995_v17  ;;  %v3201_v60 = vpop.f32.mrb[24].mxu1 }
 0x1f9   : > { %v3560_v10 = vpop.eup %3559  ;;  %v1054_v25 = vadd.f32 1.0, %v3558_v58  ;;  %v4356_v27 = vadd.f32 %v3201_v60, %v4333_v47  ;;  %v895_v32 = vpop.f32.mrb[25].mxu1 }
 0x1fa   : > { %v3562_v28 = vpop.eup %3561  ;;  %v1088_v40 = vmul.f32 0.5, %v1056_v59  ;;  %v1057_v37 = vadd.f32 1.0, %v3560_v10  ;;  %v4359_v15 = vadd.f32 %v4333_v47, %v895_v32  ;;  %v3202_v1 = vpop.f32.mrb[26].mxu1 }
 0x1fb   : > { %v1086_v19 = vmul.f32 0.5, %v1054_v25  ;;  %v1055_v30 = vadd.f32 1.0, %v3562_v28  ;;  %v1000_v9 = vmul.f32 0.5, %v4356_v27  ;;  %v4363_v6 = vadd.f32 %v3202_v1, %v4333_v47  ;;  %v898_v49 = vpop.f32.mrb[27].mxu1 }
 0x1fc   : > { %v1089_v63 = vmul.f32 0.5, %v1057_v37  ;;  %v998_v14 = vmul.f32 0.5, %v4359_v15  ;;  %v4367_v18 = vadd.f32 %v4333_v47, %v898_v49  ;;  %v1120_v21 = vmul.f32 %v1088_v40, %v872_v34 }
 0x1fd   : > { %v1087_v51 = vmul.f32 0.5, %v1055_v30  ;;  %3571 = vtanh.f32 %v1000_v9  ;;  %v1001_v39 = vmul.f32 0.5, %v4363_v6  ;;  %v1118_v26 = vmul.f32 %v1086_v19, %v864_v41 }
 0x1fe   : > { %v1121_v20 = vmul.f32 %v1089_v63, %v875_v44  ;;  %3573 = vtanh.f32 %v998_v14  ;;  %v999_v43 = vmul.f32 0.5, %v4367_v18 }
 0x1ff   : > { %v3564_v13 = vpop.eup %3563  ;;  %v1119_v24 = vmul.f32 %v1087_v51, %v867_v45  ;;  %3575 = vtanh.f32 %v1001_v39 }
 0x200   : > { %v3566_v61 = vpop.eup %3565  ;;  %v1151_v3 = vpack.c.bf16 %v1121_v20, %v1120_v21  ;;  %v1060_v5 = vadd.f32 1.0, %v3564_v13  ;;  %3577 = vtanh.f32 %v999_v43  ;;  %v3205_v16 = vpop.f32.mrb[28].mxu1 }
 0x201   : > { %v3568_v22 = vpop.eup %3567  ;;  %v1058_v2 = vadd.f32 1.0, %v3566_v61  ;;  %v4372_v29 = vadd.f32 %v3205_v16, %v4333_v47  ;;  %v911_v0 = vpop.f32.mrb[29].mxu1  ;;  %v1150_v23 = vpack.c.bf16 %v1119_v24, %v1118_v26 }
 0x202   : > { %v3570_v56 = vpop.eup %3569  ;;  %v1092_v4 = vmul.f32 0.5, %v1060_v5  ;;  %v1061_v34 = vadd.f32 1.0, %v3568_v22  ;;  %v4375_v38 = vadd.f32 %v4333_v47, %v911_v0  ;;  %v3206_v41 = vpop.f32.mrb[30].mxu1 }
 0x203   : > { %v1090_v57 = vmul.f32 0.5, %v1058_v2  ;;  %v1059_v42 = vadd.f32 1.0, %v3570_v56  ;;  %v1004_v44 = vmul.f32 0.5, %v4372_v29  ;;  %v4379_v48 = vadd.f32 %v3206_v41, %v4333_v47  ;;  %v914_v62 = vpop.f32.mrb[31].mxu1  ;;  %3239 = vmatprep.mubr.bf16.mxu0 %v1150_v23 }
 0x204   : > { %v1093_v45 = vmul.f32 0.5, %v1061_v34  ;;  %v1002_v36 = vmul.f32 0.5, %v4375_v38  ;;  %v4383_v46 = vadd.f32 %v4333_v47, %v914_v62  ;;  %3240 = vmatmul.mubr.bf16.vlgmr.msra.gmra.mrb[16].mxu0 %v1151_v3  ;;  %v1124_v50 = vmul.f32 %v1092_v4, %v4340_v55 }
 0x205   : > { %v1091_v7 = vmul.f32 0.5, %v1059_v42  ;;  %3579 = vtanh.f32 %v1004_v44  ;;  %v1005_v35 = vmul.f32 0.5, %v4379_v48  ;;  %v1122_v31 = vmul.f32 %v1090_v57, %v4343_v11 }
 0x206   : > { %v1125_v52 = vmul.f32 %v1093_v45, %v4347_v33  ;;  %3581 = vtanh.f32 %v1002_v36  ;;  %v1003_v53 = vmul.f32 0.5, %v4383_v46 }
 0x207   : > { %v3572_v8 = vpop.eup %3571  ;;  %v1123_v17 = vmul.f32 %v1091_v7, %v4351_v54  ;;  %3583 = vtanh.f32 %v1005_v35 }
 0x208   : > { %v3574_v12 = vpop.eup %3573  ;;  %v1064_v58 = vadd.f32 1.0, %v3572_v8  ;;  %3585 = vtanh.f32 %v1003_v53  ;;  %v3209_v59 = vpop.f32.mrb[32].mxu1  ;;  %v1153_v60 = vpack.c.bf16 %v1125_v52, %v1124_v50 }
 0x209   : > { %v3576_v10 = vpop.eup %3575  ;;  %v1062_v25 = vadd.f32 1.0, %v3574_v12  ;;  %v4392_v55 = vadd.f32 %v3209_v59, %v4333_v47  ;;  %v927_v33 = vpop.f32.mrb[33].mxu1  ;;  %v1152_v32 = vpack.c.bf16 %v1123_v17, %v1122_v31 }
 0x20a   : > { %v3578_v28 = vpop.eup %3577  ;;  %v1096_v40 = vmul.f32 0.5, %v1064_v58  ;;  %v1065_v37 = vadd.f32 1.0, %v3576_v10  ;;  %v4395_v11 = vadd.f32 %v4333_v47, %v927_v33  ;;  %v3210_v54 = vpop.f32.mrb[34].mxu1 }
 0x20b   : > { %v1094_v1 = vmul.f32 0.5, %v1062_v25  ;;  %v1063_v19 = vadd.f32 1.0, %v3578_v28  ;;  %v1008_v30 = vmul.f32 0.5, %v4392_v55  ;;  %v4399_v9 = vadd.f32 %v3210_v54, %v4333_v47  ;;  %v930_v49 = vpop.f32.mrb[35].mxu1  ;;  %3243 = vmatprep.mubr.bf16.mxu0 %v1152_v32 }
 0x20c   : > { %v1097_v63 = vmul.f32 0.5, %v1065_v37  ;;  %v1006_v14 = vmul.f32 0.5, %v4395_v11  ;;  %v4403_v51 = vadd.f32 %v4333_v47, %v930_v49  ;;  %3244 = vmatmul.mubr.bf16.gmra.mrb[20].mxu0 %v1153_v60  ;;  %v1128_v20 = vmul.f32 %v1096_v40, %v4356_v27 }
 0x20d   : > { %v1095_v39 = vmul.f32 0.5, %v1063_v19  ;;  %3587 = vtanh.f32 %v1008_v30  ;;  %v1009_v21 = vmul.f32 0.5, %v4399_v9  ;;  %v1126_v24 = vmul.f32 %v1094_v1, %v4359_v15 }
 0x20e   : > { %v1129_v43 = vmul.f32 %v1097_v63, %v4363_v6  ;;  %3589 = vtanh.f32 %v1006_v14  ;;  %v1007_v13 = vmul.f32 0.5, %v4403_v51 }
 0x20f   : > { %v3580_v26 = vpop.eup %3579  ;;  %v1127_v61 = vmul.f32 %v1095_v39, %v4367_v18  ;;  %3591 = vtanh.f32 %v1009_v21 }
 0x210   : > { %v3582_v3 = vpop.eup %3581  ;;  %v1068_v5 = vadd.f32 1.0, %v3580_v26  ;;  %3593 = vtanh.f32 %v1007_v13  ;;  %v3213_v16 = vpop.f32.mrb[36].mxu1  ;;  %v1155_v22 = vpack.c.bf16 %v1129_v43, %v1128_v20 }
 0x211   : > { %v3584_v2 = vpop.eup %3583  ;;  %v1066_v0 = vadd.f32 1.0, %v3582_v3  ;;  %v4412_v27 = vadd.f32 %v3213_v16, %v4333_v47  ;;  %v943_v6 = vpop.f32.mrb[37].mxu1  ;;  %v1154_v23 = vpack.c.bf16 %v1127_v61, %v1126_v24 }
 0x212   : > { %v3586_v56 = vpop.eup %3585  ;;  %v1100_v4 = vmul.f32 0.5, %v1068_v5  ;;  %v1069_v34 = vadd.f32 1.0, %v3584_v2  ;;  %v4415_v15 = vadd.f32 %v4333_v47, %v943_v6  ;;  %v3214_v18 = vpop.f32.mrb[38].mxu1 }
 0x213   : > { %v1098_v41 = vmul.f32 0.5, %v1066_v0  ;;  %v1067_v57 = vadd.f32 1.0, %v3586_v56  ;;  %v1012_v42 = vmul.f32 0.5, %v4412_v27  ;;  %v4419_v44 = vadd.f32 %v3214_v18, %v4333_v47  ;;  %v946_v62 = vpop.f32.mrb[39].mxu1  ;;  %3247 = vmatprep.mubr.bf16.mxu0 %v1154_v23 }
 0x214   : > { %v1101_v45 = vmul.f32 0.5, %v1069_v34  ;;  %v1010_v36 = vmul.f32 0.5, %v4415_v15  ;;  %v4423_v7 = vadd.f32 %v4333_v47, %v946_v62  ;;  %3248 = vmatmul.mubr.bf16.gmra.mrb[24].mxu0 %v1155_v22  ;;  %v1132_v52 = vmul.f32 %v1100_v4, %v4372_v29 }
 0x215   : > { %v1099_v35 = vmul.f32 0.5, %v1067_v57  ;;  %3595 = vtanh.f32 %v1012_v42  ;;  %v1013_v50 = vmul.f32 0.5, %v4419_v44  ;;  %v1130_v17 = vmul.f32 %v1098_v41, %v4375_v38 }
 0x216   : > { %v1133_v53 = vmul.f32 %v1101_v45, %v4379_v48  ;;  %3597 = vtanh.f32 %v1010_v36  ;;  %v1011_v8 = vmul.f32 0.5, %v4423_v7 }
 0x217   : > { %v3588_v31 = vpop.eup %3587  ;;  %v1131_v12 = vmul.f32 %v1099_v35, %v4383_v46  ;;  %3599 = vtanh.f32 %v1013_v50 }
 0x218   : > { %v3590_v58 = vpop.eup %3589  ;;  %v1072_v59 = vadd.f32 1.0, %v3588_v31  ;;  %3601 = vtanh.f32 %v1011_v8  ;;  %v3217_v60 = vpop.f32.mrb[40].mxu1  ;;  %v1157_v10 = vpack.c.bf16 %v1133_v53, %v1132_v52 }
 0x219   : > { %v3592_v25 = vpop.eup %3591  ;;  %v1070_v33 = vadd.f32 1.0, %v3590_v58  ;;  %v4432_v29 = vadd.f32 %v3217_v60, %v4333_v47  ;;  %v959_v48 = vpop.f32.mrb[41].mxu1  ;;  %v1156_v32 = vpack.c.bf16 %v1131_v12, %v1130_v17 }
 0x21a   : > { %v3594_v28 = vpop.eup %3593  ;;  %v1104_v40 = vmul.f32 0.5, %v1072_v59  ;;  %v1073_v37 = vadd.f32 1.0, %v3592_v25  ;;  %v4435_v38 = vadd.f32 %v4333_v47, %v959_v48  ;;  %v3218_v46 = vpop.f32.mrb[42].mxu1 }
 0x21b   : > { %v1102_v54 = vmul.f32 0.5, %v1070_v33  ;;  %v1071_v1 = vadd.f32 1.0, %v3594_v28  ;;  %v1016_v19 = vmul.f32 0.5, %v4432_v29  ;;  %v4439_v30 = vadd.f32 %v3218_v46, %v4333_v47  ;;  %v962_v49 = vpop.f32.mrb[43].mxu1  ;;  %3251 = vmatprep.mubr.bf16.mxu0 %v1156_v32 }
 0x21c   : > { %v1105_v63 = vmul.f32 0.5, %v1073_v37  ;;  %v1014_v14 = vmul.f32 0.5, %v4435_v38  ;;  %v4443_v39 = vadd.f32 %v4333_v47, %v962_v49  ;;  %3252 = vmatmul.mubr.bf16.gmra.mrb[28].mxu0 %v1157_v10  ;;  %v1136_v43 = vmul.f32 %v1104_v40, %v4392_v55 }
 0x21d   : > { %v1103_v21 = vmul.f32 0.5, %v1071_v1  ;;  %3603 = vtanh.f32 %v1016_v19  ;;  %v1017_v20 = vmul.f32 0.5, %v4439_v30  ;;  %v1134_v61 = vmul.f32 %v1102_v54, %v4395_v11 }
 0x21e   : > { %v1137_v13 = vmul.f32 %v1105_v63, %v4399_v9  ;;  %3605 = vtanh.f32 %v1014_v14  ;;  %v1015_v26 = vmul.f32 0.5, %v4443_v39 }
 0x21f   : > { %v3596_v24 = vpop.eup %3595  ;;  %v1135_v3 = vmul.f32 %v1103_v21, %v4403_v51  ;;  %3607 = vtanh.f32 %v1017_v20 }
 0x220   : > { %v3598_v5 = vpop.eup %3597  ;;  %v1076_v16 = vadd.f32 1.0, %v3596_v24  ;;  %3609 = vtanh.f32 %v1015_v26  ;;  %v3221_v22 = vpop.f32.mrb[44].mxu1  ;;  %v1159_v2 = vpack.c.bf16 %v1137_v13, %v1136_v43 }
 0x221   : > { %v3600_v0 = vpop.eup %3599  ;;  %v1074_v6 = vadd.f32 1.0, %v3598_v5  ;;  %v4452_v55 = vadd.f32 %v3221_v22, %v4333_v47  ;;  %v975_v9 = vpop.f32.mrb[45].mxu1  ;;  %v1158_v23 = vpack.c.bf16 %v1135_v3, %v1134_v61 }
 0x222   : > { %v3602_v56 = vpop.eup %3601  ;;  %v1108_v4 = vmul.f32 0.5, %v1076_v16  ;;  %v1077_v34 = vadd.f32 1.0, %v3600_v0  ;;  %v976_v11 = vadd.f32 %v4333_v47, %v975_v9  ;;  %v3222_v18 = vpop.f32.mrb[46].mxu1  ;;  %v3481_v0 = vld [vmem:[%s5199_s3 + $0xb0] sm:$0xff]   ;;  %v3484_v9 = vld [vmem:[%s5199_s3 + $0xc8] sm:$0xff]  }
 0x223   : > { %v1106_v51 = vmul.f32 0.5, %v1074_v6  ;;  %v1075_v41 = vadd.f32 1.0, %v3602_v56  ;;  %v1020_v57 = vmul.f32 0.5, %v4452_v55  ;;  %v987_v42 = vadd.f32 %v3222_v18, %v4333_v47  ;;  %v978_v62 = vpop.f32.mrb[47].mxu1  ;;  %3255 = vmatprep.mubr.bf16.mxu0 %v1158_v23  ;;  %v3482_v6 = vld [vmem:[%s5199_s3 + $0xb8] sm:$0xff]   ;;  %v3485_v23 = vld [vmem:[%s5199_s3 + $0xd0] sm:$0xff]  }
 0x224   : > { %v1109_v45 = vmul.f32 0.5, %v1077_v34  ;;  %v1018_v36 = vmul.f32 0.5, %v976_v11  ;;  %v979_v35 = vadd.f32 %v4333_v47, %v978_v62  ;;  %3256 = vmatmul.mubr.bf16.gmra.mrb[32].mxu0 %v1159_v2  ;;  %v1140_v53 = vmul.f32 %v1108_v4, %v4412_v27  ;;  %v3480_v2 = vld [vmem:[%s5199_s3 + $0xa8] sm:$0xff]   ;;  %v3486_v56 = vld [vmem:[%s5199_s3 + $0xd8] sm:$0xff]   ;;  %v3487_v4 = vld [vmem:[%s5199_s3 + $0xe0] sm:$0xff]  }
 0x225   : > { %v1107_v50 = vmul.f32 0.5, %v1075_v41  ;;  %3611 = vtanh.f32 %v1020_v57  ;;  %v1021_v52 = vmul.f32 0.5, %v987_v42  ;;  %v1138_v12 = vmul.f32 %v1106_v51, %v4415_v15  ;;  %3281 = vmatprep.subr.bf16.mxu1 %v3480_v2  ;;  %v4494_v34 = vld [vmem:[%s5200_s4 + $0x1] ss:$0 sm:$0xff] }
 0x226   : > { %v1141_v8 = vmul.f32 %v1109_v45, %v4419_v44  ;;  %3613 = vtanh.f32 %v1018_v36  ;;  %v1019_v31 = vmul.f32 0.5, %v979_v35  ;;  %3282 = vmatpush3.bf16.msra.mxu1 %v3480_v2 }
 0x227   : > { %v3604_v17 = vpop.eup %3603  ;;  %v1139_v58 = vmul.f32 %v1107_v50, %v4423_v7  ;;  %3615 = vtanh.f32 %v1021_v52  ;;  %3283 = vmatprep.subr.bf16.mxu1 %v3481_v0 }
 0x228   : > { %v3606_v59 = vpop.eup %3605  ;;  %v1080_v60 = vadd.f32 1.0, %v3604_v17  ;;  %3617 = vtanh.f32 %v1019_v31  ;;  %v1161_v47 = vpack.c.bf16 %v1141_v8, %v1140_v53 }
 0x229   : > { %v3608_v10 = vpop.eup %3607  ;;  %v1078_v25 = vadd.f32 1.0, %v3606_v59  ;;  %v1160_v33 = vpack.c.bf16 %v1139_v58, %v1138_v12 }
 0x22a   : > { %v3610_v48 = vpop.eup %3609  ;;  %v1112_v32 = vmul.f32 0.5, %v1080_v60  ;;  %v1081_v27 = vadd.f32 1.0, %v3608_v10  ;;  %3284 = vmatpush3.bf16.msra.mxu1 %v3481_v0 }
 0x22b   : > { %v1110_v28 = vmul.f32 0.5, %v1078_v25  ;;  %v1079_v44 = vadd.f32 1.0, %v3610_v48  ;;  %3259 = vmatprep.mubr.bf16.mxu0 %v1160_v33  ;;  %3285 = vmatprep.subr.bf16.mxu1 %v3482_v6 }
 0x22c   : > { %v1113_v40 = vmul.f32 0.5, %v1081_v27  ;;  %3260 = vmatmul.mubr.bf16.gmra.mrb[36].mxu0 %v1161_v47  ;;  %v1144_v15 = vmul.f32 %v1112_v32, %v4432_v29 }
 0x22d   : > { %v1111_v37 = vmul.f32 0.5, %v1079_v44  ;;  %v1142_v54 = vmul.f32 %v1110_v28, %v4435_v38 }
 0x22e   : > { %v1145_v7 = vmul.f32 %v1113_v40, %v4439_v30  ;;  %3286 = vmatpush3.bf16.msra.mxu1 %v3482_v6 }
 0x22f   : > { %v3612_v46 = vpop.eup %3611  ;;  %v1143_v1 = vmul.f32 %v1111_v37, %v4443_v39 }
 0x230   : > { %v3614_v19 = vpop.eup %3613  ;;  %v1084_v49 = vadd.f32 1.0, %v3612_v46  ;;  %v1163_v63 = vpack.c.bf16 %v1145_v7, %v1144_v15 }
 0x231   : > { %v3616_v14 = vpop.eup %3615  ;;  %v1082_v21 = vadd.f32 1.0, %v3614_v19  ;;  %v1162_v20 = vpack.c.bf16 %v1143_v1, %v1142_v54 }
 0x232   : > { %v3618_v43 = vpop.eup %3617  ;;  %v1116_v13 = vmul.f32 0.5, %v1084_v49  ;;  %v1085_v26 = vadd.f32 1.0, %v3616_v14 }
 0x233   : > { %v1114_v24 = vmul.f32 0.5, %v1082_v21  ;;  %v1083_v61 = vadd.f32 1.0, %v3618_v43  ;;  %3263 = vmatprep.mubr.bf16.mxu0 %v1162_v20 }
 0x234   : > { %v1117_v29 = vmul.f32 0.5, %v1085_v26  ;;  %3264 = vmatmul.mubr.bf16.gmra.mrb[40].mxu0 %v1163_v63  ;;  %v1148_v3 = vmul.f32 %v1116_v13, %v4452_v55  ;;  %v3483_v55 = vld [vmem:[%s5199_s3 + $0xc0] sm:$0xff]  }
 0x235   : > { %v1115_v30 = vmul.f32 0.5, %v1083_v61  ;;  %v1146_v5 = vmul.f32 %v1114_v24, %v976_v11  ;;  %3319 = vmatprep.subr.bf16.mxu0 %v3483_v55 }
 0x236   : > { %v1149_v38 = vmul.f32 %v1117_v29, %v987_v42  ;;  %3320 = vmatpush3.bf16.msra.mxu0 %v3483_v55 }
 0x237   : > { %v1147_v39 = vmul.f32 %v1115_v30, %v979_v35  ;;  %3321 = vmatprep.subr.bf16.mxu0 %v3484_v9 }
 0x238   : > { %v1165_v16 = vpack.c.bf16 %v1149_v38, %v1148_v3 }
 0x239   : > { %v1164_v22 = vpack.c.bf16 %v1147_v39, %v1146_v5 }
 0x23a   : > { %3322 = vmatpush3.bf16.msra.mxu0 %v3484_v9 }
 0x23b   : > { %3267 = vmatprep.mubr.bf16.mxu0 %v1164_v22  ;;  %3323 = vmatprep.subr.bf16.mxu0 %v3485_v23 }
 0x23c   : > { %3268 = vmatmul.mubr.bf16.gmra.mrb[44].mxu0 %v1165_v16 }
 0x23e   : > { %3324 = vmatpush3.bf16.msra.mxu0 %v3485_v23 }
 0x23f   : > { %3325 = vmatprep.subr.bf16.mxu0 %v3486_v56 }
 0x242   : > { %3326 = vmatpush3.bf16.msra.mxu0 %v3486_v56 }
 0x243   : > { %3327 = vmatprep.subr.bf16.mxu0 %v3487_v4 }
 0x246   : > { %3328 = vmatpush3.bf16.msra.mxu0 %v3487_v4 }
 0x2d7   : > { %v3241_v11 = vpop.f32.mrb[16].mxu0 }
 0x2d8   : > { %v1282_v18 = vadd.f32 %v3241_v11, %v4494_v34  ;;  %v1273_v51 = vpop.f32.mrb[17].mxu0 }
 0x2d9   : > { %v1274_v41 = vadd.f32 %v4494_v34, %v1273_v51  ;;  %v3242_v57 = vpop.f32.mrb[18].mxu0 }
 0x2da   : > { %v1402_v42 = vmul.f32 0.5, %v1282_v18  ;;  %v1285_v62 = vadd.f32 %v3242_v57, %v4494_v34  ;;  %v1276_v45 = vpop.f32.mrb[19].mxu0 }
 0x2db   : > { %v1400_v36 = vmul.f32 0.5, %v1274_v41  ;;  %v1277_v35 = vadd.f32 %v4494_v34, %v1276_v45 }
 0x2dc   : > { %3619 = vtanh.f32 %v1402_v42  ;;  %v1403_v50 = vmul.f32 0.5, %v1285_v62 }
 0x2dd   : > { %3621 = vtanh.f32 %v1400_v36  ;;  %v1401_v52 = vmul.f32 0.5, %v1277_v35 }
 0x2de   : > { %3623 = vtanh.f32 %v1403_v50 }
 0x2df   : > { %3625 = vtanh.f32 %v1401_v52  ;;  %v3245_v53 = vpop.f32.mrb[20].mxu0 }
 0x2e0   : > { %v4501_v8 = vadd.f32 %v3245_v53, %v4494_v34  ;;  %v1289_v31 = vpop.f32.mrb[21].mxu0 }
 0x2e1   : > { %v4504_v17 = vadd.f32 %v4494_v34, %v1289_v31  ;;  %v3246_v12 = vpop.f32.mrb[22].mxu0 }
 0x2e2   : > { %v1406_v58 = vmul.f32 0.5, %v4501_v8  ;;  %v4508_v59 = vadd.f32 %v3246_v12, %v4494_v34  ;;  %v1292_v60 = vpop.f32.mrb[23].mxu0 }
 0x2e3   : > { %v1404_v47 = vmul.f32 0.5, %v4504_v17  ;;  %v4512_v10 = vadd.f32 %v4494_v34, %v1292_v60 }
 0x2e4   : > { %3627 = vtanh.f32 %v1406_v58  ;;  %v1407_v25 = vmul.f32 0.5, %v4508_v59 }
 0x2e5   : > { %3629 = vtanh.f32 %v1404_v47  ;;  %v1405_v33 = vmul.f32 0.5, %v4512_v10 }
 0x2e6   : > { %v3620_v48 = vpop.eup %3619  ;;  %3631 = vtanh.f32 %v1407_v25 }
 0x2e7   : > { %v3622_v32 = vpop.eup %3621  ;;  %v1466_v27 = vadd.f32 1.0, %v3620_v48  ;;  %3633 = vtanh.f32 %v1405_v33  ;;  %v3249_v28 = vpop.f32.mrb[24].mxu0 }
 0x2e8   : > { %v3624_v44 = vpop.eup %3623  ;;  %v1464_v40 = vadd.f32 1.0, %v3622_v32  ;;  %v4517_v37 = vadd.f32 %v3249_v28, %v4494_v34  ;;  %v1305_v15 = vpop.f32.mrb[25].mxu0 }
 0x2e9   : > { %v3626_v7 = vpop.eup %3625  ;;  %v1498_v46 = vmul.f32 0.5, %v1466_v27  ;;  %v1467_v54 = vadd.f32 1.0, %v3624_v44  ;;  %v4520_v1 = vadd.f32 %v4494_v34, %v1305_v15  ;;  %v3250_v19 = vpop.f32.mrb[26].mxu0 }
 0x2ea   : > { %v1496_v49 = vmul.f32 0.5, %v1464_v40  ;;  %v1465_v63 = vadd.f32 1.0, %v3626_v7  ;;  %v1410_v14 = vmul.f32 0.5, %v4517_v37  ;;  %v4524_v21 = vadd.f32 %v3250_v19, %v4494_v34  ;;  %v1308_v20 = vpop.f32.mrb[27].mxu0 }
 0x2eb   : > { %v1499_v43 = vmul.f32 0.5, %v1467_v54  ;;  %v1408_v13 = vmul.f32 0.5, %v4520_v1  ;;  %v4528_v26 = vadd.f32 %v4494_v34, %v1308_v20  ;;  %v1530_v29 = vmul.f32 %v1498_v46, %v1282_v18 }
 0x2ec   : > { %v1497_v24 = vmul.f32 0.5, %v1465_v63  ;;  %3635 = vtanh.f32 %v1410_v14  ;;  %v1411_v61 = vmul.f32 0.5, %v4524_v21  ;;  %v1528_v5 = vmul.f32 %v1496_v49, %v1274_v41 }
 0x2ed   : > { %v1531_v30 = vmul.f32 %v1499_v43, %v1285_v62  ;;  %3637 = vtanh.f32 %v1408_v13  ;;  %v1409_v3 = vmul.f32 0.5, %v4528_v26 }
 0x2ee   : > { %v3628_v38 = vpop.eup %3627  ;;  %v1529_v39 = vmul.f32 %v1497_v24, %v1277_v35  ;;  %3639 = vtanh.f32 %v1411_v61 }
 0x2ef   : > { %v3630_v16 = vpop.eup %3629  ;;  %v1561_v22 = vpack.c.bf16 %v1531_v30, %v1530_v29  ;;  %v1470_v2 = vadd.f32 1.0, %v3628_v38  ;;  %3641 = vtanh.f32 %v1409_v3  ;;  %v3253_v0 = vpop.f32.mrb[28].mxu0 }
 0x2f0   : > { %v3632_v6 = vpop.eup %3631  ;;  %v1468_v55 = vadd.f32 1.0, %v3630_v16  ;;  %v4533_v9 = vadd.f32 %v3253_v0, %v4494_v34  ;;  %v1321_v23 = vpop.f32.mrb[29].mxu0  ;;  %v1560_v56 = vpack.c.bf16 %v1529_v39, %v1528_v5 }
 0x2f1   : > { %v3634_v4 = vpop.eup %3633  ;;  %v1502_v11 = vmul.f32 0.5, %v1470_v2  ;;  %v1471_v18 = vadd.f32 1.0, %v3632_v6  ;;  %v4536_v51 = vadd.f32 %v4494_v34, %v1321_v23  ;;  %v3254_v41 = vpop.f32.mrb[30].mxu0 }
 0x2f2   : > { %v1500_v57 = vmul.f32 0.5, %v1468_v55  ;;  %v1469_v42 = vadd.f32 1.0, %v3634_v4  ;;  %v1414_v62 = vmul.f32 0.5, %v4533_v9  ;;  %v4540_v45 = vadd.f32 %v3254_v41, %v4494_v34  ;;  %v1324_v36 = vpop.f32.mrb[31].mxu0  ;;  %3287 = vmatprep.mubr.bf16.mxu1 %v1560_v56 }
 0x2f3   : > { %v1503_v35 = vmul.f32 0.5, %v1471_v18  ;;  %v1412_v50 = vmul.f32 0.5, %v4536_v51  ;;  %v4544_v52 = vadd.f32 %v4494_v34, %v1324_v36  ;;  %3288 = vmatmul.mubr.bf16.vlgmr.msra.gmra.mrb[48].mxu1 %v1561_v22  ;;  %v1534_v12 = vmul.f32 %v1502_v11, %v4501_v8 }
 0x2f4   : > { %v1501_v53 = vmul.f32 0.5, %v1469_v42  ;;  %3643 = vtanh.f32 %v1414_v62  ;;  %v1415_v31 = vmul.f32 0.5, %v4540_v45  ;;  %v1532_v25 = vmul.f32 %v1500_v57, %v4504_v17 }
 0x2f5   : > { %v1535_v58 = vmul.f32 %v1503_v35, %v4508_v59  ;;  %3645 = vtanh.f32 %v1412_v50  ;;  %v1413_v60 = vmul.f32 0.5, %v4544_v52 }
 0x2f6   : > { %v3636_v47 = vpop.eup %3635  ;;  %v1533_v33 = vmul.f32 %v1501_v53, %v4512_v10  ;;  %3647 = vtanh.f32 %v1415_v31 }
 0x2f7   : > { %v3638_v48 = vpop.eup %3637  ;;  %v1474_v32 = vadd.f32 1.0, %v3636_v47  ;;  %3649 = vtanh.f32 %v1413_v60  ;;  %v3257_v27 = vpop.f32.mrb[32].mxu0  ;;  %v1563_v28 = vpack.c.bf16 %v1535_v58, %v1534_v12 }
 0x2f8   : > { %v3640_v44 = vpop.eup %3639  ;;  %v1472_v40 = vadd.f32 1.0, %v3638_v48  ;;  %v4553_v8 = vadd.f32 %v3257_v27, %v4494_v34  ;;  %v1337_v59 = vpop.f32.mrb[33].mxu0  ;;  %v1562_v15 = vpack.c.bf16 %v1533_v33, %v1532_v25 }
 0x2f9   : > { %v3642_v7 = vpop.eup %3641  ;;  %v1506_v46 = vmul.f32 0.5, %v1474_v32  ;;  %v1475_v54 = vadd.f32 1.0, %v3640_v44  ;;  %v4556_v17 = vadd.f32 %v4494_v34, %v1337_v59  ;;  %v3258_v10 = vpop.f32.mrb[34].mxu0 }
 0x2fa   : > { %v1504_v19 = vmul.f32 0.5, %v1472_v40  ;;  %v1473_v49 = vadd.f32 1.0, %v3642_v7  ;;  %v1418_v63 = vmul.f32 0.5, %v4553_v8  ;;  %v4560_v14 = vadd.f32 %v3258_v10, %v4494_v34  ;;  %v1340_v20 = vpop.f32.mrb[35].mxu0  ;;  %3291 = vmatprep.mubr.bf16.mxu1 %v1562_v15 }
 0x2fb   : > { %v1507_v43 = vmul.f32 0.5, %v1475_v54  ;;  %v1416_v13 = vmul.f32 0.5, %v4556_v17  ;;  %v4564_v24 = vadd.f32 %v4494_v34, %v1340_v20  ;;  %3292 = vmatmul.mubr.bf16.gmra.mrb[52].mxu1 %v1563_v28  ;;  %v1538_v30 = vmul.f32 %v1506_v46, %v4517_v37 }
 0x2fc   : > { %v1505_v61 = vmul.f32 0.5, %v1473_v49  ;;  %3651 = vtanh.f32 %v1418_v63  ;;  %v1419_v29 = vmul.f32 0.5, %v4560_v14  ;;  %v1536_v39 = vmul.f32 %v1504_v19, %v4520_v1 }
 0x2fd   : > { %v1539_v3 = vmul.f32 %v1507_v43, %v4524_v21  ;;  %3653 = vtanh.f32 %v1416_v13  ;;  %v1417_v38 = vmul.f32 0.5, %v4564_v24 }
 0x2fe   : > { %v3644_v5 = vpop.eup %3643  ;;  %v1537_v16 = vmul.f32 %v1505_v61, %v4528_v26  ;;  %3655 = vtanh.f32 %v1419_v29 }
 0x2ff   : > { %v3646_v22 = vpop.eup %3645  ;;  %v1478_v2 = vadd.f32 1.0, %v3644_v5  ;;  %3657 = vtanh.f32 %v1417_v38  ;;  %v3261_v0 = vpop.f32.mrb[36].mxu0  ;;  %v1565_v6 = vpack.c.bf16 %v1539_v3, %v1538_v30 }
 0x300   : > { %v3648_v55 = vpop.eup %3647  ;;  %v1476_v23 = vadd.f32 1.0, %v3646_v22  ;;  %v4573_v37 = vadd.f32 %v3261_v0, %v4494_v34  ;;  %v1353_v21 = vpop.f32.mrb[37].mxu0  ;;  %v1564_v56 = vpack.c.bf16 %v1537_v16, %v1536_v39 }
 0x301   : > { %v3650_v4 = vpop.eup %3649  ;;  %v1510_v11 = vmul.f32 0.5, %v1478_v2  ;;  %v1479_v18 = vadd.f32 1.0, %v3648_v55  ;;  %v4576_v1 = vadd.f32 %v4494_v34, %v1353_v21  ;;  %v3262_v26 = vpop.f32.mrb[38].mxu0 }
 0x302   : > { %v1508_v41 = vmul.f32 0.5, %v1476_v23  ;;  %v1477_v57 = vadd.f32 1.0, %v3650_v4  ;;  %v1422_v42 = vmul.f32 0.5, %v4573_v37  ;;  %v4580_v62 = vadd.f32 %v3262_v26, %v4494_v34  ;;  %v1356_v36 = vpop.f32.mrb[39].mxu0  ;;  %3295 = vmatprep.mubr.bf16.mxu1 %v1564_v56 }
 0x303   : > { %v1511_v35 = vmul.f32 0.5, %v1479_v18  ;;  %v1420_v50 = vmul.f32 0.5, %v4576_v1  ;;  %v4584_v53 = vadd.f32 %v4494_v34, %v1356_v36  ;;  %3296 = vmatmul.mubr.bf16.gmra.mrb[56].mxu1 %v1565_v6  ;;  %v1542_v58 = vmul.f32 %v1510_v11, %v4533_v9 }
 0x304   : > { %v1509_v31 = vmul.f32 0.5, %v1477_v57  ;;  %3659 = vtanh.f32 %v1422_v42  ;;  %v1423_v12 = vmul.f32 0.5, %v4580_v62  ;;  %v1540_v33 = vmul.f32 %v1508_v41, %v4536_v51 }
 0x305   : > { %v1543_v60 = vmul.f32 %v1511_v35, %v4540_v45  ;;  %3661 = vtanh.f32 %v1420_v50  ;;  %v1421_v47 = vmul.f32 0.5, %v4584_v53 }
 0x306   : > { %v3652_v25 = vpop.eup %3651  ;;  %v1541_v48 = vmul.f32 %v1509_v31, %v4544_v52  ;;  %3663 = vtanh.f32 %v1423_v12 }
 0x307   : > { %v3654_v32 = vpop.eup %3653  ;;  %v1482_v27 = vadd.f32 1.0, %v3652_v25  ;;  %3665 = vtanh.f32 %v1421_v47  ;;  %v3265_v28 = vpop.f32.mrb[40].mxu0  ;;  %v1567_v44 = vpack.c.bf16 %v1543_v60, %v1542_v58 }
 0x308   : > { %v3656_v40 = vpop.eup %3655  ;;  %v1480_v59 = vadd.f32 1.0, %v3654_v32  ;;  %v4593_v9 = vadd.f32 %v3265_v28, %v4494_v34  ;;  %v1369_v45 = vpop.f32.mrb[41].mxu0  ;;  %v1566_v15 = vpack.c.bf16 %v1541_v48, %v1540_v33 }
 0x309   : > { %v3658_v7 = vpop.eup %3657  ;;  %v1514_v46 = vmul.f32 0.5, %v1482_v27  ;;  %v1483_v54 = vadd.f32 1.0, %v3656_v40  ;;  %v4596_v51 = vadd.f32 %v4494_v34, %v1369_v45  ;;  %v3266_v52 = vpop.f32.mrb[42].mxu0 }
 0x30a   : > { %v1512_v10 = vmul.f32 0.5, %v1480_v59  ;;  %v1481_v19 = vadd.f32 1.0, %v3658_v7  ;;  %v1426_v49 = vmul.f32 0.5, %v4593_v9  ;;  %v4600_v63 = vadd.f32 %v3266_v52, %v4494_v34  ;;  %v1372_v20 = vpop.f32.mrb[43].mxu0  ;;  %3299 = vmatprep.mubr.bf16.mxu1 %v1566_v15 }
 0x30b   : > { %v1515_v43 = vmul.f32 0.5, %v1483_v54  ;;  %v1424_v13 = vmul.f32 0.5, %v4596_v51  ;;  %v4604_v61 = vadd.f32 %v4494_v34, %v1372_v20  ;;  %3300 = vmatmul.mubr.bf16.gmra.mrb[60].mxu1 %v1567_v44  ;;  %v1546_v3 = vmul.f32 %v1514_v46, %v4553_v8 }
 0x30c   : > { %v1513_v29 = vmul.f32 0.5, %v1481_v19  ;;  %3667 = vtanh.f32 %v1426_v49  ;;  %v1427_v30 = vmul.f32 0.5, %v4600_v63  ;;  %v1544_v16 = vmul.f32 %v1512_v10, %v4556_v17 }
 0x30d   : > { %v1547_v38 = vmul.f32 %v1515_v43, %v4560_v14  ;;  %3669 = vtanh.f32 %v1424_v13  ;;  %v1425_v5 = vmul.f32 0.5, %v4604_v61 }
 0x30e   : > { %v3660_v39 = vpop.eup %3659  ;;  %v1545_v22 = vmul.f32 %v1513_v29, %v4564_v24  ;;  %3671 = vtanh.f32 %v1427_v30 }
 0x30f   : > { %v3662_v2 = vpop.eup %3661  ;;  %v1486_v0 = vadd.f32 1.0, %v3660_v39  ;;  %3673 = vtanh.f32 %v1425_v5  ;;  %v3269_v6 = vpop.f32.mrb[44].mxu0  ;;  %v1569_v55 = vpack.c.bf16 %v1547_v38, %v1546_v3 }
 0x310   : > { %v3664_v23 = vpop.eup %3663  ;;  %v1484_v21 = vadd.f32 1.0, %v3662_v2  ;;  %v4613_v8 = vadd.f32 %v3269_v6, %v4494_v34  ;;  %v1385_v14 = vpop.f32.mrb[45].mxu0  ;;  %v1568_v56 = vpack.c.bf16 %v1545_v22, %v1544_v16 }
 0x311   : > { %v3666_v4 = vpop.eup %3665  ;;  %v1518_v11 = vmul.f32 0.5, %v1486_v0  ;;  %v1487_v18 = vadd.f32 1.0, %v3664_v23  ;;  %v1386_v17 = vadd.f32 %v4494_v34, %v1385_v14  ;;  %v3270_v26 = vpop.f32.mrb[46].mxu0  ;;  %v3489_v23 = vld [vmem:[%s5199_s3 + $0xf0] sm:$0xff]  }
 0x312   : > { %v1516_v24 = vmul.f32 0.5, %v1484_v21  ;;  %v1485_v41 = vadd.f32 1.0, %v3666_v4  ;;  %v1430_v57 = vmul.f32 0.5, %v4613_v8  ;;  %v1397_v42 = vadd.f32 %v3270_v26, %v4494_v34  ;;  %v1388_v36 = vpop.f32.mrb[47].mxu0  ;;  %3303 = vmatprep.mubr.bf16.mxu1 %v1568_v56  ;;  %v3490_v21 = vld [vmem:[%s5199_s3 + $0xf8] sm:$0xff]  }
 0x313   : > { %v1519_v35 = vmul.f32 0.5, %v1487_v18  ;;  %v1428_v50 = vmul.f32 0.5, %v1386_v17  ;;  %v1389_v31 = vadd.f32 %v4494_v34, %v1388_v36  ;;  %3304 = vmatmul.mubr.bf16.gmra.mrb[64].mxu1 %v1569_v55  ;;  %v1550_v60 = vmul.f32 %v1518_v11, %v4573_v37  ;;  %v3488_v55 = vld [vmem:[%s5199_s3 + $0xe8] sm:$0xff]  }
 0x314   : > { %v1517_v12 = vmul.f32 0.5, %v1485_v41  ;;  %3675 = vtanh.f32 %v1430_v57  ;;  %v1431_v58 = vmul.f32 0.5, %v1397_v42  ;;  %v1548_v48 = vmul.f32 %v1516_v24, %v4576_v1  ;;  %3329 = vmatprep.subr.bf16.mxu0 %v3488_v55 }
 0x315   : > { %v1551_v47 = vmul.f32 %v1519_v35, %v4580_v62  ;;  %3677 = vtanh.f32 %v1428_v50  ;;  %v1429_v25 = vmul.f32 0.5, %v1389_v31  ;;  %3330 = vmatpush3.bf16.msra.mxu0 %v3488_v55 }
 0x316   : > { %v3668_v33 = vpop.eup %3667  ;;  %v1549_v32 = vmul.f32 %v1517_v12, %v4584_v53  ;;  %3679 = vtanh.f32 %v1431_v58  ;;  %3331 = vmatprep.subr.bf16.mxu0 %v3489_v23 }
 0x317   : > { %v3670_v27 = vpop.eup %3669  ;;  %v1490_v28 = vadd.f32 1.0, %v3668_v33  ;;  %3681 = vtanh.f32 %v1429_v25  ;;  %v1571_v34 = vpack.c.bf16 %v1551_v47, %v1550_v60 }
 0x318   : > { %v3672_v44 = vpop.eup %3671  ;;  %v1488_v40 = vadd.f32 1.0, %v3670_v27  ;;  %v1570_v59 = vpack.c.bf16 %v1549_v32, %v1548_v48 }
 0x319   : > { %v3674_v45 = vpop.eup %3673  ;;  %v1522_v15 = vmul.f32 0.5, %v1490_v28  ;;  %v1491_v37 = vadd.f32 1.0, %v3672_v44  ;;  %3332 = vmatpush3.bf16.msra.mxu0 %v3489_v23 }
 0x31a   : > { %v1520_v7 = vmul.f32 0.5, %v1488_v40  ;;  %v1489_v62 = vadd.f32 1.0, %v3674_v45  ;;  %3307 = vmatprep.mubr.bf16.mxu1 %v1570_v59  ;;  %3333 = vmatprep.subr.bf16.mxu0 %v3490_v21 }
 0x31b   : > { %v1523_v46 = vmul.f32 0.5, %v1491_v37  ;;  %3308 = vmatmul.mubr.bf16.gmra.mrb[68].mxu1 %v1571_v34  ;;  %v1554_v1 = vmul.f32 %v1522_v15, %v4593_v9 }
 0x31c   : > { %v1521_v54 = vmul.f32 0.5, %v1489_v62  ;;  %v1552_v10 = vmul.f32 %v1520_v7, %v4596_v51 }
 0x31d   : > { %v1555_v53 = vmul.f32 %v1523_v46, %v4600_v63  ;;  %3334 = vmatpush3.bf16.msra.mxu0 %v3490_v21 }
 0x31e   : > { %v3676_v52 = vpop.eup %3675  ;;  %v1553_v19 = vmul.f32 %v1521_v54, %v4604_v61 }
 0x31f   : > { %v3678_v49 = vpop.eup %3677  ;;  %v1494_v20 = vadd.f32 1.0, %v3676_v52  ;;  %v1573_v43 = vpack.c.bf16 %v1555_v53, %v1554_v1 }
 0x320   : > { %v3680_v13 = vpop.eup %3679  ;;  %v1492_v29 = vadd.f32 1.0, %v3678_v49  ;;  %v1572_v30 = vpack.c.bf16 %v1553_v19, %v1552_v10 }
 0x321   : > { %v3682_v3 = vpop.eup %3681  ;;  %v1526_v38 = vmul.f32 0.5, %v1494_v20  ;;  %v1495_v5 = vadd.f32 1.0, %v3680_v13 }
 0x322   : > { %v1524_v39 = vmul.f32 0.5, %v1492_v29  ;;  %v1493_v16 = vadd.f32 1.0, %v3682_v3  ;;  %3311 = vmatprep.mubr.bf16.mxu1 %v1572_v30 }
 0x323   : > { %v1527_v9 = vmul.f32 0.5, %v1495_v5  ;;  %3312 = vmatmul.mubr.bf16.gmra.mrb[72].mxu1 %v1573_v43  ;;  %v1558_v22 = vmul.f32 %v1526_v38, %v4613_v8  ;;  %v4640_v8 = vld [vmem:[%s5200_s4 + $0x2] ss:$0 sm:$0xff] }
 0x324   : > { %v1525_v63 = vmul.f32 0.5, %v1493_v16  ;;  %v1556_v2 = vmul.f32 %v1524_v39, %v1386_v17 }
 0x325   : > { %v1559_v51 = vmul.f32 %v1527_v9, %v1397_v42 }
 0x326   : > { %v1557_v61 = vmul.f32 %v1525_v63, %v1389_v31 }
 0x327   : > { %v1575_v0 = vpack.c.bf16 %v1559_v51, %v1558_v22 }
 0x328   : > { %v1574_v6 = vpack.c.bf16 %v1557_v61, %v1556_v2 }
 0x32a   : > { %3315 = vmatprep.mubr.bf16.mxu1 %v1574_v6 }
 0x32b   : > { %3316 = vmatmul.mubr.bf16.gmra.mrb[76].mxu1 %v1575_v0 }
 0x3c6   : > { %v3289_v14 = vpop.f32.mrb[48].mxu1 }
 0x3c7   : > { %v1692_v56 = vadd.f32 %v3289_v14, %v4640_v8  ;;  %v1683_v4 = vpop.f32.mrb[49].mxu1 }
 0x3c8   : > { %v1684_v11 = vadd.f32 %v4640_v8, %v1683_v4  ;;  %v3290_v18 = vpop.f32.mrb[50].mxu1 }
 0x3c9   : > { %v1812_v17 = vmul.f32 0.5, %v1692_v56  ;;  %v1695_v26 = vadd.f32 %v3290_v18, %v4640_v8  ;;  %v1686_v24 = vpop.f32.mrb[51].mxu1 }
 0x3ca   : > { %v1810_v41 = vmul.f32 0.5, %v1684_v11  ;;  %v1687_v57 = vadd.f32 %v4640_v8, %v1686_v24 }
 0x3cb   : > { %3683 = vtanh.f32 %v1812_v17  ;;  %v1813_v42 = vmul.f32 0.5, %v1695_v26 }
 0x3cc   : > { %3685 = vtanh.f32 %v1810_v41  ;;  %v1811_v36 = vmul.f32 0.5, %v1687_v57 }
 0x3cd   : > { %3687 = vtanh.f32 %v1813_v42 }
 0x3ce   : > { %3689 = vtanh.f32 %v1811_v36  ;;  %v3293_v35 = vpop.f32.mrb[52].mxu1 }
 0x3cf   : > { %v4647_v50 = vadd.f32 %v3293_v35, %v4640_v8  ;;  %v1699_v31 = vpop.f32.mrb[53].mxu1 }
 0x3d0   : > { %v4650_v12 = vadd.f32 %v4640_v8, %v1699_v31  ;;  %v3294_v58 = vpop.f32.mrb[54].mxu1 }
 0x3d1   : > { %v1816_v60 = vmul.f32 0.5, %v4647_v50  ;;  %v4654_v47 = vadd.f32 %v3294_v58, %v4640_v8  ;;  %v1702_v25 = vpop.f32.mrb[55].mxu1 }
 0x3d2   : > { %v1814_v33 = vmul.f32 0.5, %v4650_v12  ;;  %v4658_v48 = vadd.f32 %v4640_v8, %v1702_v25 }
 0x3d3   : > { %3691 = vtanh.f32 %v1816_v60  ;;  %v1817_v32 = vmul.f32 0.5, %v4654_v47 }
 0x3d4   : > { %3693 = vtanh.f32 %v1814_v33  ;;  %v1815_v27 = vmul.f32 0.5, %v4658_v48 }
 0x3d5   : > { %v3684_v28 = vpop.eup %3683  ;;  %3695 = vtanh.f32 %v1817_v32 }
 0x3d6   : > { %v3686_v34 = vpop.eup %3685  ;;  %v1876_v44 = vadd.f32 1.0, %v3684_v28  ;;  %3697 = vtanh.f32 %v1815_v27  ;;  %v3297_v40 = vpop.f32.mrb[56].mxu1 }
 0x3d7   : > { %v3688_v59 = vpop.eup %3687  ;;  %v1874_v45 = vadd.f32 1.0, %v3686_v34  ;;  %v4663_v15 = vadd.f32 %v3297_v40, %v4640_v8  ;;  %v1715_v37 = vpop.f32.mrb[57].mxu1 }
 0x3d8   : > { %v3690_v7 = vpop.eup %3689  ;;  %v1908_v62 = vmul.f32 0.5, %v1876_v44  ;;  %v1877_v46 = vadd.f32 1.0, %v3688_v59  ;;  %v4666_v54 = vadd.f32 %v4640_v8, %v1715_v37  ;;  %v3298_v1 = vpop.f32.mrb[58].mxu1 }
 0x3d9   : > { %v1906_v53 = vmul.f32 0.5, %v1874_v45  ;;  %v1875_v52 = vadd.f32 1.0, %v3690_v7  ;;  %v1820_v10 = vmul.f32 0.5, %v4663_v15  ;;  %v4670_v19 = vadd.f32 %v3298_v1, %v4640_v8  ;;  %v1718_v49 = vpop.f32.mrb[59].mxu1 }
 0x3da   : > { %v1909_v20 = vmul.f32 0.5, %v1877_v46  ;;  %v1818_v43 = vmul.f32 0.5, %v4666_v54  ;;  %v4674_v13 = vadd.f32 %v4640_v8, %v1718_v49  ;;  %v1940_v3 = vmul.f32 %v1908_v62, %v1692_v56 }
 0x3db   : > { %v1907_v29 = vmul.f32 0.5, %v1875_v52  ;;  %3699 = vtanh.f32 %v1820_v10  ;;  %v1821_v30 = vmul.f32 0.5, %v4670_v19  ;;  %v1938_v16 = vmul.f32 %v1906_v53, %v1684_v11 }
 0x3dc   : > { %v1941_v38 = vmul.f32 %v1909_v20, %v1695_v26  ;;  %3701 = vtanh.f32 %v1818_v43  ;;  %v1819_v5 = vmul.f32 0.5, %v4674_v13 }
 0x3dd   : > { %v3692_v39 = vpop.eup %3691  ;;  %v1939_v9 = vmul.f32 %v1907_v29, %v1687_v57  ;;  %3703 = vtanh.f32 %v1821_v30 }
 0x3de   : > { %v3694_v63 = vpop.eup %3693  ;;  %v1971_v22 = vpack.c.bf16 %v1941_v38, %v1940_v3  ;;  %v1880_v51 = vadd.f32 1.0, %v3692_v39  ;;  %3705 = vtanh.f32 %v1819_v5  ;;  %v3301_v2 = vpop.f32.mrb[60].mxu1 }
 0x3df   : > { %v3696_v61 = vpop.eup %3695  ;;  %v1878_v0 = vadd.f32 1.0, %v3694_v63  ;;  %v4679_v6 = vadd.f32 %v3301_v2, %v4640_v8  ;;  %v1731_v55 = vpop.f32.mrb[61].mxu1  ;;  %v1970_v23 = vpack.c.bf16 %v1939_v9, %v1938_v16 }
 0x3e0   : > { %v3698_v21 = vpop.eup %3697  ;;  %v1912_v14 = vmul.f32 0.5, %v1880_v51  ;;  %v1881_v56 = vadd.f32 1.0, %v3696_v61  ;;  %v4682_v4 = vadd.f32 %v4640_v8, %v1731_v55  ;;  %v3302_v11 = vpop.f32.mrb[62].mxu1 }
 0x3e1   : > { %v1910_v18 = vmul.f32 0.5, %v1878_v0  ;;  %v1879_v17 = vadd.f32 1.0, %v3698_v21  ;;  %v1824_v26 = vmul.f32 0.5, %v4679_v6  ;;  %v4686_v24 = vadd.f32 %v3302_v11, %v4640_v8  ;;  %v1734_v41 = vpop.f32.mrb[63].mxu1  ;;  %3335 = vmatprep.mubr.bf16.mxu0 %v1970_v23 }
 0x3e2   : > { %v1913_v57 = vmul.f32 0.5, %v1881_v56  ;;  %v1822_v42 = vmul.f32 0.5, %v4682_v4  ;;  %v4690_v36 = vadd.f32 %v4640_v8, %v1734_v41  ;;  %3336 = vmatmul.mubr.bf16.vlgmr.msra.gmra.mrb[48].mxu0 %v1971_v22  ;;  %v1944_v58 = vmul.f32 %v1912_v14, %v4647_v50 }
 0x3e3   : > { %v1911_v35 = vmul.f32 0.5, %v1879_v17  ;;  %3707 = vtanh.f32 %v1824_v26  ;;  %v1825_v31 = vmul.f32 0.5, %v4686_v24  ;;  %v1942_v32 = vmul.f32 %v1910_v18, %v4650_v12 }
 0x3e4   : > { %v1945_v60 = vmul.f32 %v1913_v57, %v4654_v47  ;;  %3709 = vtanh.f32 %v1822_v42  ;;  %v1823_v25 = vmul.f32 0.5, %v4690_v36 }
 0x3e5   : > { %v3700_v33 = vpop.eup %3699  ;;  %v1943_v27 = vmul.f32 %v1911_v35, %v4658_v48  ;;  %3711 = vtanh.f32 %v1825_v31 }
 0x3e6   : > { %v3702_v28 = vpop.eup %3701  ;;  %v1884_v34 = vadd.f32 1.0, %v3700_v33  ;;  %3713 = vtanh.f32 %v1823_v25  ;;  %v3305_v44 = vpop.f32.mrb[64].mxu1  ;;  %v1973_v40 = vpack.c.bf16 %v1945_v60, %v1944_v58 }
 0x3e7   : > { %v3704_v59 = vpop.eup %3703  ;;  %v1882_v45 = vadd.f32 1.0, %v3702_v28  ;;  %v4699_v50 = vadd.f32 %v3305_v44, %v4640_v8  ;;  %v1747_v47 = vpop.f32.mrb[65].mxu1  ;;  %v1972_v37 = vpack.c.bf16 %v1943_v27, %v1942_v32 }
 0x3e8   : > { %v3706_v7 = vpop.eup %3705  ;;  %v1916_v62 = vmul.f32 0.5, %v1884_v34  ;;  %v1885_v46 = vadd.f32 1.0, %v3704_v59  ;;  %v4702_v12 = vadd.f32 %v4640_v8, %v1747_v47  ;;  %v3306_v48 = vpop.f32.mrb[66].mxu1 }
 0x3e9   : > { %v1914_v1 = vmul.f32 0.5, %v1882_v45  ;;  %v1883_v53 = vadd.f32 1.0, %v3706_v7  ;;  %v1828_v52 = vmul.f32 0.5, %v4699_v50  ;;  %v4706_v10 = vadd.f32 %v3306_v48, %v4640_v8  ;;  %v1750_v49 = vpop.f32.mrb[67].mxu1  ;;  %3339 = vmatprep.mubr.bf16.mxu0 %v1972_v37 }
 0x3ea   : > { %v1917_v20 = vmul.f32 0.5, %v1885_v46  ;;  %v1826_v43 = vmul.f32 0.5, %v4702_v12  ;;  %v4710_v29 = vadd.f32 %v4640_v8, %v1750_v49  ;;  %3340 = vmatmul.mubr.bf16.gmra.mrb[52].mxu0 %v1973_v40  ;;  %v1948_v38 = vmul.f32 %v1916_v62, %v4663_v15 }
 0x3eb   : > { %v1915_v30 = vmul.f32 0.5, %v1883_v53  ;;  %3715 = vtanh.f32 %v1828_v52  ;;  %v1829_v3 = vmul.f32 0.5, %v4706_v10  ;;  %v1946_v9 = vmul.f32 %v1914_v1, %v4666_v54 }
 0x3ec   : > { %v1949_v5 = vmul.f32 %v1917_v20, %v4670_v19  ;;  %3717 = vtanh.f32 %v1826_v43  ;;  %v1827_v39 = vmul.f32 0.5, %v4710_v29 }
 0x3ed   : > { %v3708_v16 = vpop.eup %3707  ;;  %v1947_v63 = vmul.f32 %v1915_v30, %v4674_v13  ;;  %3719 = vtanh.f32 %v1829_v3 }
 0x3ee   : > { %v3710_v22 = vpop.eup %3709  ;;  %v1888_v51 = vadd.f32 1.0, %v3708_v16  ;;  %3721 = vtanh.f32 %v1827_v39  ;;  %v3309_v2 = vpop.f32.mrb[68].mxu1  ;;  %v1975_v61 = vpack.c.bf16 %v1949_v5, %v1948_v38 }
 0x3ef   : > { %v3712_v0 = vpop.eup %3711  ;;  %v1886_v55 = vadd.f32 1.0, %v3710_v22  ;;  %v4719_v15 = vadd.f32 %v3309_v2, %v4640_v8  ;;  %v1763_v19 = vpop.f32.mrb[69].mxu1  ;;  %v1974_v23 = vpack.c.bf16 %v1947_v63, %v1946_v9 }
 0x3f0   : > { %v3714_v21 = vpop.eup %3713  ;;  %v1920_v14 = vmul.f32 0.5, %v1888_v51  ;;  %v1889_v56 = vadd.f32 1.0, %v3712_v0  ;;  %v4722_v54 = vadd.f32 %v4640_v8, %v1763_v19  ;;  %v3310_v13 = vpop.f32.mrb[70].mxu1 }
 0x3f1   : > { %v1918_v11 = vmul.f32 0.5, %v1886_v55  ;;  %v1887_v18 = vadd.f32 1.0, %v3714_v21  ;;  %v1832_v17 = vmul.f32 0.5, %v4719_v15  ;;  %v4726_v26 = vadd.f32 %v3310_v13, %v4640_v8  ;;  %v1766_v41 = vpop.f32.mrb[71].mxu1  ;;  %3343 = vmatprep.mubr.bf16.mxu0 %v1974_v23 }
 0x3f2   : > { %v1921_v57 = vmul.f32 0.5, %v1889_v56  ;;  %v1830_v42 = vmul.f32 0.5, %v4722_v54  ;;  %v4730_v35 = vadd.f32 %v4640_v8, %v1766_v41  ;;  %3344 = vmatmul.mubr.bf16.gmra.mrb[56].mxu0 %v1975_v61  ;;  %v1952_v60 = vmul.f32 %v1920_v14, %v4679_v6 }
 0x3f3   : > { %v1919_v31 = vmul.f32 0.5, %v1887_v18  ;;  %3723 = vtanh.f32 %v1832_v17  ;;  %v1833_v58 = vmul.f32 0.5, %v4726_v26  ;;  %v1950_v27 = vmul.f32 %v1918_v11, %v4682_v4 }
 0x3f4   : > { %v1953_v25 = vmul.f32 %v1921_v57, %v4686_v24  ;;  %3725 = vtanh.f32 %v1830_v42  ;;  %v1831_v33 = vmul.f32 0.5, %v4730_v35 }
 0x3f5   : > { %v3716_v32 = vpop.eup %3715  ;;  %v1951_v28 = vmul.f32 %v1919_v31, %v4690_v36  ;;  %3727 = vtanh.f32 %v1833_v58 }
 0x3f6   : > { %v3718_v34 = vpop.eup %3717  ;;  %v1892_v44 = vadd.f32 1.0, %v3716_v32  ;;  %3729 = vtanh.f32 %v1831_v33  ;;  %v3313_v40 = vpop.f32.mrb[72].mxu1  ;;  %v1977_v59 = vpack.c.bf16 %v1953_v25, %v1952_v60 }
 0x3f7   : > { %v3720_v45 = vpop.eup %3719  ;;  %v1890_v47 = vadd.f32 1.0, %v3718_v34  ;;  %v4739_v6 = vadd.f32 %v3313_v40, %v4640_v8  ;;  %v1779_v24 = vpop.f32.mrb[73].mxu1  ;;  %v1976_v37 = vpack.c.bf16 %v1951_v28, %v1950_v27 }
 0x3f8   : > { %v3722_v7 = vpop.eup %3721  ;;  %v1924_v62 = vmul.f32 0.5, %v1892_v44  ;;  %v1893_v46 = vadd.f32 1.0, %v3720_v45  ;;  %v4742_v4 = vadd.f32 %v4640_v8, %v1779_v24  ;;  %v3314_v36 = vpop.f32.mrb[74].mxu1 }
 0x3f9   : > { %v1922_v48 = vmul.f32 0.5, %v1890_v47  ;;  %v1891_v1 = vadd.f32 1.0, %v3722_v7  ;;  %v1836_v53 = vmul.f32 0.5, %v4739_v6  ;;  %v4746_v52 = vadd.f32 %v3314_v36, %v4640_v8  ;;  %v1782_v49 = vpop.f32.mrb[75].mxu1  ;;  %3347 = vmatprep.mubr.bf16.mxu0 %v1976_v37 }
 0x3fa   : > { %v1925_v20 = vmul.f32 0.5, %v1893_v46  ;;  %v1834_v43 = vmul.f32 0.5, %v4742_v4  ;;  %v4750_v30 = vadd.f32 %v4640_v8, %v1782_v49  ;;  %3348 = vmatmul.mubr.bf16.gmra.mrb[60].mxu0 %v1977_v59  ;;  %v1956_v5 = vmul.f32 %v1924_v62, %v4699_v50 }
 0x3fb   : > { %v1923_v3 = vmul.f32 0.5, %v1891_v1  ;;  %3731 = vtanh.f32 %v1836_v53  ;;  %v1837_v38 = vmul.f32 0.5, %v4746_v52  ;;  %v1954_v63 = vmul.f32 %v1922_v48, %v4702_v12 }
 0x3fc   : > { %v1957_v39 = vmul.f32 %v1925_v20, %v4706_v10  ;;  %3733 = vtanh.f32 %v1834_v43  ;;  %v1835_v16 = vmul.f32 0.5, %v4750_v30 }
 0x3fd   : > { %v3724_v9 = vpop.eup %3723  ;;  %v1955_v22 = vmul.f32 %v1923_v3, %v4710_v29  ;;  %3735 = vtanh.f32 %v1837_v38 }
 0x3fe   : > { %v3726_v51 = vpop.eup %3725  ;;  %v1896_v2 = vadd.f32 1.0, %v3724_v9  ;;  %3737 = vtanh.f32 %v1835_v16  ;;  %v3317_v61 = vpop.f32.mrb[76].mxu1  ;;  %v1979_v0 = vpack.c.bf16 %v1957_v39, %v1956_v5 }
 0x3ff   : > { %v3728_v55 = vpop.eup %3727  ;;  %v1894_v19 = vadd.f32 1.0, %v3726_v51  ;;  %v4759_v50 = vadd.f32 %v3317_v61, %v4640_v8  ;;  %v1795_v10 = vpop.f32.mrb[77].mxu1  ;;  %v1978_v23 = vpack.c.bf16 %v1955_v22, %v1954_v63 }
 0x400   : > { %v3730_v21 = vpop.eup %3729  ;;  %v1928_v14 = vmul.f32 0.5, %v1896_v2  ;;  %v1897_v56 = vadd.f32 1.0, %v3728_v55  ;;  %v1796_v12 = vadd.f32 %v4640_v8, %v1795_v10  ;;  %v3318_v13 = vpop.f32.mrb[78].mxu1 }
 0x401   : > { %v1926_v29 = vmul.f32 0.5, %v1894_v19  ;;  %v1895_v11 = vadd.f32 1.0, %v3730_v21  ;;  %v1840_v18 = vmul.f32 0.5, %v4759_v50  ;;  %v1807_v17 = vadd.f32 %v3318_v13, %v4640_v8  ;;  %v1798_v41 = vpop.f32.mrb[79].mxu1  ;;  %3351 = vmatprep.mubr.bf16.mxu0 %v1978_v23 }
 0x402   : > { %v1929_v57 = vmul.f32 0.5, %v1897_v56  ;;  %v1838_v42 = vmul.f32 0.5, %v1796_v12  ;;  %v1799_v31 = vadd.f32 %v4640_v8, %v1798_v41  ;;  %3352 = vmatmul.mubr.bf16.gmra.mrb[64].mxu0 %v1979_v0  ;;  %v1960_v25 = vmul.f32 %v1928_v14, %v4719_v15  ;;  %v4777_v0 = vld [vmem:[%s5200_s4 + $0x3] ss:$0 sm:$0xff] }
 0x403   : > { %v1927_v58 = vmul.f32 0.5, %v1895_v11  ;;  %3739 = vtanh.f32 %v1840_v18  ;;  %v1841_v60 = vmul.f32 0.5, %v1807_v17  ;;  %v1958_v28 = vmul.f32 %v1926_v29, %v4722_v54 }
 0x404   : > { %v1961_v33 = vmul.f32 %v1929_v57, %v4726_v26  ;;  %3741 = vtanh.f32 %v1838_v42  ;;  %v1839_v32 = vmul.f32 0.5, %v1799_v31 }
 0x405   : > { %v3732_v27 = vpop.eup %3731  ;;  %v1959_v34 = vmul.f32 %v1927_v58, %v4730_v35  ;;  %3743 = vtanh.f32 %v1841_v60 }
 0x406   : > { %v3734_v44 = vpop.eup %3733  ;;  %v1900_v40 = vadd.f32 1.0, %v3732_v27  ;;  %3745 = vtanh.f32 %v1839_v32  ;;  %v1981_v8 = vpack.c.bf16 %v1961_v33, %v1960_v25 }
 0x407   : > { %v3736_v59 = vpop.eup %3735  ;;  %v1898_v45 = vadd.f32 1.0, %v3734_v44  ;;  %v1980_v47 = vpack.c.bf16 %v1959_v34, %v1958_v28 }
 0x408   : > { %v3738_v24 = vpop.eup %3737  ;;  %v1932_v37 = vmul.f32 0.5, %v1900_v40  ;;  %v1901_v15 = vadd.f32 1.0, %v3736_v59 }
 0x409   : > { %v1930_v7 = vmul.f32 0.5, %v1898_v45  ;;  %v1899_v26 = vadd.f32 1.0, %v3738_v24  ;;  %3355 = vmatprep.mubr.bf16.mxu0 %v1980_v47 }
 0x40a   : > { %v1933_v62 = vmul.f32 0.5, %v1901_v15  ;;  %3356 = vmatmul.mubr.bf16.gmra.mrb[68].mxu0 %v1981_v8  ;;  %v1964_v54 = vmul.f32 %v1932_v37, %v4739_v6 }
 0x40b   : > { %v1931_v46 = vmul.f32 0.5, %v1899_v26  ;;  %v1962_v48 = vmul.f32 %v1930_v7, %v4742_v4 }
 0x40c   : > { %v1965_v35 = vmul.f32 %v1933_v62, %v4746_v52 }
 0x40d   : > { %v3740_v36 = vpop.eup %3739  ;;  %v1963_v1 = vmul.f32 %v1931_v46, %v4750_v30 }
 0x40e   : > { %v3742_v53 = vpop.eup %3741  ;;  %v1904_v49 = vadd.f32 1.0, %v3740_v36  ;;  %v1983_v20 = vpack.c.bf16 %v1965_v35, %v1964_v54  ;;  %v4812_v36 = vld [vmem:[%s5201_s5] ss:$0 sm:$0xff] }
 0x40f   : > { %v3744_v43 = vpop.eup %3743  ;;  %v1902_v3 = vadd.f32 1.0, %v3742_v53  ;;  %v1982_v38 = vpack.c.bf16 %v1963_v1, %v1962_v48 }
 0x410   : > { %v3746_v5 = vpop.eup %3745  ;;  %v1936_v39 = vmul.f32 0.5, %v1904_v49  ;;  %v1905_v16 = vadd.f32 1.0, %v3744_v43 }
 0x411   : > { %v1934_v9 = vmul.f32 0.5, %v1902_v3  ;;  %v1903_v63 = vadd.f32 1.0, %v3746_v5  ;;  %3359 = vmatprep.mubr.bf16.mxu0 %v1982_v38 }
 0x412   : > { %v1937_v6 = vmul.f32 0.5, %v1905_v16  ;;  %3360 = vmatmul.mubr.bf16.gmra.mrb[72].mxu0 %v1983_v20  ;;  %v1968_v22 = vmul.f32 %v1936_v39, %v4759_v50 }
 0x413   : > { %v1935_v52 = vmul.f32 0.5, %v1903_v63  ;;  %v1966_v51 = vmul.f32 %v1934_v9, %v1796_v12 }
 0x414   : > { %v1969_v4 = vmul.f32 %v1937_v6, %v1807_v17 }
 0x415   : > { %v1967_v30 = vmul.f32 %v1935_v52, %v1799_v31 }
 0x416   : > { %v1985_v2 = vpack.c.bf16 %v1969_v4, %v1968_v22 }
 0x417   : > { %v1984_v61 = vpack.c.bf16 %v1967_v30, %v1966_v51 }
 0x419   : > { %3363 = vmatprep.mubr.bf16.mxu0 %v1984_v61 }
 0x41a   : > { %3364 = vmatmul.mubr.bf16.gmra.mrb[76].mxu0 %v1985_v2 }
 0x4b5   : > { %v3337_v55 = vpop.f32.mrb[48].mxu0 }
 0x4b6   : > { %v2102_v19 = vadd.f32 %v3337_v55, %v4777_v0  ;;  %v2093_v10 = vpop.f32.mrb[49].mxu0 }
 0x4b7   : > { %v2094_v23 = vadd.f32 %v4777_v0, %v2093_v10  ;;  %v3338_v21 = vpop.f32.mrb[50].mxu0 }
 0x4b8   : > { %v2222_v50 = vmul.f32 0.5, %v2102_v19  ;;  %v2105_v14 = vadd.f32 %v3338_v21, %v4777_v0  ;;  %v2096_v56 = vpop.f32.mrb[51].mxu0 }
 0x4b9   : > { %v2220_v12 = vmul.f32 0.5, %v2094_v23  ;;  %v2097_v13 = vadd.f32 %v4777_v0, %v2096_v56 }
 0x4ba   : > { %3747 = vtanh.f32 %v2222_v50  ;;  %v2223_v29 = vmul.f32 0.5, %v2105_v14 }
 0x4bb   : > { %3749 = vtanh.f32 %v2220_v12  ;;  %v2221_v11 = vmul.f32 0.5, %v2097_v13 }
 0x4bc   : > { %3751 = vtanh.f32 %v2223_v29 }
 0x4bd   : > { %3753 = vtanh.f32 %v2221_v11  ;;  %v3341_v18 = vpop.f32.mrb[52].mxu0 }
 0x4be   : > { %v4784_v17 = vadd.f32 %v3341_v18, %v4777_v0  ;;  %v2109_v41 = vpop.f32.mrb[53].mxu0 }
 0x4bf   : > { %v4787_v57 = vadd.f32 %v4777_v0, %v2109_v41  ;;  %v3342_v42 = vpop.f32.mrb[54].mxu0 }
 0x4c0   : > { %v2226_v31 = vmul.f32 0.5, %v4784_v17  ;;  %v4791_v58 = vadd.f32 %v3342_v42, %v4777_v0  ;;  %v2112_v60 = vpop.f32.mrb[55].mxu0 }
 0x4c1   : > { %v2224_v25 = vmul.f32 0.5, %v4787_v57  ;;  %v4795_v33 = vadd.f32 %v4777_v0, %v2112_v60 }
 0x4c2   : > { %3755 = vtanh.f32 %v2226_v31  ;;  %v2227_v32 = vmul.f32 0.5, %v4791_v58 }
 0x4c3   : > { %3757 = vtanh.f32 %v2224_v25  ;;  %v2225_v27 = vmul.f32 0.5, %v4795_v33 }
 0x4c4   : > { %v3748_v28 = vpop.eup %3747  ;;  %3759 = vtanh.f32 %v2227_v32 }
 0x4c5   : > { %v3750_v34 = vpop.eup %3749  ;;  %3761 = vtanh.f32 %v2225_v27  ;;  %v3345_v44 = vpop.f32.mrb[56].mxu0  ;;  %v2286_v40 = vadd.f32 1.0, %v3748_v28 }
 0x4c6   : > { %v3752_v8 = vpop.eup %3751  ;;  %v4800_v59 = vadd.f32 %v3345_v44, %v4777_v0  ;;  %v2125_v45 = vpop.f32.mrb[57].mxu0  ;;  %v2284_v47 = vadd.f32 1.0, %v3750_v34 }
 0x4c7   : > { %v3754_v24 = vpop.eup %3753  ;;  %v2287_v37 = vadd.f32 1.0, %v3752_v8  ;;  %v4803_v15 = vadd.f32 %v4777_v0, %v2125_v45  ;;  %v3346_v7 = vpop.f32.mrb[58].mxu0  ;;  %v2318_v26 = vmul.f32 0.5, %v2286_v40 }
 0x4c8   : > { %v2285_v62 = vadd.f32 1.0, %v3754_v24  ;;  %v2230_v46 = vmul.f32 0.5, %v4800_v59  ;;  %v4807_v54 = vadd.f32 %v3346_v7, %v4777_v0  ;;  %v2128_v35 = vpop.f32.mrb[59].mxu0  ;;  %v2316_v48 = vmul.f32 0.5, %v2284_v47 }
 0x4c9   : > { %v2319_v1 = vmul.f32 0.5, %v2287_v37  ;;  %v2228_v53 = vmul.f32 0.5, %v4803_v15  ;;  %v4816_v49 = vadd.f32 %v4777_v0, %v2128_v35  ;;  %v2350_v20 = vmul.f32 %v2318_v26, %v2102_v19 }
 0x4ca   : > { %v2317_v43 = vmul.f32 0.5, %v2285_v62  ;;  %3763 = vtanh.f32 %v2230_v46  ;;  %v2231_v3 = vmul.f32 0.5, %v4807_v54  ;;  %v2348_v38 = vmul.f32 %v2316_v48, %v2094_v23 }
 0x4cb   : > { %v2351_v5 = vmul.f32 %v2319_v1, %v2105_v14  ;;  %3765 = vtanh.f32 %v2228_v53  ;;  %v2229_v39 = vmul.f32 0.5, %v4816_v49  ;;  %v2389_v16 = vmul.f32 %v4812_v36, %v2350_v20 }
 0x4cc   : > { %v3756_v9 = vpop.eup %3755  ;;  %v2349_v63 = vmul.f32 %v2317_v43, %v2097_v13  ;;  %3767 = vtanh.f32 %v2231_v3  ;;  %v2387_v6 = vmul.f32 %v4812_v36, %v2348_v38 }
 0x4cd   : > { %v3758_v52 = vpop.eup %3757  ;;  %v2290_v22 = vadd.f32 1.0, %v3756_v9  ;;  %3769 = vtanh.f32 %v2229_v39  ;;  %2423 = vadd.xlane.f32.xlu1 %v2389_v16  ;;  %v3349_v4 = vpop.f32.mrb[60].mxu0  ;;  %v2390_v55 = vmul.f32 %v4812_v36, %v2351_v5 }
 0x4ce   : > { %v3760_v51 = vpop.eup %3759  ;;  %v2288_v30 = vadd.f32 1.0, %v3758_v52  ;;  %v4823_v2 = vadd.f32 %v3349_v4, %v4777_v0  ;;  %v2141_v61 = vpop.f32.mrb[61].mxu0  ;;  %2419 = vadd.xlane.f32.xlu0 %v2387_v6  ;;  %v2388_v14 = vmul.f32 %v4812_v36, %v2349_v63 }
 0x4cf   : > { %v3762_v19 = vpop.eup %3761  ;;  %v2322_v10 = vmul.f32 0.5, %v2290_v22  ;;  %v2291_v23 = vadd.f32 1.0, %v3760_v51  ;;  %v4827_v21 = vadd.f32 %v4777_v0, %v2141_v61  ;;  %v3350_v50 = vpop.f32.mrb[62].mxu0 }
 0x4d0   : > { %v2320_v56 = vmul.f32 0.5, %v2288_v30  ;;  %v2289_v12 = vadd.f32 1.0, %v3762_v19  ;;  %v2234_v13 = vmul.f32 0.5, %v4823_v2  ;;  %v4832_v29 = vadd.f32 %v3350_v50, %v4777_v0  ;;  %v2144_v11 = vpop.f32.mrb[63].mxu0 }
 0x4d1   : > { %v2354_v18 = vmul.f32 %v2322_v10, %v4784_v17  ;;  %v2323_v41 = vmul.f32 0.5, %v2291_v23  ;;  %v2232_v42 = vmul.f32 0.5, %v4827_v21  ;;  %v4837_v31 = vadd.f32 %v4777_v0, %v2144_v11  ;;  %2425 = vadd.xlane.f32.xlu1 %v2390_v55 }
 0x4d2   : > { %v2352_v60 = vmul.f32 %v2320_v56, %v4787_v57  ;;  %v2321_v25 = vmul.f32 0.5, %v2289_v12  ;;  %3771 = vtanh.f32 %v2234_v13  ;;  %v2235_v32 = vmul.f32 0.5, %v4832_v29  ;;  %2421 = vadd.xlane.f32.xlu0 %v2388_v14 }
 0x4d3   : > { %v2355_v27 = vmul.f32 %v2323_v41, %v4791_v58  ;;  %3773 = vtanh.f32 %v2232_v42  ;;  %v2233_v28 = vmul.f32 0.5, %v4837_v31  ;;  %v2393_v17 = vmul.f32 %v4812_v36, %v2354_v18 }
 0x4d4   : > { %v3764_v34 = vpop.eup %3763  ;;  %v2353_v44 = vmul.f32 %v2321_v25, %v4795_v33  ;;  %3775 = vtanh.f32 %v2235_v32  ;;  %v2391_v7 = vmul.f32 %v4812_v36, %v2352_v60 }
 0x4d5   : > { %v3766_v40 = vpop.eup %3765  ;;  %v2294_v8 = vadd.f32 1.0, %v3764_v34  ;;  %3777 = vtanh.f32 %v2233_v28  ;;  %v3353_v57 = vpop.f32.mrb[64].mxu0  ;;  %v2394_v45 = vmul.f32 %v4812_v36, %v2355_v27 }
 0x4d6   : > { %v3768_v47 = vpop.eup %3767  ;;  %v2292_v24 = vadd.f32 1.0, %v3766_v40  ;;  %v4847_v37 = vadd.f32 %v3353_v57, %v4777_v0  ;;  %v2157_v58 = vpop.f32.mrb[65].mxu0  ;;  %2431 = vadd.xlane.f32.xlu0 %v2393_v17  ;;  %v2392_v48 = vmul.f32 %v4812_v36, %v2353_v44 }
 0x4d7   : > { %v3770_v26 = vpop.eup %3769  ;;  %v2326_v62 = vmul.f32 0.5, %v2294_v8  ;;  %v2295_v46 = vadd.f32 1.0, %v3768_v47  ;;  %v4851_v33 = vadd.f32 %v4777_v0, %v2157_v58  ;;  %2433 = vadd.xlane.f32.xlu1 %v2394_v45  ;;  %v3354_v35 = vpop.f32.mrb[66].mxu0 }
 0x4d8   : > { %v2324_v1 = vmul.f32 0.5, %v2292_v24  ;;  %v2293_v53 = vadd.f32 1.0, %v3770_v26  ;;  %v2238_v20 = vmul.f32 0.5, %v4847_v37  ;;  %v4856_v43 = vadd.f32 %v3354_v35, %v4777_v0  ;;  %v2160_v3 = vpop.f32.mrb[67].mxu0 }
 0x4d9   : > { %v2358_v38 = vmul.f32 %v2326_v62, %v4800_v59  ;;  %v2327_v5 = vmul.f32 0.5, %v2295_v46  ;;  %v2236_v39 = vmul.f32 0.5, %v4851_v33  ;;  %v4861_v16 = vadd.f32 %v4777_v0, %v2160_v3 }
 0x4da   : > { %v2356_v9 = vmul.f32 %v2324_v1, %v4803_v15  ;;  %v2325_v63 = vmul.f32 0.5, %v2293_v53  ;;  %3779 = vtanh.f32 %v2238_v20  ;;  %v2239_v6 = vmul.f32 0.5, %v4856_v43  ;;  %2427 = vadd.xlane.f32.xlu0 %v2391_v7 }
 0x4db   : > { %v2359_v52 = vmul.f32 %v2327_v5, %v4807_v54  ;;  %3781 = vtanh.f32 %v2236_v39  ;;  %v2237_v22 = vmul.f32 0.5, %v4861_v16  ;;  %2429 = vadd.xlane.f32.xlu1 %v2392_v48  ;;  %v2397_v59 = vmul.f32 %v4812_v36, %v2358_v38 }
 0x4dc   : > { %v3772_v4 = vpop.eup %3771  ;;  %v2357_v51 = vmul.f32 %v2325_v63, %v4816_v49  ;;  %3783 = vtanh.f32 %v2239_v6  ;;  %v2395_v50 = vmul.f32 %v4812_v36, %v2356_v9 }
 0x4dd   : > { %v3774_v30 = vpop.eup %3773  ;;  %v2298_v61 = vadd.f32 1.0, %v3772_v4  ;;  %3785 = vtanh.f32 %v2237_v22  ;;  %v3357_v15 = vpop.f32.mrb[68].mxu0  ;;  %v2398_v55 = vmul.f32 %v4812_v36, %v2359_v52 }
 0x4de   : > { %v3776_v19 = vpop.eup %3775  ;;  %v2296_v10 = vadd.f32 1.0, %v3774_v30  ;;  %v4871_v54 = vadd.f32 %v3357_v15, %v4777_v0  ;;  %v2173_v23 = vpop.f32.mrb[69].mxu0  ;;  %2439 = vadd.xlane.f32.xlu0 %v2397_v59  ;;  %v2396_v11 = vmul.f32 %v4812_v36, %v2357_v51 }
 0x4df   : > { %v3778_v14 = vpop.eup %3777  ;;  %v2330_v56 = vmul.f32 0.5, %v2298_v61  ;;  %v2299_v12 = vadd.f32 1.0, %v3776_v19  ;;  %v4875_v49 = vadd.f32 %v4777_v0, %v2173_v23  ;;  %v3358_v13 = vpop.f32.mrb[70].mxu0  ;;  %2441 = vadd.xlane.f32.xlu1 %v2398_v55 }
 0x4e0   : > { %v2328_v18 = vmul.f32 0.5, %v2296_v10  ;;  %v2297_v41 = vadd.f32 1.0, %v3778_v14  ;;  %v2242_v42 = vmul.f32 0.5, %v4871_v54  ;;  %v4880_v60 = vadd.f32 %v3358_v13, %v4777_v0  ;;  %v2176_v25 = vpop.f32.mrb[71].mxu0 }
 0x4e1   : > { %v2362_v32 = vmul.f32 %v2330_v56, %v4823_v2  ;;  %v2331_v27 = vmul.f32 0.5, %v2299_v12  ;;  %v2240_v28 = vmul.f32 0.5, %v4875_v49  ;;  %v4885_v17 = vadd.f32 %v4777_v0, %v2176_v25 }
 0x4e2   : > { %v2360_v34 = vmul.f32 %v2328_v18, %v4827_v21  ;;  %v2329_v44 = vmul.f32 0.5, %v2297_v41  ;;  %3787 = vtanh.f32 %v2242_v42  ;;  %v2243_v40 = vmul.f32 0.5, %v4880_v60  ;;  %2435 = vadd.xlane.f32.xlu0 %v2395_v50 }
 0x4e3   : > { %v2363_v8 = vmul.f32 %v2331_v27, %v4832_v29  ;;  %3789 = vtanh.f32 %v2240_v28  ;;  %v2241_v57 = vmul.f32 0.5, %v4885_v17  ;;  %2437 = vadd.xlane.f32.xlu1 %v2396_v11  ;;  %v2401_v2 = vmul.f32 %v4812_v36, %v2362_v32 }
 0x4e4   : > { %v3780_v45 = vpop.eup %3779  ;;  %v2361_v47 = vmul.f32 %v2329_v44, %v4837_v31  ;;  %3791 = vtanh.f32 %v2243_v40  ;;  %v2399_v35 = vmul.f32 %v4812_v36, %v2360_v34 }
 0x4e5   : > { %v3782_v24 = vpop.eup %3781  ;;  %v2302_v58 = vadd.f32 1.0, %v3780_v45  ;;  %3793 = vtanh.f32 %v2241_v57  ;;  %v3361_v21 = vpop.f32.mrb[72].mxu0  ;;  %v2402_v7 = vmul.f32 %v4812_v36, %v2363_v8 }
 0x4e6   : > { %v3784_v26 = vpop.eup %3783  ;;  %v2300_v62 = vadd.f32 1.0, %v3782_v24  ;;  %v4895_v29 = vadd.f32 %v3361_v21, %v4777_v0  ;;  %v2189_v46 = vpop.f32.mrb[73].mxu0  ;;  %2447 = vadd.xlane.f32.xlu0 %v2401_v2  ;;  %v2400_v3 = vmul.f32 %v4812_v36, %v2361_v47 }
 0x4e7   : > { %v3786_v48 = vpop.eup %3785  ;;  %v2334_v1 = vmul.f32 0.5, %v2302_v58  ;;  %v2303_v53 = vadd.f32 1.0, %v3784_v26  ;;  %v4899_v31 = vadd.f32 %v4777_v0, %v2189_v46  ;;  %v3362_v20 = vpop.f32.mrb[74].mxu0  ;;  %2449 = vadd.xlane.f32.xlu1 %v2402_v7 }
 0x4e8   : > { %v2332_v38 = vmul.f32 0.5, %v2300_v62  ;;  %v2301_v5 = vadd.f32 1.0, %v3786_v48  ;;  %v2246_v39 = vmul.f32 0.5, %v4895_v29  ;;  %v4904_v9 = vadd.f32 %v3362_v20, %v4777_v0  ;;  %v2192_v63 = vpop.f32.mrb[75].mxu0 }
 0x4e9   : > { %v2366_v6 = vmul.f32 %v2334_v1, %v4847_v37  ;;  %v2335_v52 = vmul.f32 0.5, %v2303_v53  ;;  %v2244_v22 = vmul.f32 0.5, %v4899_v31  ;;  %v4909_v59 = vadd.f32 %v4777_v0, %v2192_v63 }
 0x4ea   : > { %v2364_v4 = vmul.f32 %v2332_v38, %v4851_v33  ;;  %v2333_v51 = vmul.f32 0.5, %v2301_v5  ;;  %3795 = vtanh.f32 %v2246_v39  ;;  %v2247_v30 = vmul.f32 0.5, %v4904_v9  ;;  %2443 = vadd.xlane.f32.xlu0 %v2399_v35 }
 0x4eb   : > { %v2367_v61 = vmul.f32 %v2335_v52, %v4856_v43  ;;  %3797 = vtanh.f32 %v2244_v22  ;;  %v2245_v15 = vmul.f32 0.5, %v4909_v59  ;;  %2445 = vadd.xlane.f32.xlu1 %v2400_v3  ;;  %v2405_v37 = vmul.f32 %v4812_v36, %v2366_v6 }
 0x4ec   : > { %v3788_v55 = vpop.eup %3787  ;;  %v2365_v19 = vmul.f32 %v2333_v51, %v4861_v16  ;;  %3799 = vtanh.f32 %v2247_v30  ;;  %v2403_v13 = vmul.f32 %v4812_v36, %v2364_v4 }
 0x4ed   : > { %v3790_v10 = vpop.eup %3789  ;;  %v2306_v23 = vadd.f32 1.0, %v3788_v55  ;;  %3801 = vtanh.f32 %v2245_v15  ;;  %v3365_v33 = vpop.f32.mrb[76].mxu0  ;;  %v2406_v50 = vmul.f32 %v4812_v36, %v2367_v61 }
 0x4ee   : > { %v3792_v14 = vpop.eup %3791  ;;  %v2304_v56 = vadd.f32 1.0, %v3790_v10  ;;  %v4919_v43 = vadd.f32 %v3365_v33, %v4777_v0  ;;  %v2205_v12 = vpop.f32.mrb[77].mxu0  ;;  %2455 = vadd.xlane.f32.xlu0 %v2405_v37  ;;  %v2404_v25 = vmul.f32 %v4812_v36, %v2365_v19 }
 0x4ef   : > { %v3794_v11 = vpop.eup %3793  ;;  %v2338_v18 = vmul.f32 0.5, %v2306_v23  ;;  %v2307_v41 = vadd.f32 1.0, %v3792_v14  ;;  %v4923_v16 = vadd.f32 %v4777_v0, %v2205_v12  ;;  %v3366_v42 = vpop.f32.mrb[78].mxu0  ;;  %2457 = vadd.xlane.f32.xlu1 %v2406_v50 }
 0x4f0   : > { %v2336_v32 = vmul.f32 0.5, %v2304_v56  ;;  %v2305_v27 = vadd.f32 1.0, %v3794_v11  ;;  %v2250_v28 = vmul.f32 0.5, %v4919_v43  ;;  %v4928_v34 = vadd.f32 %v3366_v42, %v4777_v0  ;;  %v2208_v44 = vpop.f32.mrb[79].mxu0 }
 0x4f1   : > { %v2370_v40 = vmul.f32 %v2338_v18, %v4871_v54  ;;  %v2339_v8 = vmul.f32 0.5, %v2307_v41  ;;  %v2248_v57 = vmul.f32 0.5, %v4923_v16  ;;  %v2209_v2 = vadd.f32 %v4777_v0, %v2208_v44 }
 0x4f2   : > { %v2337_v45 = vmul.f32 0.5, %v2305_v27  ;;  %3803 = vtanh.f32 %v2250_v28  ;;  %v2251_v47 = vmul.f32 0.5, %v4928_v34  ;;  %2451 = vadd.xlane.f32.xlu0 %v2403_v13  ;;  %v2368_v54 = vmul.f32 %v2336_v32, %v4875_v49 }
 0x4f3   : > { %v2371_v24 = vmul.f32 %v2339_v8, %v4880_v60  ;;  %3805 = vtanh.f32 %v2248_v57  ;;  %v2249_v58 = vmul.f32 0.5, %v2209_v2  ;;  %2453 = vadd.xlane.f32.xlu1 %v2404_v25  ;;  %v2409_v21 = vmul.f32 %v4812_v36, %v2370_v40 }
 0x4f4   : > { %v3796_v7 = vpop.eup %3795  ;;  %3807 = vtanh.f32 %v2251_v47  ;;  %v2369_v62 = vmul.f32 %v2337_v45, %v4885_v17  ;;  %v2407_v38 = vmul.f32 %v4812_v36, %v2368_v54 }
 0x4f5   : > { %v3798_v26 = vpop.eup %3797  ;;  %v2310_v0 = vadd.f32 1.0, %v3796_v7  ;;  %3809 = vtanh.f32 %v2249_v58  ;;  %v2410_v46 = vmul.f32 %v4812_v36, %v2371_v24 }
 0x4f6   : > { %v3800_v35 = vpop.eup %3799  ;;  %v2308_v48 = vadd.f32 1.0, %v3798_v26  ;;  %2463 = vadd.xlane.f32.xlu0 %v2409_v21  ;;  %v2408_v17 = vmul.f32 %v4812_v36, %v2369_v62 }
 0x4f7   : > { %v3802_v60 = vpop.eup %3801  ;;  %v2342_v1 = vmul.f32 0.5, %v2310_v0  ;;  %v2311_v53 = vadd.f32 1.0, %v3800_v35  ;;  %2465 = vadd.xlane.f32.xlu1 %v2410_v46 }
 0x4f8   : > { %v2340_v20 = vmul.f32 0.5, %v2308_v48  ;;  %v2309_v3 = vadd.f32 1.0, %v3802_v60 }
 0x4f9   : > { %v2374_v49 = vmul.f32 %v2342_v1, %v4895_v29  ;;  %v2343_v5 = vmul.f32 0.5, %v2311_v53 }
 0x4fa   : > { %v2341_v39 = vmul.f32 0.5, %v2309_v3  ;;  %2459 = vadd.xlane.f32.xlu0 %v2407_v38  ;;  %v2372_v22 = vmul.f32 %v2340_v20, %v4899_v31 }
 0x4fb   : > { %v2375_v63 = vmul.f32 %v2343_v5, %v4904_v9  ;;  %2461 = vadd.xlane.f32.xlu1 %v2408_v17  ;;  %v2413_v6 = vmul.f32 %v4812_v36, %v2374_v49 }
 0x4fc   : > { %v3804_v52 = vpop.eup %3803  ;;  %v2373_v51 = vmul.f32 %v2341_v39, %v4909_v59  ;;  %v2411_v23 = vmul.f32 %v4812_v36, %v2372_v22 }
 0x4fd   : > { %v3806_v4 = vpop.eup %3805  ;;  %v2314_v30 = vadd.f32 1.0, %v3804_v52  ;;  %v2414_v61 = vmul.f32 %v4812_v36, %v2375_v63 }
 0x4fe   : > { %v3808_v29 = vpop.eup %3807  ;;  %v2312_v15 = vadd.f32 1.0, %v3806_v4  ;;  %2471 = vadd.xlane.f32.xlu0 %v2413_v6  ;;  %v2412_v33 = vmul.f32 %v4812_v36, %v2373_v51 }
 0x4ff   : > { %v3810_v37 = vpop.eup %3809  ;;  %v2315_v55 = vadd.f32 1.0, %v3808_v29  ;;  %2473 = vadd.xlane.f32.xlu1 %v2414_v61  ;;  %v2346_v19 = vmul.f32 0.5, %v2314_v30 }
 0x500   : > { %v2344_v9 = vmul.f32 0.5, %v2312_v15  ;;  %v2313_v10 = vadd.f32 1.0, %v3810_v37 }
 0x501   : > { %v2347_v59 = vmul.f32 0.5, %v2315_v55  ;;  %v2378_v14 = vmul.f32 %v2346_v19, %v4919_v43 }
 0x502   : > { %v2376_v31 = vmul.f32 %v2344_v9, %v4923_v16  ;;  %v2345_v50 = vmul.f32 0.5, %v2313_v10  ;;  %2467 = vadd.xlane.f32.xlu0 %v2411_v23  ;;  %v4957_v16 = vld [vmem:[#allocation2] ss:$0 sm:$0xff] }
 0x503   : > { %2469 = vadd.xlane.f32.xlu1 %v2412_v33  ;;  %v2379_v13 = vmul.f32 %v2347_v59, %v4928_v34  ;;  %v2417_v18 = vmul.f32 %v4812_v36, %v2378_v14 }
 0x504   : > { %v2377_v56 = vmul.f32 %v2345_v50, %v2209_v2  ;;  %v2415_v12 = vmul.f32 %v4812_v36, %v2376_v31 }
 0x505   : > { %v2418_v41 = vmul.f32 %v4812_v36, %v2379_v13 }
 0x506   : > { %2475 = vadd.xlane.f32.xlu0 %v2415_v12  ;;  %v2416_v11 = vmul.f32 %v4812_v36, %v2377_v56 }
 0x508   : > { %2477 = vadd.xlane.f32.xlu1 %v2416_v11 }
 0x50a   : > { %2479 = vadd.xlane.f32.xlu0 %v2417_v18 }
 0x50c   : > { %2481 = vadd.xlane.f32.xlu1 %v2418_v41 }
 0x55a   : > { %v2424_v43 = vpop.xlane.xlu1 %2423 }
 0x55b   : > { %v2492_v42 = vadd.f32 %v4957_v16, %v2424_v43  ;;  %v2420_v25 = vpop.xlane.xlu0 %2419 }
 0x55c   : > { %v2490_v32 = vadd.f32 %v4957_v16, %v2420_v25 }
 0x55d   : > { %2525 = vst.msk [vmem:[%s4961_s11 + $0x10] sm:$0xff] %vm2522_vm3, %v2492_v42 }
 0x55e   : > { %2523 = vst.msk [vmem:[%s4961_s11] sm:$0xff] %vm2522_vm3, %v2490_v32  ;;  %v2426_v36 = vpop.xlane.xlu1 %2425 }
 0x55f   : > { %v2493_v27 = vadd.f32 %v4957_v16, %v2426_v36  ;;  %v2422_v28 = vpop.xlane.xlu0 %2421 }
 0x560   : > { %v2491_v34 = vadd.f32 %v4957_v16, %v2422_v28 }
 0x561   : > { %2526 = vst.msk [vmem:[%s4961_s11 + $0x18] sm:$0xff] %vm2522_vm3, %v2493_v27 }
 0x562   : > { %2524 = vst.msk [vmem:[%s4961_s11 + $0x8] sm:$0xff] %vm2522_vm3, %v2491_v34 }
 0x563   : > { %v2432_v44 = vpop.xlane.xlu0 %2431 }
 0x564   : > { %v2496_v40 = vadd.f32 %v4957_v16, %v2432_v44  ;;  %v2434_v8 = vpop.xlane.xlu1 %2433 }
 0x565   : > { %v2497_v57 = vadd.f32 %v4957_v16, %v2434_v8 }
 0x566   : > { %2529 = vst.msk [vmem:[%s4961_s11 + $0x30] sm:$0xff] %vm2522_vm3, %v2496_v40 }
 0x567   : > { %2530 = vst.msk [vmem:[%s4961_s11 + $0x38] sm:$0xff] %vm2522_vm3, %v2497_v57  ;;  %v2428_v2 = vpop.xlane.xlu0 %2427 }
 0x568   : > { %v2494_v45 = vadd.f32 %v4957_v16, %v2428_v2  ;;  %v2430_v47 = vpop.xlane.xlu1 %2429 }
 0x569   : > { %v2495_v24 = vadd.f32 %v4957_v16, %v2430_v47 }
 0x56a   : > { %2527 = vst.msk [vmem:[%s4961_s11 + $0x20] sm:$0xff] %vm2522_vm3, %v2494_v45 }
 0x56b   : > { %2528 = vst.msk [vmem:[%s4961_s11 + $0x28] sm:$0xff] %vm2522_vm3, %v2495_v24  ;;  %v2440_v58 = vpop.xlane.xlu0 %2439 }
 0x56c   : > { %v2500_v21 = vadd.f32 %v4957_v16, %v2440_v58  ;;  %v2442_v7 = vpop.xlane.xlu1 %2441 }
 0x56d   : > { %v2501_v54 = vadd.f32 %v4957_v16, %v2442_v7 }
 0x56e   : > { %2533 = vst.msk [vmem:[%s4961_s11 + $0x50] sm:$0xff] %vm2522_vm3, %v2500_v21 }
 0x56f   : > { %2534 = vst.msk [vmem:[%s4961_s11 + $0x58] sm:$0xff] %vm2522_vm3, %v2501_v54  ;;  %v2436_v26 = vpop.xlane.xlu0 %2435 }
 0x570   : > { %v2498_v62 = vadd.f32 %v4957_v16, %v2436_v26  ;;  %v2438_v0 = vpop.xlane.xlu1 %2437 }
 0x571   : > { %v2499_v46 = vadd.f32 %v4957_v16, %v2438_v0 }
 0x572   : > { %2531 = vst.msk [vmem:[%s4961_s11 + $0x40] sm:$0xff] %vm2522_vm3, %v2498_v62 }
 0x573   : > { %2532 = vst.msk [vmem:[%s4961_s11 + $0x48] sm:$0xff] %vm2522_vm3, %v2499_v46  ;;  %v2448_v35 = vpop.xlane.xlu0 %2447 }
 0x574   : > { %v2504_v48 = vadd.f32 %v4957_v16, %v2448_v35  ;;  %v2450_v60 = vpop.xlane.xlu1 %2449 }
 0x575   : > { %v2505_v1 = vadd.f32 %v4957_v16, %v2450_v60 }
 0x576   : > { %2537 = vst.msk [vmem:[%s4961_s11 + $0x70] sm:$0xff] %vm2522_vm3, %v2504_v48 }
 0x577   : > { %2538 = vst.msk [vmem:[%s4961_s11 + $0x78] sm:$0xff] %vm2522_vm3, %v2505_v1  ;;  %v2444_v53 = vpop.xlane.xlu0 %2443 }
 0x578   : > { %v2502_v20 = vadd.f32 %v4957_v16, %v2444_v53  ;;  %v2446_v3 = vpop.xlane.xlu1 %2445 }
 0x579   : > { %v2503_v38 = vadd.f32 %v4957_v16, %v2446_v3 }
 0x57a   : > { %2535 = vst.msk [vmem:[%s4961_s11 + $0x60] sm:$0xff] %vm2522_vm3, %v2502_v20 }
 0x57b   : > { %2536 = vst.msk [vmem:[%s4961_s11 + $0x68] sm:$0xff] %vm2522_vm3, %v2503_v38  ;;  %v2456_v49 = vpop.xlane.xlu0 %2455 }
 0x57c   : > { %v2508_v5 = vadd.f32 %v4957_v16, %v2456_v49  ;;  %v2458_v17 = vpop.xlane.xlu1 %2457 }
 0x57d   : > { %v2509_v39 = vadd.f32 %v4957_v16, %v2458_v17 }
 0x57e   : > { %2541 = vst.msk [vmem:[%s4961_s11 + $0x90] sm:$0xff] %vm2522_vm3, %v2508_v5 }
 0x57f   : > { %2542 = vst.msk [vmem:[%s4961_s11 + $0x98] sm:$0xff] %vm2522_vm3, %v2509_v39  ;;  %v2452_v63 = vpop.xlane.xlu0 %2451 }
 0x580   : > { %v2506_v6 = vadd.f32 %v4957_v16, %v2452_v63  ;;  %v2454_v52 = vpop.xlane.xlu1 %2453 }
 0x581   : > { %v2507_v22 = vadd.f32 %v4957_v16, %v2454_v52 }
 0x582   : > { %2539 = vst.msk [vmem:[%s4961_s11 + $0x80] sm:$0xff] %vm2522_vm3, %v2506_v6 }
 0x583   : > { %2540 = vst.msk [vmem:[%s4961_s11 + $0x88] sm:$0xff] %vm2522_vm3, %v2507_v22  ;;  %v2464_v4 = vpop.xlane.xlu0 %2463 }
 0x584   : > { %v2512_v51 = vadd.f32 %v4957_v16, %v2464_v4  ;;  %v2466_v30 = vpop.xlane.xlu1 %2465 }
 0x585   : > { %v2513_v61 = vadd.f32 %v4957_v16, %v2466_v30 }
 0x586   : > { %2545 = vst.msk [vmem:[%s4961_s11 + $0xb0] sm:$0xff] %vm2522_vm3, %v2512_v51 }
 0x587   : > { %2546 = vst.msk [vmem:[%s4961_s11 + $0xb8] sm:$0xff] %vm2522_vm3, %v2513_v61  ;;  %v2460_v29 = vpop.xlane.xlu0 %2459 }
 0x588   : > { %v2510_v15 = vadd.f32 %v4957_v16, %v2460_v29  ;;  %v2462_v37 = vpop.xlane.xlu1 %2461 }
 0x589   : > { %v2511_v55 = vadd.f32 %v4957_v16, %v2462_v37 }
 0x58a   : > { %2543 = vst.msk [vmem:[%s4961_s11 + $0xa0] sm:$0xff] %vm2522_vm3, %v2510_v15 }
 0x58b   : > { %2544 = vst.msk [vmem:[%s4961_s11 + $0xa8] sm:$0xff] %vm2522_vm3, %v2511_v55  ;;  %v2472_v19 = vpop.xlane.xlu0 %2471 }
 0x58c   : > { %v2516_v9 = vadd.f32 %v4957_v16, %v2472_v19  ;;  %v2474_v10 = vpop.xlane.xlu1 %2473 }
 0x58d   : > { %v2517_v23 = vadd.f32 %v4957_v16, %v2474_v10 }
 0x58e   : > { %2549 = vst.msk [vmem:[%s4961_s11 + $0xd0] sm:$0xff] %vm2522_vm3, %v2516_v9 }
 0x58f   : > { %2550 = vst.msk [vmem:[%s4961_s11 + $0xd8] sm:$0xff] %vm2522_vm3, %v2517_v23  ;;  %v2468_v33 = vpop.xlane.xlu0 %2467 }
 0x590   : > { %v2514_v31 = vadd.f32 %v4957_v16, %v2468_v33  ;;  %v2470_v59 = vpop.xlane.xlu1 %2469 }
 0x591   : > { %v2515_v50 = vadd.f32 %v4957_v16, %v2470_v59 }
 0x592   : > { %2547 = vst.msk [vmem:[%s4961_s11 + $0xc0] sm:$0xff] %vm2522_vm3, %v2514_v31 }
 0x593   : > { %2548 = vst.msk [vmem:[%s4961_s11 + $0xc8] sm:$0xff] %vm2522_vm3, %v2515_v50  ;;  %v2476_v14 = vpop.xlane.xlu0 %2475 }
 0x594   : > { %v2518_v56 = vadd.f32 %v4957_v16, %v2476_v14 }
 0x595   : > { %v2478_v12 = vpop.xlane.xlu1 %2477 }
 0x596   : > { %2551 = vst.msk [vmem:[%s4961_s11 + $0xe0] sm:$0xff] %vm2522_vm3, %v2518_v56  ;;  %v2519_v13 = vadd.f32 %v4957_v16, %v2478_v12  ;;  %2561 = sbr.rel (!%p3968_p4) target bundleno = 1493 (0x5d5), region = 52 }
 0x597   : > { %v2480_v11 = vpop.xlane.xlu0 %2479 }
 0x598   : > { %2552 = vst.msk [vmem:[%s4961_s11 + $0xe8] sm:$0xff] %vm2522_vm3, %v2519_v13  ;;  %v2520_v18 = vadd.f32 %v4957_v16, %v2480_v11 }
 0x599   : > { %v2482_v41 = vpop.xlane.xlu1 %2481 }
 0x59a   : > { %2553 = vst.msk [vmem:[%s4961_s11 + $0xf0] sm:$0xff] %vm2522_vm3, %v2520_v18  ;;  %v2521_v43 = vadd.f32 %v4957_v16, %v2482_v41 }
 0x59c   : > { %2554 = vst.msk [vmem:[%s4961_s11 + $0xf8] sm:$0xff] %vm2522_vm3, %v2521_v43 }
 0x59d   : > { %s5214_s26 = smov (!%p2564_p8, %s2563_s26), 32 }
 0x59e   : > { %s3010_s17 = sshll.u32 %s5214_s26, 7 }
 0x59f   : > { %p3013_p9 = scmp.eq.s32.totalorder %s3010_s17, 0 }
 0x5a0   : > { %s5070_s18 = sshrl.u32 (!%p3013_p9), %s5214_s26, 5 }
 0x5a1   : > { %2572 = sbr.rel (%p3013_p9) target bundleno = 1493 (0x5d5), region = 56  ;;  %p3014_p10 = scmp.le.s32.totalorder (!%p3013_p9), %s5070_s18, 0 }
 0x5a8   : > { %2850 = sbr.rel (%p3014_p10) target bundleno = 1472 (0x5c0), region = 138  ;;  %s5205_s6 = smov (!%p3014_p10), %s5064_s16 }
 0x5a9   : > { %s5206_s10 = smov (!%p3014_p10), %s4961_s11  ;;  %s5079_s13 = smov (!%p3014_p10), 0  }
 0x5aa   : > { %s5081_s19 = smov (!%p3014_p10), 0  }
 0x5af LB: >> { %v2696_v16 = vld [vmem:[%s3873_s10] sm:$0xff]  ;;  %v2698_v42 = vld [vmem:[%s3873_s10 + $0x8] sm:$0xff]  ;;  %v2700_v25 = vld [vmem:[%s3873_s10 + $0x10] sm:$0xff]  ;;  %s2760_s20 = sadd.s32 1, %s3877_s13  ;;  %s2690_s19 = sadd.s32 1, %s3881_s19   ;;  %s3881_s19 = sphi %s5081_s19, %s2690_s19   ;;  %s3877_s13 = sphi %s5079_s13, %s5209_s13   ;;  %s3873_s10 = sphi %s5206_s10, %s5208_s10   ;;  %s3869_s6 = sphi %s5205_s6, %s5207_s6  }
 0x5b0   : >> { %2697 = vst [vmem:[%s3869_s6] sm:$0xff] %v2696_v16  ;;  %2699 = vst [vmem:[%s3869_s6 + $0x8] sm:$0xff] %v2698_v42  ;;  %v2702_v32 = vld [vmem:[%s3873_s10 + $0x18] sm:$0xff]  ;;  %v2704_v36 = vld [vmem:[%s3873_s10 + $0x20] sm:$0xff]  ;;  %p2761_p11 = scmp.ge.s32.totalorder %s2760_s20, %s5070_s18  ;;  %p2689_p12 = scmp.ge.s32.totalorder %s2690_s19, %s5070_s18 }
 0x5b1   : >> { %2701 = vst [vmem:[%s3869_s6 + $0x10] sm:$0xff] %v2700_v25  ;;  %v2706_v27 = vld [vmem:[%s3873_s10 + $0x28] sm:$0xff]  ;;  %2703 = vst [vmem:[%s3869_s6 + $0x18] sm:$0xff] %v2702_v32  ;;  %v2708_v28 = vld [vmem:[%s3873_s10 + $0x30] sm:$0xff] }
 0x5b2   : >> { %2705 = vst [vmem:[%s3869_s6 + $0x20] sm:$0xff] %v2704_v36  ;;  %2707 = vst [vmem:[%s3869_s6 + $0x28] sm:$0xff] %v2706_v27  ;;  %v2710_v34 = vld [vmem:[%s3873_s10 + $0x38] sm:$0xff]  ;;  %v2712_v44 = vld [vmem:[%s3873_s10 + $0x40] sm:$0xff]  ;;  %s5216_s20 = smov (%p2761_p11, %s2760_s20), 0 }
 0x5b3   : >> { %2709 = vst [vmem:[%s3869_s6 + $0x30] sm:$0xff] %v2708_v28  ;;  %2711 = vst [vmem:[%s3869_s6 + $0x38] sm:$0xff] %v2710_v34  ;;  %v2714_v40 = vld [vmem:[%s3873_s10 + $0x48] sm:$0xff]  ;;  %v2716_v8 = vld [vmem:[%s3873_s10 + $0x50] sm:$0xff]  ;;  %s3015_s21 = sshll.u32 %s5216_s20, 8  ;;  %s5209_s13 = smov %s5216_s20 }
 0x5b4   : >> { %2713 = vst [vmem:[%s3869_s6 + $0x40] sm:$0xff] %v2712_v44  ;;  %v2718_v57 = vld [vmem:[%s3873_s10 + $0x58] sm:$0xff]  ;;  %2715 = vst [vmem:[%s3869_s6 + $0x48] sm:$0xff] %v2714_v40  ;;  %v2720_v2 = vld [vmem:[%s3873_s10 + $0x60] sm:$0xff]  ;;  %s5137_s22 = scalar_lea.vmem %s4961_s11, %s3015_s21 [#allocation3]   ;;  %s2766_s23 = scalar_lea.vmem %s5064_s16, %s3015_s21  }
 0x5b5   : >> { %2717 = vst [vmem:[%s3869_s6 + $0x50] sm:$0xff] %v2716_v8  ;;  %2719 = vst [vmem:[%s3869_s6 + $0x58] sm:$0xff] %v2718_v57  ;;  %v2722_v45 = vld [vmem:[%s3873_s10 + $0x68] sm:$0xff]  ;;  %v2724_v47 = vld [vmem:[%s3873_s10 + $0x70] sm:$0xff] }
 0x5b6   : >> { %2721 = vst [vmem:[%s3869_s6 + $0x60] sm:$0xff] %v2720_v2  ;;  %2723 = vst [vmem:[%s3869_s6 + $0x68] sm:$0xff] %v2722_v45  ;;  %v2726_v24 = vld [vmem:[%s3873_s10 + $0x78] sm:$0xff]  ;;  %v2728_v58 = vld [vmem:[%s3873_s10 + $0x80] sm:$0xff] }
 0x5b7   : >> { %2725 = vst [vmem:[%s3869_s6 + $0x70] sm:$0xff] %v2724_v47  ;;  %v2730_v21 = vld [vmem:[%s3873_s10 + $0x88] sm:$0xff]  ;;  %2727 = vst [vmem:[%s3869_s6 + $0x78] sm:$0xff] %v2726_v24  ;;  %v2732_v7 = vld [vmem:[%s3873_s10 + $0x90] sm:$0xff] }
 0x5b8   : >> { %2729 = vst [vmem:[%s3869_s6 + $0x80] sm:$0xff] %v2728_v58  ;;  %2731 = vst [vmem:[%s3869_s6 + $0x88] sm:$0xff] %v2730_v21  ;;  %v2734_v54 = vld [vmem:[%s3873_s10 + $0x98] sm:$0xff]  ;;  %v2736_v26 = vld [vmem:[%s3873_s10 + $0xa0] sm:$0xff] }
 0x5b9   : >> { %2733 = vst [vmem:[%s3869_s6 + $0x90] sm:$0xff] %v2732_v7  ;;  %2735 = vst [vmem:[%s3869_s6 + $0x98] sm:$0xff] %v2734_v54  ;;  %v2738_v62 = vld [vmem:[%s3873_s10 + $0xa8] sm:$0xff]  ;;  %v2740_v0 = vld [vmem:[%s3873_s10 + $0xb0] sm:$0xff]  ;;  %2692 = sbr.rel (!%p2689_p12) target bundleno = 1455 (0x5af), region = 144 }
 0x5ba   : >> { %2737 = vst [vmem:[%s3869_s6 + $0xa0] sm:$0xff] %v2736_v26  ;;  %v2742_v46 = vld [vmem:[%s3873_s10 + $0xb8] sm:$0xff]  ;;  %2739 = vst [vmem:[%s3869_s6 + $0xa8] sm:$0xff] %v2738_v62  ;;  %v2744_v35 = vld [vmem:[%s3873_s10 + $0xc0] sm:$0xff] }
 0x5bb   : >> { %2741 = vst [vmem:[%s3869_s6 + $0xb0] sm:$0xff] %v2740_v0  ;;  %2743 = vst [vmem:[%s3869_s6 + $0xb8] sm:$0xff] %v2742_v46  ;;  %v2746_v48 = vld [vmem:[%s3873_s10 + $0xc8] sm:$0xff]  ;;  %v2748_v60 = vld [vmem:[%s3873_s10 + $0xd0] sm:$0xff] }
 0x5bc   : >> { %2745 = vst [vmem:[%s3869_s6 + $0xc0] sm:$0xff] %v2744_v35  ;;  %2747 = vst [vmem:[%s3869_s6 + $0xc8] sm:$0xff] %v2746_v48  ;;  %v2750_v1 = vld [vmem:[%s3873_s10 + $0xd8] sm:$0xff]  ;;  %v2752_v53 = vld [vmem:[%s3873_s10 + $0xe0] sm:$0xff] }
 0x5bd   : >> { %2749 = vst [vmem:[%s3869_s6 + $0xd0] sm:$0xff] %v2748_v60  ;;  %v2754_v20 = vld [vmem:[%s3873_s10 + $0xe8] sm:$0xff]  ;;  %2751 = vst [vmem:[%s3869_s6 + $0xd8] sm:$0xff] %v2750_v1  ;;  %v2756_v3 = vld [vmem:[%s3873_s10 + $0xf0] sm:$0xff] }
 0x5be   : >> { %2753 = vst [vmem:[%s3869_s6 + $0xe0] sm:$0xff] %v2752_v53  ;;  %2755 = vst [vmem:[%s3869_s6 + $0xe8] sm:$0xff] %v2754_v20  ;;  %v2758_v38 = vld [vmem:[%s3873_s10 + $0xf8] sm:$0xff]  ;;  %s5208_s10 = smov %s5137_s22 }
 0x5bf   : >> { %2757 = vst [vmem:[%s3869_s6 + $0xf0] sm:$0xff] %v2756_v3  ;;  %2759 = vst [vmem:[%s3869_s6 + $0xf8] sm:$0xff] %v2758_v38  ;;  %s5207_s6 = smov %s2766_s23 }
 0x5c0 PF: > { %s5178_s24 = sand.u32 31, %s5214_s26   ;;  %s3026_s25 = sshll.u32 %s5070_s18, 8 }
 0x5c1   : > { %s2771_s28 = scalar_lea.vmem %s4961_s11, %s3026_s25 [#allocation3]   ;;  %s2773_s30 = scalar_lea.vmem %s5064_s16, %s3026_s25  }
 0x5c2   : > { %p3020_p13 = scmp.le.s32.totalorder %s5178_s24, 0 }
 0x5c3   : > { %s3883_s8 = smov (!%p3020_p13), %s2773_s30   ;;  %s3887_s12 = smov (!%p3020_p13), %s2771_s28  }
 0x5c4   : > { %2864 = sbr.rel (%p3020_p13) target bundleno = 1493 (0x5d5), region = 149  ;;  %s3891_s14 = smov (!%p3020_p13), 0  }
 0x5c5   : > { %s3895_s15 = smov (!%p3020_p13), 0  }
 0x5cb LB: >> { %v2783_v49 = vld [vmem:[%s3889_s12] sm:$0xff]  ;;  %s2785_s26 = sadd.s32 1, %s3893_s14  ;;  %s2777_s15 = sadd.s32 1, %s3897_s15   ;;  %s3897_s15 = sphi %s3895_s15, %s2777_s15   ;;  %s3893_s14 = sphi %s3891_s14, %s3892_s14   ;;  %s3889_s12 = sphi %s3887_s12, %s2790_s12   ;;  %s3885_s8 = sphi %s3883_s8, %s2791_s8  }
 0x5cc   : >> { %2784 = vst [vmem:[%s3885_s8] sm:$0xff] %v2783_v49  ;;  %p2786_p0 = scmp.ge.s32.totalorder %s2785_s26, %s5178_s24  ;;  %p2776_p1 = scmp.ge.s32.totalorder %s2777_s15, %s5178_s24 }
 0x5ce   : >> { %s5218_s26 = smov (%p2786_p0, %s2785_s26), 0  ;;  %2779 = sbr.rel (!%p2776_p1) target bundleno = 1483 (0x5cb), region = 155 }
 0x5cf   : >> { %s3021_s11 = sshll.u32 %s5218_s26, 3  ;;  %s3892_s14 = smov %s5218_s26  }
 0x5d0   : >> { %s2790_s12 = scalar_lea.vmem %s2771_s28, %s3021_s11 [#allocation3]   ;;  %s2791_s8 = scalar_lea.vmem %s2773_s30, %s3021_s11  }
 0x5d5 PF: > { %p16_p2 = scmp.ge.s32.totalorder %s3958_s29, 4   ;;  %s5210_s26 = smov %s3861_s27 }
 0x5d6   : > { %s5211_s27 = smov %s3966_s9  ;;  %s5212_s28 = smov %s3958_s29 }
 0x5d7   :  { %18 = sbr.rel (!%p16_p2) target bundleno = 5 (0x5), region = 166 }

// kernel: tpu_custom_call.1
= control target key start
LH: loop header
LB: loop body
LE: loop exit
PB: predicated region body
PF: predicated region fallthrough
CT: control target
= control target key end

     0   :  { %s5196_s0 = inlined_call_operand.vmem [shape: f32[300,11], index: 0, kind: input, shape index: {}]   ;;  %s5197_s1 = inlined_call_operand.vmem [shape: bf16[11,128], index: 1, kind: input, shape index: {}]   ;;  %s5198_s2 = inlined_call_operand.vmem [shape: f32[1,128], index: 2, kind: input, shape index: {}]   ;;  %s5199_s3 = inlined_call_operand.vmem [shape: bf16[4,128,128], index: 3, kind: input, shape index: {}]   ;;  %s5200_s4 = inlined_call_operand.vmem [shape: f32[4,1,128], index: 4, kind: input, shape index: {}]   ;;  %s5201_s5 = inlined_call_operand.vmem [shape: f32[1,128], index: 5, kind: input, shape index: {}]   ;;  %s5202_s6 = inlined_call_operand.<no memory space> [shape: f32[1,1], index: 6, kind: input, shape index: {}]   ;;  %s5203_s7 = inlined_call_operand.vmem [shape: f32[300,1], index: 7, kind: output, shape index: {}]  }
   0x1   :  { %v12_v0 = vstv %s5202_s6 }
   0x2   :  { %13 = vst [vmem:[#allocation2] sm:$0x1] %v12_v0 }
   0x3   :  { %s3943_s26 = smov 0   ;;  %s3945_s27 = smov 0  }
   0x4   :  { %s3947_s28 = smov 0  }
   0x5 LB: > { %s3956_s6 = sadd.s32 4294967295, %s3865_s28   ;;  %s3958_s29 = sadd.s32 1, %s3865_s28   ;;  %s3865_s28 = sphi %s3947_s28, %s5212_s28   ;;  %s3861_s27 = sphi %s3945_s27, %s5211_s27   ;;  %s3857_s26 = sphi %s3943_s26, %s5210_s26  }
   0x6   : > { %s175_s30 = ssub.s32 %s3865_s28, %s3958_s29  ;;  %s178_s8 = sadd.s32 1, %s3861_s27 }
   0x7   : > { %p176_p0 = scmp.eq.s32.totalorder %s175_s30, 0  ;;  %p188_p1 = scmp.ne.s32.totalorder %s3861_s27, %s3857_s26 }
   0x8   : > { %p189_p2 = scmp.eq.s32.totalorder %s3956_s6, 1  ;;  %p2897_p3 = scmp.ge.s32.totalorder %s3865_s28, 1 }
   0x9   : > { %s3966_s9 = scalar_select %p176_p0, %s3861_s27, %s178_s8  }
   0xa   : > { %p3968_p4 = por %p189_p2, %p188_p1  ;;  %p248_p5 = scmp.lt.s32.totalorder %s3865_s28, 3 }
   0xc   : > { %p249_p6 = pnand %p2897_p3, %p248_p5 }
   0xd   : > { %v3458_v1 = vld [vmem:[%s5197_s1] sm:$0x3f] (!%p249_p6)   ;;  %vm414_vm0 = vcmask (!%p249_p6), 1044480   ;;  %vm415_vm1 = vcmask (!%p249_p6), 1045504   ;;  %s3976_s13 = sshll.u32 (!%p249_p6), %s3956_s6, 5  ;;  %v3899_v2 = vmov (!%p249_p6), 65535  }
   0xe   : > { %252 = sbr.rel (%p249_p6) target bundleno = 1493 (0x5d5), region = 48  ;;  %v416_v3 = vsel (!%p249_p6), %vm414_vm0, 4294967295, %v3899_v2  ;;  %p288_p7 = scmp.lt.s32.totalorder (!%p249_p6), %s3976_s13, 37  ;;  %v3459_v6 = vld [vmem:[%s5199_s3] sm:$0xff] (!%p249_p6)   ;;  %vm365_vm2 = vcmask (!%p249_p6), 89088   ;;  %v3460_v23 = vld [vmem:[%s5199_s3 + $0x8] sm:$0xff] (!%p249_p6)  }
   0xf   : > { %v417_v4 = vsel (!%p249_p6), %vm415_vm1, %v416_v3, 0  ;;  %v3461_v56 = vld [vmem:[%s5199_s3 + $0x10] sm:$0xff] (!%p249_p6)   ;;  %v3462_v57 = vld [vmem:[%s5199_s3 + $0x18] sm:$0xff] (!%p249_p6)   ;;  %v3463_v58 = vld [vmem:[%s5199_s3 + $0x20] sm:$0xff] (!%p249_p6)   ;;  %s280_s30 = sand.u32 (!%p249_p6), 1, %s3857_s26   ;;  %vm2522_vm3 = vcmask (!%p249_p6), 7168  }
  0x10   : > { %v419_v5 = vand.u32 (!%p249_p6), %v3458_v1, %v417_v4  ;;  %v3464_v59 = vld [vmem:[%s5199_s3 + $0x28] sm:$0xff] (!%p249_p6)   ;;  %v3465_v60 = vld [vmem:[%s5199_s3 + $0x30] sm:$0xff] (!%p249_p6)   ;;  %v3466_v61 = vld [vmem:[%s5199_s3 + $0x38] sm:$0xff] (!%p249_p6)   ;;  %s2898_s8 = sshll.u32 (!%p249_p6), %s280_s30, 8 }
  0x11   : > { %v3467_v62 = vld [vmem:[%s5199_s3 + $0x40] sm:$0xff] (!%p249_p6)   ;;  %v3468_v63 = vld [vmem:[%s5199_s3 + $0x48] sm:$0xff] (!%p249_p6)   ;;  %s4961_s11 = scalar_lea.vmem (!%p249_p6), [#allocation3], %s2898_s8  }
  0x12   : > { %3141 = vmatprep.subr.bf16.mxu0 (!%p249_p6), %v419_v5  ;;  %3367 = vmatprep.subr.bf16.mxu1 (!%p249_p6), %v419_v5  ;;  %v4066_v0 = vld [vmem:[%s5198_s2] ss:$0 sm:$0xff] (!%p249_p6) }
  0x13   : > { %3142 = vmatpush3.bf16.msra.mxu0 (!%p249_p6), %v419_v5  ;;  %3368 = vmatpush3.bf16.msra.mxu1 (!%p249_p6), %v419_v5 }
  0x14   : > { %3175 = vmatprep.subr.bf16.mxu1 (!%p249_p6), %v3459_v6  ;;  %3223 = vmatprep.subr.bf16.mxu0 (!%p249_p6), %v3467_v62 }
  0x15   : > { %s289_s14 = scalar_select %p288_p7, %s3976_s13, 37 }
  0x16   : > { %s2563_s26 = ssub.s32 (%p3968_p4), 38, %s3976_s13  ;;  %s3025_s12 = sshll.u32 (%p3968_p4), %s3956_s6, 8 }
  0x17   : > { %s2900_s17 = sshll.u32 %s289_s14, 3  ;;  %p2564_p8 = scmp.lt.s32.totalorder (%p3968_p4), %s2563_s26, 32 }
  0x18   : > { %s3986_s20 = scalar_lea.vmem %s5196_s0, %s2900_s17  ;;  %s5064_s16 = scalar_lea.vmem (%p3968_p4), %s5203_s7, %s3025_s12  }
  0x19   : > { %v303_v7 = vld [vmem:[%s3986_s20] sm:$0xff]  ;;  %v304_v8 = vld [vmem:[%s3986_s20 + $0x8] sm:$0xff]  ;;  %v305_v9 = vld [vmem:[%s3986_s20 + $0x10] sm:$0xff] }
  0x1a   : > { %v335_v10 = vpack.c.bf16 %v304_v8, %v303_v7  ;;  %v306_v11 = vld [vmem:[%s3986_s20 + $0x18] sm:$0xff]  ;;  %v307_v12 = vld [vmem:[%s3986_s20 + $0x20] sm:$0xff]  ;;  %v308_v13 = vld [vmem:[%s3986_s20 + $0x28] sm:$0xff] }
  0x1b   : > { %v336_v14 = vpack.c.bf16 %v306_v11, %v305_v9  ;;  %v337_v15 = vpack.c.bf16 %v308_v13, %v307_v12  ;;  %v319_v16 = vld [vmem:[%s3986_s20 + $0x80] sm:$0xff]  ;;  %v320_v17 = vld [vmem:[%s3986_s20 + $0x88] sm:$0xff]  ;;  %v321_v18 = vld [vmem:[%s3986_s20 + $0x90] sm:$0xff] }
  0x1c   : > { %3143 = vmatprep.mubr.msk.bf16.mxu0 %vm365_vm2, %v335_v10  ;;  %v322_v19 = vld [vmem:[%s3986_s20 + $0x98] sm:$0xff]  ;;  %v309_v20 = vld [vmem:[%s3986_s20 + $0x30] sm:$0xff]  ;;  %v343_v21 = vpack.c.bf16 %v320_v17, %v319_v16  ;;  %v323_v25 = vld [vmem:[%s3986_s20 + $0xa0] sm:$0xff] }
  0x1d   : > { %3144 = vmatmul.mubr.msk.bf16.vlgmr.msra.gmra.mrb[0].mxu0 %vm365_vm2, %v336_v14  ;;  %v344_v22 = vpack.c.bf16 %v322_v19, %v321_v18  ;;  %v310_v24 = vld [vmem:[%s3986_s20 + $0x38] sm:$0xff]  ;;  %v324_v26 = vld [vmem:[%s3986_s20 + $0xa8] sm:$0xff]  ;;  %v311_v27 = vld [vmem:[%s3986_s20 + $0x40] sm:$0xff] }
  0x1e   : > { %3147 = vmatprep.mubr.msk.bf16.mxu0 %vm365_vm2, %v337_v15  ;;  %3159 = vmatprep.mubr.msk.bf16.mxu1 %vm365_vm2, %v343_v21  ;;  %v312_v28 = vld [vmem:[%s3986_s20 + $0x48] sm:$0xff]  ;;  %v345_v29 = vpack.c.bf16 %v324_v26, %v323_v25  ;;  %v338_v30 = vpack.c.bf16 %v310_v24, %v309_v20  ;;  %v325_v31 = vld [vmem:[%s3986_s20 + $0xb0] sm:$0xff]  ;;  %v326_v32 = vld [vmem:[%s3986_s20 + $0xb8] sm:$0xff] }
  0x1f   : > { %3160 = vmatmul.mubr.msk.bf16.vlgmr.msra.gmra.mrb[0].mxu1 %vm365_vm2, %v344_v22  ;;  %v339_v33 = vpack.c.bf16 %v312_v28, %v311_v27  ;;  %v327_v34 = vld [vmem:[%s3986_s20 + $0xc0] sm:$0xff]  ;;  %v328_v35 = vld [vmem:[%s3986_s20 + $0xc8] sm:$0xff]  ;;  %v313_v36 = vld [vmem:[%s3986_s20 + $0x50] sm:$0xff]  ;;  %v346_v38 = vpack.c.bf16 %v326_v32, %v325_v31  ;;  %3224 = vmatpush3.bf16.msra.mxu0 %v3467_v62 }
  0x20   : > { %3163 = vmatprep.mubr.msk.bf16.mxu1 %vm365_vm2, %v345_v29  ;;  %3176 = vmatpush3.bf16.msra.mxu1 %v3459_v6  ;;  %v314_v37 = vld [vmem:[%s3986_s20 + $0x58] sm:$0xff]  ;;  %v315_v39 = vld [vmem:[%s3986_s20 + $0x60] sm:$0xff]  ;;  %v316_v40 = vld [vmem:[%s3986_s20 + $0x68] sm:$0xff]  ;;  %v347_v41 = vpack.c.bf16 %v328_v35, %v327_v34 }
  0x21   : > { %3177 = vmatprep.subr.bf16.mxu1 %v3460_v23  ;;  %v329_v42 = vld [vmem:[%s3986_s20 + $0xd0] sm:$0xff]  ;;  %v330_v43 = vld [vmem:[%s3986_s20 + $0xd8] sm:$0xff]  ;;  %v331_v44 = vld [vmem:[%s3986_s20 + $0xe0] sm:$0xff]  ;;  %v340_v46 = vpack.c.bf16 %v314_v37, %v313_v36  ;;  %v341_v47 = vpack.c.bf16 %v316_v40, %v315_v39  ;;  %3225 = vmatprep.subr.bf16.mxu0 %v3468_v63 }
  0x22   : > { %v332_v45 = vld [vmem:[%s3986_s20 + $0xe8] sm:$0xff]  ;;  %v317_v48 = vld [vmem:[%s3986_s20 + $0x70] sm:$0xff]  ;;  %v318_v49 = vld [vmem:[%s3986_s20 + $0x78] sm:$0xff]  ;;  %v348_v50 = vpack.c.bf16 %v330_v43, %v329_v42 }
  0x23   : > { %v349_v51 = vpack.c.bf16 %v332_v45, %v331_v44  ;;  %v333_v52 = vld [vmem:[%s3986_s20 + $0xf0] sm:$0xff]  ;;  %v334_v53 = vld [vmem:[%s3986_s20 + $0xf8] sm:$0xff]  ;;  %v342_v54 = vpack.c.bf16 %v318_v49, %v317_v48  ;;  %3226 = vmatpush3.bf16.msra.mxu0 %v3468_v63 }
  0x24   : > { %3178 = vmatpush3.bf16.msra.mxu1 %v3460_v23  ;;  %v350_v55 = vpack.c.bf16 %v334_v53, %v333_v52 }
  0x25   : > { %3148 = vmatmul.mubr.msk.bf16.gmra.mrb[4].mxu0 %vm365_vm2, %v338_v30  ;;  %3179 = vmatprep.subr.bf16.mxu1 %v3461_v56 }
  0x26   : > { %3151 = vmatprep.mubr.msk.bf16.mxu0 %vm365_vm2, %v339_v33 }
  0x27   : > { %3164 = vmatmul.mubr.msk.bf16.gmra.mrb[4].mxu1 %vm365_vm2, %v346_v38 }
  0x28   : > { %3167 = vmatprep.mubr.msk.bf16.mxu1 %vm365_vm2, %v347_v41  ;;  %3180 = vmatpush3.bf16.msra.mxu1 %v3461_v56 }
  0x29   : > { %3181 = vmatprep.subr.bf16.mxu1 %v3462_v57 }
  0x2c   : > { %3182 = vmatpush3.bf16.msra.mxu1 %v3462_v57 }
  0x2d   : > { %3152 = vmatmul.mubr.msk.bf16.gmra.mrb[8].mxu0 %vm365_vm2, %v340_v46  ;;  %3183 = vmatprep.subr.bf16.mxu1 %v3463_v58 }
  0x2e   : > { %3155 = vmatprep.mubr.msk.bf16.mxu0 %vm365_vm2, %v341_v47 }
  0x2f   : > { %3168 = vmatmul.mubr.msk.bf16.gmra.mrb[8].mxu1 %vm365_vm2, %v348_v50 }
  0x30   : > { %3171 = vmatprep.mubr.msk.bf16.mxu1 %vm365_vm2, %v349_v51  ;;  %3184 = vmatpush3.bf16.msra.mxu1 %v3463_v58 }
  0x31   : > { %3185 = vmatprep.subr.bf16.mxu1 %v3464_v59 }
  0x34   : > { %3186 = vmatpush3.bf16.msra.mxu1 %v3464_v59 }
  0x35   : > { %3156 = vmatmul.mubr.msk.bf16.gmra.mrb[12].mxu0 %vm365_vm2, %v342_v54  ;;  %3187 = vmatprep.subr.bf16.mxu1 %v3465_v60 }
  0x37   : > { %3172 = vmatmul.mubr.msk.bf16.gmra.mrb[12].mxu1 %vm365_vm2, %v350_v55 }
  0x38   : > { %3188 = vmatpush3.bf16.msra.mxu1 %v3465_v60 }
  0x39   : > { %3189 = vmatprep.subr.bf16.mxu1 %v3466_v61 }
  0x3c   : > { %3190 = vmatpush3.bf16.msra.mxu1 %v3466_v61 }
  0xf0   : > { %v3145_v1 = vpop.f32.mrb[0].mxu0 }
  0xf1   : > { %v4069_v2 = vadd.f32 %v3145_v1, %v4066_v0  ;;  %v455_v3 = vpop.f32.mrb[1].mxu0 }
  0xf2   : > { %v4072_v4 = vadd.f32 %v4066_v0, %v455_v3  ;;  %v3146_v5 = vpop.f32.mrb[2].mxu0  ;;  %v3161_v9 = vpop.f32.mrb[0].mxu1 }
  0xf3   : > { %v584_v6 = vmul.f32 0.5, %v4069_v2  ;;  %v4076_v7 = vadd.f32 %v3146_v5, %v4066_v0  ;;  %v458_v8 = vpop.f32.mrb[3].mxu0  ;;  %v4083_v12 = vadd.f32 %v3161_v9, %v4066_v0  ;;  %v519_v13 = vpop.f32.mrb[1].mxu1 }
  0xf4   : > { %v582_v10 = vmul.f32 0.5, %v4072_v4  ;;  %v4080_v11 = vadd.f32 %v4066_v0, %v458_v8  ;;  %v4087_v15 = vadd.f32 %v4066_v0, %v519_v13  ;;  %v3162_v16 = vpop.f32.mrb[2].mxu1 }
  0xf5   : > { %3491 = vtanh.f32 %v584_v6  ;;  %v585_v14 = vmul.f32 0.5, %v4076_v7  ;;  %v600_v18 = vmul.f32 0.5, %v4083_v12  ;;  %v4092_v19 = vadd.f32 %v3162_v16, %v4066_v0  ;;  %v522_v20 = vpop.f32.mrb[3].mxu1 }
  0xf6   : > { %3493 = vtanh.f32 %v582_v10  ;;  %v583_v17 = vmul.f32 0.5, %v4080_v11  ;;  %v598_v21 = vmul.f32 0.5, %v4087_v15  ;;  %v4096_v22 = vadd.f32 %v4066_v0, %v522_v20 }
  0xf7   : > { %3495 = vtanh.f32 %v585_v14  ;;  %v601_v24 = vmul.f32 0.5, %v4092_v19 }
  0xf8   : > { %3497 = vtanh.f32 %v583_v17  ;;  %v3149_v23 = vpop.f32.mrb[4].mxu0  ;;  %v599_v27 = vmul.f32 0.5, %v4096_v22 }
  0xf9   : > { %v4100_v25 = vadd.f32 %v3149_v23, %v4066_v0  ;;  %v471_v26 = vpop.f32.mrb[5].mxu0  ;;  %3499 = vtanh.f32 %v600_v18 }
  0xfa   : > { %v4104_v28 = vadd.f32 %v4066_v0, %v471_v26  ;;  %v3150_v29 = vpop.f32.mrb[6].mxu0  ;;  %3501 = vtanh.f32 %v598_v21  ;;  %v3165_v33 = vpop.f32.mrb[4].mxu1 }
  0xfb   : > { %v588_v30 = vmul.f32 0.5, %v4100_v25  ;;  %v4108_v31 = vadd.f32 %v3150_v29, %v4066_v0  ;;  %v474_v32 = vpop.f32.mrb[7].mxu0  ;;  %3503 = vtanh.f32 %v601_v24  ;;  %v4115_v36 = vadd.f32 %v3165_v33, %v4066_v0  ;;  %v535_v37 = vpop.f32.mrb[5].mxu1 }
  0xfc   : > { %v586_v34 = vmul.f32 0.5, %v4104_v28  ;;  %v4112_v35 = vadd.f32 %v4066_v0, %v474_v32  ;;  %3505 = vtanh.f32 %v599_v27  ;;  %v4119_v39 = vadd.f32 %v4066_v0, %v535_v37  ;;  %v3166_v40 = vpop.f32.mrb[6].mxu1 }
  0xfd   : > { %3507 = vtanh.f32 %v588_v30  ;;  %v589_v38 = vmul.f32 0.5, %v4108_v31  ;;  %v604_v42 = vmul.f32 0.5, %v4115_v36  ;;  %v4124_v43 = vadd.f32 %v3166_v40, %v4066_v0  ;;  %v538_v44 = vpop.f32.mrb[7].mxu1 }
  0xfe   : > { %3509 = vtanh.f32 %v586_v34  ;;  %v587_v41 = vmul.f32 0.5, %v4112_v35  ;;  %v602_v46 = vmul.f32 0.5, %v4119_v39  ;;  %v4128_v47 = vadd.f32 %v4066_v0, %v538_v44 }
  0xff   : > { %v3492_v45 = vpop.eup %3491  ;;  %3511 = vtanh.f32 %v589_v38  ;;  %v4131_v51 = vmul.f32 0.5, %v4124_v43 }
 0x100   : > { %v3494_v48 = vpop.eup %3493  ;;  %v648_v49 = vadd.f32 1.0, %v3492_v45  ;;  %3513 = vtanh.f32 %v587_v41  ;;  %v3153_v50 = vpop.f32.mrb[8].mxu0  ;;  %v4137_v56 = vmul.f32 0.5, %v4128_v47 }
 0x101   : > { %v3496_v52 = vpop.eup %3495  ;;  %v646_v53 = vadd.f32 1.0, %v3494_v48  ;;  %v4134_v54 = vadd.f32 %v3153_v50, %v4066_v0  ;;  %v487_v55 = vpop.f32.mrb[9].mxu0  ;;  %3515 = vtanh.f32 %v604_v42 }
 0x102   : > { %v3498_v57 = vpop.eup %3497  ;;  %v680_v58 = vmul.f32 0.5, %v648_v49  ;;  %v649_v59 = vadd.f32 1.0, %v3496_v52  ;;  %v4140_v60 = vadd.f32 %v4066_v0, %v487_v55  ;;  %v3154_v61 = vpop.f32.mrb[10].mxu0  ;;  %3517 = vtanh.f32 %v602_v46 }
 0x103   : > { %v3500_v62 = vpop.eup %3499  ;;  %v678_v63 = vmul.f32 0.5, %v646_v53  ;;  %v647_v1 = vadd.f32 1.0, %v3498_v57  ;;  %v592_v3 = vmul.f32 0.5, %v4134_v54  ;;  %v4144_v5 = vadd.f32 %v3154_v61, %v4066_v0  ;;  %v490_v6 = vpop.f32.mrb[11].mxu0 }
 0x104   : > { %v4146_v8 = vpop.f32.mrb[8].mxu1  ;;  %v3502_v9 = vpop.eup %3501  ;;  %v4149_v10 = vmul.f32 %v680_v58, %v4069_v2  ;;  %v681_v13 = vmul.f32 0.5, %v649_v59  ;;  %v664_v14 = vadd.f32 1.0, %v3500_v62  ;;  %v590_v16 = vmul.f32 0.5, %v4140_v60 }
 0x105   : > { %v4152_v17 = vpop.f32.mrb[9].mxu1  ;;  %v3504_v18 = vpop.eup %3503  ;;  %v4155_v20 = vmul.f32 %v678_v63, %v4072_v4  ;;  %v679_v21 = vmul.f32 0.5, %v647_v1  ;;  %v662_v23 = vadd.f32 1.0, %v3502_v9  ;;  %3519 = vtanh.f32 %v592_v3 }
 0x106   : > { %v4157_v24 = vpop.f32.mrb[10].mxu1  ;;  %v3506_v26 = vpop.eup %3505  ;;  %v4160_v27 = vmul.f32 %v681_v13, %v4076_v7  ;;  %v696_v2 = vmul.f32 0.5, %v664_v14  ;;  %v665_v29 = vadd.f32 1.0, %v3504_v18  ;;  %3521 = vtanh.f32 %v590_v16 }
 0x107   : > { %v4162_v30 = vpop.f32.mrb[11].mxu1  ;;  %v3508_v32 = vpop.eup %3507  ;;  %v4165_v33 = vmul.f32 %v679_v21, %v4080_v11  ;;  %v694_v4 = vmul.f32 0.5, %v662_v23  ;;  %v663_v34 = vadd.f32 1.0, %v3506_v26  ;;  %v593_v37 = vmul.f32 0.5, %v4144_v5 }
 0x108   : > { %v3510_v38 = vpop.eup %3509  ;;  %v743_v40 = vpack.c.bf16 %v4160_v27, %v4149_v10  ;;  %v652_v41 = vadd.f32 1.0, %v3508_v32  ;;  %v4171_v7 = vmul.f32 %v696_v2, %v4083_v12  ;;  %v697_v42 = vmul.f32 0.5, %v665_v29  ;;  %v3157_v44 = vpop.f32.mrb[12].mxu0 }
 0x109   : > { %v3512_v45 = vpop.eup %3511  ;;  %v650_v46 = vadd.f32 1.0, %v3510_v38  ;;  %v4174_v48 = vmul.f32 %v694_v4, %v4087_v15  ;;  %v695_v11 = vmul.f32 0.5, %v663_v34  ;;  %3523 = vtanh.f32 %v593_v37  ;;  %v503_v49 = vpop.f32.mrb[13].mxu0 }
 0x10a   : > { %v3514_v50 = vpop.eup %3513  ;;  %v684_v52 = vmul.f32 0.5, %v652_v41  ;;  %v653_v53 = vadd.f32 1.0, %v3512_v45  ;;  %v4177_v55 = vmul.f32 %v697_v42, %v4092_v19  ;;  %v4180_v57 = vadd.f32 %v4066_v0, %v490_v6  ;;  %v3158_v12 = vpop.f32.mrb[14].mxu0 }
 0x10b   : > { %v3516_v58 = vpop.eup %3515  ;;  %v682_v59 = vmul.f32 0.5, %v650_v46  ;;  %v651_v61 = vadd.f32 1.0, %v3514_v50  ;;  %v4183_v62 = vmul.f32 %v695_v11, %v4096_v22  ;;  %3525 = vtanh.f32 %v4131_v51  ;;  %v506_v15 = vpop.f32.mrb[15].mxu0 }
 0x10c   : > { %v3173_v63 = vpop.f32.mrb[12].mxu1  ;;  %v3518_v1 = vpop.eup %3517  ;;  %v4187_v3 = vmul.f32 %v684_v52, %v4100_v25  ;;  %v685_v19 = vmul.f32 0.5, %v653_v53  ;;  %v591_v9 = vmul.f32 0.5, %v4180_v57  ;;  %v668_v6 = vadd.f32 1.0, %v3516_v58 }
 0x10d   : > { %v4190_v13 = vpop.f32.mrb[13].mxu1  ;;  %v714_v14 = vmul.f32 %v682_v59, %v4104_v28  ;;  %v683_v16 = vmul.f32 0.5, %v651_v61  ;;  %v666_v18 = vadd.f32 1.0, %v3518_v1  ;;  %3527 = vtanh.f32 %v4137_v56 }
 0x10e   : > { %v3174_v22 = vpop.f32.mrb[14].mxu1  ;;  %v4195_v51 = vmul.f32 %v685_v19, %v4108_v31  ;;  %3529 = vtanh.f32 %v591_v9  ;;  %v700_v21 = vmul.f32 0.5, %v668_v6  ;;  %v4198_v25 = vadd.f32 %v3157_v44, %v4066_v0 }
 0x10f   : > { %v570_v23 = vpop.f32.mrb[15].mxu1  ;;  %v3520_v26 = vpop.eup %3519  ;;  %v715_v2 = vmul.f32 %v683_v16, %v4112_v35  ;;  %v698_v29 = vmul.f32 0.5, %v666_v18  ;;  %v4202_v28 = vadd.f32 %v4066_v0, %v503_v49  ;;  %v4205_v32 = vadd.f32 %v3158_v12, %v4066_v0 }
 0x110   : > { %v3522_v56 = vpop.eup %3521  ;;  %v656_v4 = vadd.f32 1.0, %v3520_v26  ;;  %v4208_v31 = vmul.f32 %v700_v21, %v4115_v36  ;;  %v596_v34 = vmul.f32 0.5, %v4198_v25  ;;  %v4212_v37 = vadd.f32 %v4066_v0, %v506_v15 }
 0x111   : > { %v654_v38 = vadd.f32 1.0, %v3522_v56  ;;  %v4215_v35 = vmul.f32 %v698_v29, %v4119_v39  ;;  %v594_v41 = vmul.f32 0.5, %v4202_v28  ;;  %v597_v42 = vmul.f32 0.5, %v4205_v32 }
 0x112   : > { %v688_v44 = vmul.f32 0.5, %v656_v4  ;;  %3531 = vtanh.f32 %v596_v34  ;;  %v595_v45 = vmul.f32 0.5, %v4212_v37  ;;  %v742_v36 = vpack.c.bf16 %v4165_v33, %v4155_v20 }
 0x113   : > { %v3524_v46 = vpop.eup %3523  ;;  %v686_v11 = vmul.f32 0.5, %v654_v38  ;;  %3533 = vtanh.f32 %v594_v41  ;;  %v4224_v49 = vadd.f32 %v4146_v8, %v4066_v0  ;;  %v4228_v39 = vadd.f32 %v4066_v0, %v4152_v17 }
 0x114   : > { %v4231_v50 = vmul.f32 %v688_v44, %v4134_v54  ;;  %v657_v52 = vadd.f32 1.0, %v3524_v46  ;;  %3535 = vtanh.f32 %v597_v42  ;;  %3191 = vmatprep.mubr.bf16.mxu1 %v742_v36  ;;  %v4235_v20 = vadd.f32 %v4157_v24, %v4066_v0 }
 0x115   : > { %v3526_v33 = vpop.eup %3525  ;;  %v718_v53 = vmul.f32 %v686_v11, %v4140_v60  ;;  %3537 = vtanh.f32 %v595_v45  ;;  %v608_v8 = vmul.f32 0.5, %v4224_v49  ;;  %3192 = vmatmul.mubr.bf16.vlgmr.msra.gmra.mrb[16].mxu1 %v743_v40  ;;  %v606_v54 = vmul.f32 0.5, %v4228_v39 }
 0x116   : > { %v689_v17 = vmul.f32 0.5, %v657_v52  ;;  %v669_v12 = vadd.f32 1.0, %v3526_v33  ;;  %v609_v58 = vmul.f32 0.5, %v4235_v20  ;;  %v4246_v24 = vadd.f32 %v4066_v0, %v4162_v30 }
 0x117   : > { %v3528_v59 = vpop.eup %3527  ;;  %3539 = vtanh.f32 %v608_v8  ;;  %v744_v60 = vpack.c.bf16 %v715_v2, %v714_v14  ;;  %v4249_v61 = vadd.f32 %v3173_v63, %v4066_v0  ;;  %v745_v10 = vpack.c.bf16 %v4195_v51, %v4187_v3 }
 0x118   : > { %v3530_v27 = vpop.eup %3529  ;;  %v721_v40 = vmul.f32 %v689_v17, %v4144_v5  ;;  %v701_v15 = vmul.f32 0.5, %v669_v12  ;;  %v667_v1 = vadd.f32 1.0, %v3528_v59  ;;  %3541 = vtanh.f32 %v606_v54 }
 0x119   : > { %v655_v19 = vadd.f32 1.0, %v3530_v27  ;;  %3543 = vtanh.f32 %v609_v58  ;;  %v607_v30 = vmul.f32 0.5, %v4246_v24  ;;  %3195 = vmatprep.mubr.bf16.mxu1 %v744_v60  ;;  %v612_v9 = vmul.f32 0.5, %v4249_v61 }
 0x11a   : > { %v4257_v6 = vmul.f32 %v701_v15, %v4124_v43  ;;  %v699_v63 = vmul.f32 0.5, %v667_v1  ;;  %v4261_v3 = vadd.f32 %v4066_v0, %v4190_v13  ;;  %v4264_v5 = vadd.f32 %v3174_v22, %v4066_v0 }
 0x11b   : > { %v687_v14 = vmul.f32 0.5, %v655_v19  ;;  %3545 = vtanh.f32 %v607_v30  ;;  %v4267_v16 = vadd.f32 %v4066_v0, %v570_v23  ;;  %v747_v18 = vpack.c.bf16 %v721_v40, %v4231_v50 }
 0x11c   : > { %v3532_v51 = vpop.eup %3531  ;;  %v4271_v21 = vmul.f32 %v699_v63, %v4128_v47  ;;  %3547 = vtanh.f32 %v612_v9  ;;  %v610_v43 = vmul.f32 0.5, %v4261_v3  ;;  %v613_v13 = vmul.f32 0.5, %v4264_v5 }
 0x11d   : > { %v3534_v26 = vpop.eup %3533  ;;  %v719_v22 = vmul.f32 %v687_v14, %v4180_v57  ;;  %v660_v2 = vadd.f32 1.0, %v3532_v51  ;;  %3196 = vmatmul.mubr.bf16.gmra.mrb[20].mxu1 %v745_v10  ;;  %v611_v29 = vmul.f32 0.5, %v4267_v16  ;;  %v750_v0 = vpack.c.bf16 %v4183_v62, %v4174_v48 }
 0x11e   : > { %v3536_v23 = vpop.eup %3535  ;;  %v658_v56 = vadd.f32 1.0, %v3534_v26  ;;  %3549 = vtanh.f32 %v610_v43  ;;  %v751_v47 = vpack.c.bf16 %v4177_v55, %v4171_v7  ;;  %v752_v4 = vpack.c.bf16 %v4271_v21, %v4215_v35 }
 0x11f   : > { %v3538_v34 = vpop.eup %3537  ;;  %v692_v38 = vmul.f32 0.5, %v660_v2  ;;  %v661_v41 = vadd.f32 1.0, %v3536_v23  ;;  %3551 = vtanh.f32 %v613_v13  ;;  %v746_v57 = vpack.c.bf16 %v719_v22, %v718_v53  ;;  %v3474_v22 = vld [vmem:[%s5199_s3 + $0x78] sm:$0xff]   ;;  %v3475_v2 = vld [vmem:[%s5199_s3 + $0x80] sm:$0xff]  }
 0x120   : > { %v690_v42 = vmul.f32 0.5, %v658_v56  ;;  %v659_v44 = vadd.f32 1.0, %v3538_v34  ;;  %3553 = vtanh.f32 %v611_v29  ;;  %v753_v48 = vpack.c.bf16 %v4257_v6, %v4208_v31  ;;  %v3476_v29 = vld [vmem:[%s5199_s3 + $0x88] sm:$0xff]   ;;  %3271 = vmatprep.subr.bf16.mxu1 %v3475_v2  ;;  %v3478_v23 = vld [vmem:[%s5199_s3 + $0x98] sm:$0xff]   ;;  %v3479_v56 = vld [vmem:[%s5199_s3 + $0xa0] sm:$0xff]  }
 0x121   : > { %v3540_v62 = vpop.eup %3539  ;;  %v693_v45 = vmul.f32 0.5, %v661_v41  ;;  %3199 = vmatprep.mubr.bf16.mxu1 %v746_v57  ;;  %v724_v35 = vmul.f32 %v692_v38, %v4198_v25  ;;  %3272 = vmatpush3.bf16.msra.mxu1 %v3475_v2 }
 0x122   : > { %v3542_v36 = vpop.eup %3541  ;;  %v691_v46 = vmul.f32 0.5, %v659_v44  ;;  %v672_v7 = vadd.f32 1.0, %v3540_v62  ;;  %v722_v52 = vmul.f32 %v690_v42, %v4202_v28  ;;  %3273 = vmatprep.subr.bf16.mxu1 %v3476_v29 }
 0x123   : > { %v3544_v55 = vpop.eup %3543  ;;  %v725_v11 = vmul.f32 %v693_v45, %v4205_v32  ;;  %v670_v50 = vadd.f32 1.0, %v3542_v36 }
 0x124   : > { %v723_v33 = vmul.f32 %v691_v46, %v4212_v37  ;;  %v704_v53 = vmul.f32 0.5, %v672_v7  ;;  %v673_v8 = vadd.f32 1.0, %v3544_v55 }
 0x125   : > { %v3546_v54 = vpop.eup %3545  ;;  %v702_v31 = vmul.f32 0.5, %v670_v50  ;;  %3200 = vmatmul.mubr.bf16.gmra.mrb[24].mxu1 %v747_v18  ;;  %v749_v17 = vpack.c.bf16 %v725_v11, %v724_v35 }
 0x126   : > { %v3548_v12 = vpop.eup %3547  ;;  %v736_v58 = vmul.f32 %v704_v53, %v4224_v49  ;;  %v705_v59 = vmul.f32 0.5, %v673_v8  ;;  %v671_v60 = vadd.f32 1.0, %v3546_v54  ;;  %v748_v10 = vpack.c.bf16 %v723_v33, %v722_v52  ;;  %3274 = vmatpush3.bf16.msra.mxu1 %v3476_v29 }
 0x127   : > { %v676_v25 = vadd.f32 1.0, %v3548_v12  ;;  %v734_v32 = vmul.f32 %v702_v31, %v4228_v39 }
 0x128   : > { %v3550_v27 = vpop.eup %3549  ;;  %v737_v28 = vmul.f32 %v705_v59, %v4235_v20  ;;  %v703_v40 = vmul.f32 0.5, %v671_v60  ;;  %3203 = vmatprep.mubr.bf16.mxu1 %v748_v10 }
 0x129   : > { %v3552_v37 = vpop.eup %3551  ;;  %v708_v15 = vmul.f32 0.5, %v676_v25  ;;  %v674_v1 = vadd.f32 1.0, %v3550_v27 }
 0x12a   : > { %v3554_v19 = vpop.eup %3553  ;;  %v735_v30 = vmul.f32 %v703_v40, %v4246_v24  ;;  %v677_v9 = vadd.f32 1.0, %v3552_v37  ;;  %v755_v6 = vpack.c.bf16 %v737_v28, %v736_v58  ;;  %v3469_v24 = vld [vmem:[%s5199_s3 + $0x50] sm:$0xff]  }
 0x12b   : > { %v706_v49 = vmul.f32 0.5, %v674_v1  ;;  %v675_v63 = vadd.f32 1.0, %v3554_v19  ;;  %v740_v14 = vmul.f32 %v708_v15, %v4249_v61  ;;  %3227 = vmatprep.subr.bf16.mxu0 %v3469_v24  ;;  %v3470_v61 = vld [vmem:[%s5199_s3 + $0x58] sm:$0xff]  }
 0x12c   : > { %v709_v18 = vmul.f32 0.5, %v677_v9  ;;  %v754_v51 = vpack.c.bf16 %v735_v30, %v734_v32  ;;  %3228 = vmatpush3.bf16.msra.mxu0 %v3469_v24 }
 0x12d   : > { %v738_v39 = vmul.f32 %v706_v49, %v4261_v3  ;;  %v707_v21 = vmul.f32 0.5, %v675_v63  ;;  %3204 = vmatmul.mubr.bf16.gmra.mrb[28].mxu1 %v749_v17  ;;  %3229 = vmatprep.subr.bf16.mxu0 %v3470_v61  ;;  %v3471_v3 = vld [vmem:[%s5199_s3 + $0x60] sm:$0xff]  }
 0x12e   : > { %v741_v20 = vmul.f32 %v709_v18, %v4264_v5  ;;  %3207 = vmatprep.mubr.bf16.mxu1 %v750_v0  ;;  %v3472_v5 = vld [vmem:[%s5199_s3 + $0x68] sm:$0xff]   ;;  %v3477_v0 = vld [vmem:[%s5199_s3 + $0x90] sm:$0xff]  }
 0x12f   : > { %v739_v43 = vmul.f32 %v707_v21, %v4267_v16  ;;  %v3473_v16 = vld [vmem:[%s5199_s3 + $0x70] sm:$0xff]   ;;  %3275 = vmatprep.subr.bf16.mxu1 %v3477_v0 }
 0x130   : > { %v757_v13 = vpack.c.bf16 %v741_v20, %v740_v14  ;;  %3230 = vmatpush3.bf16.msra.mxu0 %v3470_v61  ;;  %3276 = vmatpush3.bf16.msra.mxu1 %v3477_v0 }
 0x131   : > { %v756_v26 = vpack.c.bf16 %v739_v43, %v738_v39  ;;  %3231 = vmatprep.subr.bf16.mxu0 %v3471_v3  ;;  %3277 = vmatprep.subr.bf16.mxu1 %v3478_v23 }
 0x134   : > { %3232 = vmatpush3.bf16.msra.mxu0 %v3471_v3  ;;  %3278 = vmatpush3.bf16.msra.mxu1 %v3478_v23 }
 0x135   : > { %3208 = vmatmul.mubr.bf16.gmra.mrb[32].mxu1 %v751_v47  ;;  %3233 = vmatprep.subr.bf16.mxu0 %v3472_v5  ;;  %v4333_v47 = vld [vmem:[%s5200_s4] ss:$0 sm:$0xff] }
 0x136   : > { %3211 = vmatprep.mubr.bf16.mxu1 %v752_v4  ;;  %3279 = vmatprep.subr.bf16.mxu1 %v3479_v56 }
 0x138   : > { %3234 = vmatpush3.bf16.msra.mxu0 %v3472_v5  ;;  %3280 = vmatpush3.bf16.msra.mxu1 %v3479_v56 }
 0x139   : > { %3235 = vmatprep.subr.bf16.mxu0 %v3473_v16 }
 0x13c   : > { %3236 = vmatpush3.bf16.msra.mxu0 %v3473_v16 }
 0x13d   : > { %3212 = vmatmul.mubr.bf16.gmra.mrb[36].mxu1 %v753_v48  ;;  %3237 = vmatprep.subr.bf16.mxu0 %v3474_v22 }
 0x13e   : > { %3215 = vmatprep.mubr.bf16.mxu1 %v754_v51 }
 0x140   : > { %3238 = vmatpush3.bf16.msra.mxu0 %v3474_v22 }
 0x145   : > { %3216 = vmatmul.mubr.bf16.gmra.mrb[40].mxu1 %v755_v6 }
 0x146   : > { %3219 = vmatprep.mubr.bf16.mxu1 %v756_v26 }
 0x14d   : > { %3220 = vmatmul.mubr.bf16.gmra.mrb[44].mxu1 %v757_v13 }
 0x1e8   : > { %v3193_v4 = vpop.f32.mrb[16].mxu1 }
 0x1e9   : > { %v872_v34 = vadd.f32 %v3193_v4, %v4333_v47  ;;  %v863_v38 = vpop.f32.mrb[17].mxu1 }
 0x1ea   : > { %v864_v41 = vadd.f32 %v4333_v47, %v863_v38  ;;  %v3194_v57 = vpop.f32.mrb[18].mxu1 }
 0x1eb   : > { %v992_v42 = vmul.f32 0.5, %v872_v34  ;;  %v875_v44 = vadd.f32 %v3194_v57, %v4333_v47  ;;  %v866_v48 = vpop.f32.mrb[19].mxu1 }
 0x1ec   : > { %v990_v62 = vmul.f32 0.5, %v864_v41  ;;  %v867_v45 = vadd.f32 %v4333_v47, %v866_v48 }
 0x1ed   : > { %3555 = vtanh.f32 %v992_v42  ;;  %v993_v36 = vmul.f32 0.5, %v875_v44 }
 0x1ee   : > { %3557 = vtanh.f32 %v990_v62  ;;  %v991_v46 = vmul.f32 0.5, %v867_v45 }
 0x1ef   : > { %3559 = vtanh.f32 %v993_v36 }
 0x1f0   : > { %3561 = vtanh.f32 %v991_v46  ;;  %v3197_v7 = vpop.f32.mrb[20].mxu1 }
 0x1f1   : > { %v4340_v55 = vadd.f32 %v3197_v7, %v4333_v47  ;;  %v879_v35 = vpop.f32.mrb[21].mxu1 }
 0x1f2   : > { %v4343_v11 = vadd.f32 %v4333_v47, %v879_v35  ;;  %v3198_v50 = vpop.f32.mrb[22].mxu1 }
 0x1f3   : > { %v996_v52 = vmul.f32 0.5, %v4340_v55  ;;  %v4347_v33 = vadd.f32 %v3198_v50, %v4333_v47  ;;  %v882_v53 = vpop.f32.mrb[23].mxu1 }
 0x1f4   : > { %v994_v8 = vmul.f32 0.5, %v4343_v11  ;;  %v4351_v54 = vadd.f32 %v4333_v47, %v882_v53 }
 0x1f5   : > { %3563 = vtanh.f32 %v996_v52  ;;  %v997_v31 = vmul.f32 0.5, %v4347_v33 }
 0x1f6   : > { %3565 = vtanh.f32 %v994_v8  ;;  %v995_v17 = vmul.f32 0.5, %v4351_v54 }
 0x1f7   : > { %v3556_v12 = vpop.eup %3555  ;;  %3567 = vtanh.f32 %v997_v31 }
 0x1f8   : > { %v3558_v58 = vpop.eup %3557  ;;  %v1056_v59 = vadd.f32 1.0, %v3556_v12  ;;  %3569 = vtanh.f32 %v995_v17  ;;  %v3201_v60 = vpop.f32.mrb[24].mxu1 }
 0x1f9   : > { %v3560_v10 = vpop.eup %3559  ;;  %v1054_v25 = vadd.f32 1.0, %v3558_v58  ;;  %v4356_v27 = vadd.f32 %v3201_v60, %v4333_v47  ;;  %v895_v32 = vpop.f32.mrb[25].mxu1 }
 0x1fa   : > { %v3562_v28 = vpop.eup %3561  ;;  %v1088_v40 = vmul.f32 0.5, %v1056_v59  ;;  %v1057_v37 = vadd.f32 1.0, %v3560_v10  ;;  %v4359_v15 = vadd.f32 %v4333_v47, %v895_v32  ;;  %v3202_v1 = vpop.f32.mrb[26].mxu1 }
 0x1fb   : > { %v1086_v19 = vmul.f32 0.5, %v1054_v25  ;;  %v1055_v30 = vadd.f32 1.0, %v3562_v28  ;;  %v1000_v9 = vmul.f32 0.5, %v4356_v27  ;;  %v4363_v6 = vadd.f32 %v3202_v1, %v4333_v47  ;;  %v898_v49 = vpop.f32.mrb[27].mxu1 }
 0x1fc   : > { %v1089_v63 = vmul.f32 0.5, %v1057_v37  ;;  %v998_v14 = vmul.f32 0.5, %v4359_v15  ;;  %v4367_v18 = vadd.f32 %v4333_v47, %v898_v49  ;;  %v1120_v21 = vmul.f32 %v1088_v40, %v872_v34 }
 0x1fd   : > { %v1087_v51 = vmul.f32 0.5, %v1055_v30  ;;  %3571 = vtanh.f32 %v1000_v9  ;;  %v1001_v39 = vmul.f32 0.5, %v4363_v6  ;;  %v1118_v26 = vmul.f32 %v1086_v19, %v864_v41 }
 0x1fe   : > { %v1121_v20 = vmul.f32 %v1089_v63, %v875_v44  ;;  %3573 = vtanh.f32 %v998_v14  ;;  %v999_v43 = vmul.f32 0.5, %v4367_v18 }
 0x1ff   : > { %v3564_v13 = vpop.eup %3563  ;;  %v1119_v24 = vmul.f32 %v1087_v51, %v867_v45  ;;  %3575 = vtanh.f32 %v1001_v39 }
 0x200   : > { %v3566_v61 = vpop.eup %3565  ;;  %v1151_v3 = vpack.c.bf16 %v1121_v20, %v1120_v21  ;;  %v1060_v5 = vadd.f32 1.0, %v3564_v13  ;;  %3577 = vtanh.f32 %v999_v43  ;;  %v3205_v16 = vpop.f32.mrb[28].mxu1 }
 0x201   : > { %v3568_v22 = vpop.eup %3567  ;;  %v1058_v2 = vadd.f32 1.0, %v3566_v61  ;;  %v4372_v29 = vadd.f32 %v3205_v16, %v4333_v47  ;;  %v911_v0 = vpop.f32.mrb[29].mxu1  ;;  %v1150_v23 = vpack.c.bf16 %v1119_v24, %v1118_v26 }
 0x202   : > { %v3570_v56 = vpop.eup %3569  ;;  %v1092_v4 = vmul.f32 0.5, %v1060_v5  ;;  %v1061_v34 = vadd.f32 1.0, %v3568_v22  ;;  %v4375_v38 = vadd.f32 %v4333_v47, %v911_v0  ;;  %v3206_v41 = vpop.f32.mrb[30].mxu1 }
 0x203   : > { %v1090_v57 = vmul.f32 0.5, %v1058_v2  ;;  %v1059_v42 = vadd.f32 1.0, %v3570_v56  ;;  %v1004_v44 = vmul.f32 0.5, %v4372_v29  ;;  %v4379_v48 = vadd.f32 %v3206_v41, %v4333_v47  ;;  %v914_v62 = vpop.f32.mrb[31].mxu1  ;;  %3239 = vmatprep.mubr.bf16.mxu0 %v1150_v23 }
 0x204   : > { %v1093_v45 = vmul.f32 0.5, %v1061_v34  ;;  %v1002_v36 = vmul.f32 0.5, %v4375_v38  ;;  %v4383_v46 = vadd.f32 %v4333_v47, %v914_v62  ;;  %3240 = vmatmul.mubr.bf16.vlgmr.msra.gmra.mrb[16].mxu0 %v1151_v3  ;;  %v1124_v50 = vmul.f32 %v1092_v4, %v4340_v55 }
 0x205   : > { %v1091_v7 = vmul.f32 0.5, %v1059_v42  ;;  %3579 = vtanh.f32 %v1004_v44  ;;  %v1005_v35 = vmul.f32 0.5, %v4379_v48  ;;  %v1122_v31 = vmul.f32 %v1090_v57, %v4343_v11 }
 0x206   : > { %v1125_v52 = vmul.f32 %v1093_v45, %v4347_v33  ;;  %3581 = vtanh.f32 %v1002_v36  ;;  %v1003_v53 = vmul.f32 0.5, %v4383_v46 }
 0x207   : > { %v3572_v8 = vpop.eup %3571  ;;  %v1123_v17 = vmul.f32 %v1091_v7, %v4351_v54  ;;  %3583 = vtanh.f32 %v1005_v35 }
 0x208   : > { %v3574_v12 = vpop.eup %3573  ;;  %v1064_v58 = vadd.f32 1.0, %v3572_v8  ;;  %3585 = vtanh.f32 %v1003_v53  ;;  %v3209_v59 = vpop.f32.mrb[32].mxu1  ;;  %v1153_v60 = vpack.c.bf16 %v1125_v52, %v1124_v50 }
 0x209   : > { %v3576_v10 = vpop.eup %3575  ;;  %v1062_v25 = vadd.f32 1.0, %v3574_v12  ;;  %v4392_v55 = vadd.f32 %v3209_v59, %v4333_v47  ;;  %v927_v33 = vpop.f32.mrb[33].mxu1  ;;  %v1152_v32 = vpack.c.bf16 %v1123_v17, %v1122_v31 }
 0x20a   : > { %v3578_v28 = vpop.eup %3577  ;;  %v1096_v40 = vmul.f32 0.5, %v1064_v58  ;;  %v1065_v37 = vadd.f32 1.0, %v3576_v10  ;;  %v4395_v11 = vadd.f32 %v4333_v47, %v927_v33  ;;  %v3210_v54 = vpop.f32.mrb[34].mxu1 }
 0x20b   : > { %v1094_v1 = vmul.f32 0.5, %v1062_v25  ;;  %v1063_v19 = vadd.f32 1.0, %v3578_v28  ;;  %v1008_v30 = vmul.f32 0.5, %v4392_v55  ;;  %v4399_v9 = vadd.f32 %v3210_v54, %v4333_v47  ;;  %v930_v49 = vpop.f32.mrb[35].mxu1  ;;  %3243 = vmatprep.mubr.bf16.mxu0 %v1152_v32 }
 0x20c   : > { %v1097_v63 = vmul.f32 0.5, %v1065_v37  ;;  %v1006_v14 = vmul.f32 0.5, %v4395_v11  ;;  %v4403_v51 = vadd.f32 %v4333_v47, %v930_v49  ;;  %3244 = vmatmul.mubr.bf16.gmra.mrb[20].mxu0 %v1153_v60  ;;  %v1128_v20 = vmul.f32 %v1096_v40, %v4356_v27 }
 0x20d   : > { %v1095_v39 = vmul.f32 0.5, %v1063_v19  ;;  %3587 = vtanh.f32 %v1008_v30  ;;  %v1009_v21 = vmul.f32 0.5, %v4399_v9  ;;  %v1126_v24 = vmul.f32 %v1094_v1, %v4359_v15 }
 0x20e   : > { %v1129_v43 = vmul.f32 %v1097_v63, %v4363_v6  ;;  %3589 = vtanh.f32 %v1006_v14  ;;  %v1007_v13 = vmul.f32 0.5, %v4403_v51 }
 0x20f   : > { %v3580_v26 = vpop.eup %3579  ;;  %v1127_v61 = vmul.f32 %v1095_v39, %v4367_v18  ;;  %3591 = vtanh.f32 %v1009_v21 }
 0x210   : > { %v3582_v3 = vpop.eup %3581  ;;  %v1068_v5 = vadd.f32 1.0, %v3580_v26  ;;  %3593 = vtanh.f32 %v1007_v13  ;;  %v3213_v16 = vpop.f32.mrb[36].mxu1  ;;  %v1155_v22 = vpack.c.bf16 %v1129_v43, %v1128_v20 }
 0x211   : > { %v3584_v2 = vpop.eup %3583  ;;  %v1066_v0 = vadd.f32 1.0, %v3582_v3  ;;  %v4412_v27 = vadd.f32 %v3213_v16, %v4333_v47  ;;  %v943_v6 = vpop.f32.mrb[37].mxu1  ;;  %v1154_v23 = vpack.c.bf16 %v1127_v61, %v1126_v24 }
 0x212   : > { %v3586_v56 = vpop.eup %3585  ;;  %v1100_v4 = vmul.f32 0.5, %v1068_v5  ;;  %v1069_v34 = vadd.f32 1.0, %v3584_v2  ;;  %v4415_v15 = vadd.f32 %v4333_v47, %v943_v6  ;;  %v3214_v18 = vpop.f32.mrb[38].mxu1 }
 0x213   : > { %v1098_v41 = vmul.f32 0.5, %v1066_v0  ;;  %v1067_v57 = vadd.f32 1.0, %v3586_v56  ;;  %v1012_v42 = vmul.f32 0.5, %v4412_v27  ;;  %v4419_v44 = vadd.f32 %v3214_v18, %v4333_v47  ;;  %v946_v62 = vpop.f32.mrb[39].mxu1  ;;  %3247 = vmatprep.mubr.bf16.mxu0 %v1154_v23 }
 0x214   : > { %v1101_v45 = vmul.f32 0.5, %v1069_v34  ;;  %v1010_v36 = vmul.f32 0.5, %v4415_v15  ;;  %v4423_v7 = vadd.f32 %v4333_v47, %v946_v62  ;;  %3248 = vmatmul.mubr.bf16.gmra.mrb[24].mxu0 %v1155_v22  ;;  %v1132_v52 = vmul.f32 %v1100_v4, %v4372_v29 }
 0x215   : > { %v1099_v35 = vmul.f32 0.5, %v1067_v57  ;;  %3595 = vtanh.f32 %v1012_v42  ;;  %v1013_v50 = vmul.f32 0.5, %v4419_v44  ;;  %v1130_v17 = vmul.f32 %v1098_v41, %v4375_v38 }
 0x216   : > { %v1133_v53 = vmul.f32 %v1101_v45, %v4379_v48  ;;  %3597 = vtanh.f32 %v1010_v36  ;;  %v1011_v8 = vmul.f32 0.5, %v4423_v7 }
 0x217   : > { %v3588_v31 = vpop.eup %3587  ;;  %v1131_v12 = vmul.f32 %v1099_v35, %v4383_v46  ;;  %3599 = vtanh.f32 %v1013_v50 }
 0x218   : > { %v3590_v58 = vpop.eup %3589  ;;  %v1072_v59 = vadd.f32 1.0, %v3588_v31  ;;  %3601 = vtanh.f32 %v1011_v8  ;;  %v3217_v60 = vpop.f32.mrb[40].mxu1  ;;  %v1157_v10 = vpack.c.bf16 %v1133_v53, %v1132_v52 }
 0x219   : > { %v3592_v25 = vpop.eup %3591  ;;  %v1070_v33 = vadd.f32 1.0, %v3590_v58  ;;  %v4432_v29 = vadd.f32 %v3217_v60, %v4333_v47  ;;  %v959_v48 = vpop.f32.mrb[41].mxu1  ;;  %v1156_v32 = vpack.c.bf16 %v1131_v12, %v1130_v17 }
 0x21a   : > { %v3594_v28 = vpop.eup %3593  ;;  %v1104_v40 = vmul.f32 0.5, %v1072_v59  ;;  %v1073_v37 = vadd.f32 1.0, %v3592_v25  ;;  %v4435_v38 = vadd.f32 %v4333_v47, %v959_v48  ;;  %v3218_v46 = vpop.f32.mrb[42].mxu1 }
 0x21b   : > { %v1102_v54 = vmul.f32 0.5, %v1070_v33  ;;  %v1071_v1 = vadd.f32 1.0, %v3594_v28  ;;  %v1016_v19 = vmul.f32 0.5, %v4432_v29  ;;  %v4439_v30 = vadd.f32 %v3218_v46, %v4333_v47  ;;  %v962_v49 = vpop.f32.mrb[43].mxu1  ;;  %3251 = vmatprep.mubr.bf16.mxu0 %v1156_v32 }
 0x21c   : > { %v1105_v63 = vmul.f32 0.5, %v1073_v37  ;;  %v1014_v14 = vmul.f32 0.5, %v4435_v38  ;;  %v4443_v39 = vadd.f32 %v4333_v47, %v962_v49  ;;  %3252 = vmatmul.mubr.bf16.gmra.mrb[28].mxu0 %v1157_v10  ;;  %v1136_v43 = vmul.f32 %v1104_v40, %v4392_v55 }
 0x21d   : > { %v1103_v21 = vmul.f32 0.5, %v1071_v1  ;;  %3603 = vtanh.f32 %v1016_v19  ;;  %v1017_v20 = vmul.f32 0.5, %v4439_v30  ;;  %v1134_v61 = vmul.f32 %v1102_v54, %v4395_v11 }
 0x21e   : > { %v1137_v13 = vmul.f32 %v1105_v63, %v4399_v9  ;;  %3605 = vtanh.f32 %v1014_v14  ;;  %v1015_v26 = vmul.f32 0.5, %v4443_v39 }
 0x21f   : > { %v3596_v24 = vpop.eup %3595  ;;  %v1135_v3 = vmul.f32 %v1103_v21, %v4403_v51  ;;  %3607 = vtanh.f32 %v1017_v20 }
 0x220   : > { %v3598_v5 = vpop.eup %3597  ;;  %v1076_v16 = vadd.f32 1.0, %v3596_v24  ;;  %3609 = vtanh.f32 %v1015_v26  ;;  %v3221_v22 = vpop.f32.mrb[44].mxu1  ;;  %v1159_v2 = vpack.c.bf16 %v1137_v13, %v1136_v43 }
 0x221   : > { %v3600_v0 = vpop.eup %3599  ;;  %v1074_v6 = vadd.f32 1.0, %v3598_v5  ;;  %v4452_v55 = vadd.f32 %v3221_v22, %v4333_v47  ;;  %v975_v9 = vpop.f32.mrb[45].mxu1  ;;  %v1158_v23 = vpack.c.bf16 %v1135_v3, %v1134_v61 }
 0x222   : > { %v3602_v56 = vpop.eup %3601  ;;  %v1108_v4 = vmul.f32 0.5, %v1076_v16  ;;  %v1077_v34 = vadd.f32 1.0, %v3600_v0  ;;  %v976_v11 = vadd.f32 %v4333_v47, %v975_v9  ;;  %v3222_v18 = vpop.f32.mrb[46].mxu1  ;;  %v3481_v0 = vld [vmem:[%s5199_s3 + $0xb0] sm:$0xff]   ;;  %v3484_v9 = vld [vmem:[%s5199_s3 + $0xc8] sm:$0xff]  }
 0x223   : > { %v1106_v51 = vmul.f32 0.5, %v1074_v6  ;;  %v1075_v41 = vadd.f32 1.0, %v3602_v56  ;;  %v1020_v57 = vmul.f32 0.5, %v4452_v55  ;;  %v987_v42 = vadd.f32 %v3222_v18, %v4333_v47  ;;  %v978_v62 = vpop.f32.mrb[47].mxu1  ;;  %3255 = vmatprep.mubr.bf16.mxu0 %v1158_v23  ;;  %v3482_v6 = vld [vmem:[%s5199_s3 + $0xb8] sm:$0xff]   ;;  %v3485_v23 = vld [vmem:[%s5199_s3 + $0xd0] sm:$0xff]  }
 0x224   : > { %v1109_v45 = vmul.f32 0.5, %v1077_v34  ;;  %v1018_v36 = vmul.f32 0.5, %v976_v11  ;;  %v979_v35 = vadd.f32 %v4333_v47, %v978_v62  ;;  %3256 = vmatmul.mubr.bf16.gmra.mrb[32].mxu0 %v1159_v2  ;;  %v1140_v53 = vmul.f32 %v1108_v4, %v4412_v27  ;;  %v3480_v2 = vld [vmem:[%s5199_s3 + $0xa8] sm:$0xff]   ;;  %v3486_v56 = vld [vmem:[%s5199_s3 + $0xd8] sm:$0xff]   ;;  %v3487_v4 = vld [vmem:[%s5199_s3 + $0xe0] sm:$0xff]  }
 0x225   : > { %v1107_v50 = vmul.f32 0.5, %v1075_v41  ;;  %3611 = vtanh.f32 %v1020_v57  ;;  %v1021_v52 = vmul.f32 0.5, %v987_v42  ;;  %v1138_v12 = vmul.f32 %v1106_v51, %v4415_v15  ;;  %3281 = vmatprep.subr.bf16.mxu1 %v3480_v2  ;;  %v4494_v34 = vld [vmem:[%s5200_s4 + $0x1] ss:$0 sm:$0xff] }
 0x226   : > { %v1141_v8 = vmul.f32 %v1109_v45, %v4419_v44  ;;  %3613 = vtanh.f32 %v1018_v36  ;;  %v1019_v31 = vmul.f32 0.5, %v979_v35  ;;  %3282 = vmatpush3.bf16.msra.mxu1 %v3480_v2 }
 0x227   : > { %v3604_v17 = vpop.eup %3603  ;;  %v1139_v58 = vmul.f32 %v1107_v50, %v4423_v7  ;;  %3615 = vtanh.f32 %v1021_v52  ;;  %3283 = vmatprep.subr.bf16.mxu1 %v3481_v0 }
 0x228   : > { %v3606_v59 = vpop.eup %3605  ;;  %v1080_v60 = vadd.f32 1.0, %v3604_v17  ;;  %3617 = vtanh.f32 %v1019_v31  ;;  %v1161_v47 = vpack.c.bf16 %v1141_v8, %v1140_v53 }
 0x229   : > { %v3608_v10 = vpop.eup %3607  ;;  %v1078_v25 = vadd.f32 1.0, %v3606_v59  ;;  %v1160_v33 = vpack.c.bf16 %v1139_v58, %v1138_v12 }
 0x22a   : > { %v3610_v48 = vpop.eup %3609  ;;  %v1112_v32 = vmul.f32 0.5, %v1080_v60  ;;  %v1081_v27 = vadd.f32 1.0, %v3608_v10  ;;  %3284 = vmatpush3.bf16.msra.mxu1 %v3481_v0 }
 0x22b   : > { %v1110_v28 = vmul.f32 0.5, %v1078_v25  ;;  %v1079_v44 = vadd.f32 1.0, %v3610_v48  ;;  %3259 = vmatprep.mubr.bf16.mxu0 %v1160_v33  ;;  %3285 = vmatprep.subr.bf16.mxu1 %v3482_v6 }
 0x22c   : > { %v1113_v40 = vmul.f32 0.5, %v1081_v27  ;;  %3260 = vmatmul.mubr.bf16.gmra.mrb[36].mxu0 %v1161_v47  ;;  %v1144_v15 = vmul.f32 %v1112_v32, %v4432_v29 }
 0x22d   : > { %v1111_v37 = vmul.f32 0.5, %v1079_v44  ;;  %v1142_v54 = vmul.f32 %v1110_v28, %v4435_v38 }
 0x22e   : > { %v1145_v7 = vmul.f32 %v1113_v40, %v4439_v30  ;;  %3286 = vmatpush3.bf16.msra.mxu1 %v3482_v6 }
 0x22f   : > { %v3612_v46 = vpop.eup %3611  ;;  %v1143_v1 = vmul.f32 %v1111_v37, %v4443_v39 }
 0x230   : > { %v3614_v19 = vpop.eup %3613  ;;  %v1084_v49 = vadd.f32 1.0, %v3612_v46  ;;  %v1163_v63 = vpack.c.bf16 %v1145_v7, %v1144_v15 }
 0x231   : > { %v3616_v14 = vpop.eup %3615  ;;  %v1082_v21 = vadd.f32 1.0, %v3614_v19  ;;  %v1162_v20 = vpack.c.bf16 %v1143_v1, %v1142_v54 }
 0x232   : > { %v3618_v43 = vpop.eup %3617  ;;  %v1116_v13 = vmul.f32 0.5, %v1084_v49  ;;  %v1085_v26 = vadd.f32 1.0, %v3616_v14 }
 0x233   : > { %v1114_v24 = vmul.f32 0.5, %v1082_v21  ;;  %v1083_v61 = vadd.f32 1.0, %v3618_v43  ;;  %3263 = vmatprep.mubr.bf16.mxu0 %v1162_v20 }
 0x234   : > { %v1117_v29 = vmul.f32 0.5, %v1085_v26  ;;  %3264 = vmatmul.mubr.bf16.gmra.mrb[40].mxu0 %v1163_v63  ;;  %v1148_v3 = vmul.f32 %v1116_v13, %v4452_v55  ;;  %v3483_v55 = vld [vmem:[%s5199_s3 + $0xc0] sm:$0xff]  }
 0x235   : > { %v1115_v30 = vmul.f32 0.5, %v1083_v61  ;;  %v1146_v5 = vmul.f32 %v1114_v24, %v976_v11  ;;  %3319 = vmatprep.subr.bf16.mxu0 %v3483_v55 }
 0x236   : > { %v1149_v38 = vmul.f32 %v1117_v29, %v987_v42  ;;  %3320 = vmatpush3.bf16.msra.mxu0 %v3483_v55 }
 0x237   : > { %v1147_v39 = vmul.f32 %v1115_v30, %v979_v35  ;;  %3321 = vmatprep.subr.bf16.mxu0 %v3484_v9 }
 0x238   : > { %v1165_v16 = vpack.c.bf16 %v1149_v38, %v1148_v3 }
 0x239   : > { %v1164_v22 = vpack.c.bf16 %v1147_v39, %v1146_v5 }
 0x23a   : > { %3322 = vmatpush3.bf16.msra.mxu0 %v3484_v9 }
 0x23b   : > { %3267 = vmatprep.mubr.bf16.mxu0 %v1164_v22  ;;  %3323 = vmatprep.subr.bf16.mxu0 %v3485_v23 }
 0x23c   : > { %3268 = vmatmul.mubr.bf16.gmra.mrb[44].mxu0 %v1165_v16 }
 0x23e   : > { %3324 = vmatpush3.bf16.msra.mxu0 %v3485_v23 }
 0x23f   : > { %3325 = vmatprep.subr.bf16.mxu0 %v3486_v56 }
 0x242   : > { %3326 = vmatpush3.bf16.msra.mxu0 %v3486_v56 }
 0x243   : > { %3327 = vmatprep.subr.bf16.mxu0 %v3487_v4 }
 0x246   : > { %3328 = vmatpush3.bf16.msra.mxu0 %v3487_v4 }
 0x2d7   : > { %v3241_v11 = vpop.f32.mrb[16].mxu0 }
 0x2d8   : > { %v1282_v18 = vadd.f32 %v3241_v11, %v4494_v34  ;;  %v1273_v51 = vpop.f32.mrb[17].mxu0 }
 0x2d9   : > { %v1274_v41 = vadd.f32 %v4494_v34, %v1273_v51  ;;  %v3242_v57 = vpop.f32.mrb[18].mxu0 }
 0x2da   : > { %v1402_v42 = vmul.f32 0.5, %v1282_v18  ;;  %v1285_v62 = vadd.f32 %v3242_v57, %v4494_v34  ;;  %v1276_v45 = vpop.f32.mrb[19].mxu0 }
 0x2db   : > { %v1400_v36 = vmul.f32 0.5, %v1274_v41  ;;  %v1277_v35 = vadd.f32 %v4494_v34, %v1276_v45 }
 0x2dc   : > { %3619 = vtanh.f32 %v1402_v42  ;;  %v1403_v50 = vmul.f32 0.5, %v1285_v62 }
 0x2dd   : > { %3621 = vtanh.f32 %v1400_v36  ;;  %v1401_v52 = vmul.f32 0.5, %v1277_v35 }
 0x2de   : > { %3623 = vtanh.f32 %v1403_v50 }
 0x2df   : > { %3625 = vtanh.f32 %v1401_v52  ;;  %v3245_v53 = vpop.f32.mrb[20].mxu0 }
 0x2e0   : > { %v4501_v8 = vadd.f32 %v3245_v53, %v4494_v34  ;;  %v1289_v31 = vpop.f32.mrb[21].mxu0 }
 0x2e1   : > { %v4504_v17 = vadd.f32 %v4494_v34, %v1289_v31  ;;  %v3246_v12 = vpop.f32.mrb[22].mxu0 }
 0x2e2   : > { %v1406_v58 = vmul.f32 0.5, %v4501_v8  ;;  %v4508_v59 = vadd.f32 %v3246_v12, %v4494_v34  ;;  %v1292_v60 = vpop.f32.mrb[23].mxu0 }
 0x2e3   : > { %v1404_v47 = vmul.f32 0.5, %v4504_v17  ;;  %v4512_v10 = vadd.f32 %v4494_v34, %v1292_v60 }
 0x2e4   : > { %3627 = vtanh.f32 %v1406_v58  ;;  %v1407_v25 = vmul.f32 0.5, %v4508_v59 }
 0x2e5   : > { %3629 = vtanh.f32 %v1404_v47  ;;  %v1405_v33 = vmul.f32 0.5, %v4512_v10 }
 0x2e6   : > { %v3620_v48 = vpop.eup %3619  ;;  %3631 = vtanh.f32 %v1407_v25 }
 0x2e7   : > { %v3622_v32 = vpop.eup %3621  ;;  %v1466_v27 = vadd.f32 1.0, %v3620_v48  ;;  %3633 = vtanh.f32 %v1405_v33  ;;  %v3249_v28 = vpop.f32.mrb[24].mxu0 }
 0x2e8   : > { %v3624_v44 = vpop.eup %3623  ;;  %v1464_v40 = vadd.f32 1.0, %v3622_v32  ;;  %v4517_v37 = vadd.f32 %v3249_v28, %v4494_v34  ;;  %v1305_v15 = vpop.f32.mrb[25].mxu0 }
 0x2e9   : > { %v3626_v7 = vpop.eup %3625  ;;  %v1498_v46 = vmul.f32 0.5, %v1466_v27  ;;  %v1467_v54 = vadd.f32 1.0, %v3624_v44  ;;  %v4520_v1 = vadd.f32 %v4494_v34, %v1305_v15  ;;  %v3250_v19 = vpop.f32.mrb[26].mxu0 }
 0x2ea   : > { %v1496_v49 = vmul.f32 0.5, %v1464_v40  ;;  %v1465_v63 = vadd.f32 1.0, %v3626_v7  ;;  %v1410_v14 = vmul.f32 0.5, %v4517_v37  ;;  %v4524_v21 = vadd.f32 %v3250_v19, %v4494_v34  ;;  %v1308_v20 = vpop.f32.mrb[27].mxu0 }
 0x2eb   : > { %v1499_v43 = vmul.f32 0.5, %v1467_v54  ;;  %v1408_v13 = vmul.f32 0.5, %v4520_v1  ;;  %v4528_v26 = vadd.f32 %v4494_v34, %v1308_v20  ;;  %v1530_v29 = vmul.f32 %v1498_v46, %v1282_v18 }
 0x2ec   : > { %v1497_v24 = vmul.f32 0.5, %v1465_v63  ;;  %3635 = vtanh.f32 %v1410_v14  ;;  %v1411_v61 = vmul.f32 0.5, %v4524_v21  ;;  %v1528_v5 = vmul.f32 %v1496_v49, %v1274_v41 }
 0x2ed   : > { %v1531_v30 = vmul.f32 %v1499_v43, %v1285_v62  ;;  %3637 = vtanh.f32 %v1408_v13  ;;  %v1409_v3 = vmul.f32 0.5, %v4528_v26 }
 0x2ee   : > { %v3628_v38 = vpop.eup %3627  ;;  %v1529_v39 = vmul.f32 %v1497_v24, %v1277_v35  ;;  %3639 = vtanh.f32 %v1411_v61 }
 0x2ef   : > { %v3630_v16 = vpop.eup %3629  ;;  %v1561_v22 = vpack.c.bf16 %v1531_v30, %v1530_v29  ;;  %v1470_v2 = vadd.f32 1.0, %v3628_v38  ;;  %3641 = vtanh.f32 %v1409_v3  ;;  %v3253_v0 = vpop.f32.mrb[28].mxu0 }
 0x2f0   : > { %v3632_v6 = vpop.eup %3631  ;;  %v1468_v55 = vadd.f32 1.0, %v3630_v16  ;;  %v4533_v9 = vadd.f32 %v3253_v0, %v4494_v34  ;;  %v1321_v23 = vpop.f32.mrb[29].mxu0  ;;  %v1560_v56 = vpack.c.bf16 %v1529_v39, %v1528_v5 }
 0x2f1   : > { %v3634_v4 = vpop.eup %3633  ;;  %v1502_v11 = vmul.f32 0.5, %v1470_v2  ;;  %v1471_v18 = vadd.f32 1.0, %v3632_v6  ;;  %v4536_v51 = vadd.f32 %v4494_v34, %v1321_v23  ;;  %v3254_v41 = vpop.f32.mrb[30].mxu0 }
 0x2f2   : > { %v1500_v57 = vmul.f32 0.5, %v1468_v55  ;;  %v1469_v42 = vadd.f32 1.0, %v3634_v4  ;;  %v1414_v62 = vmul.f32 0.5, %v4533_v9  ;;  %v4540_v45 = vadd.f32 %v3254_v41, %v4494_v34  ;;  %v1324_v36 = vpop.f32.mrb[31].mxu0  ;;  %3287 = vmatprep.mubr.bf16.mxu1 %v1560_v56 }
 0x2f3   : > { %v1503_v35 = vmul.f32 0.5, %v1471_v18  ;;  %v1412_v50 = vmul.f32 0.5, %v4536_v51  ;;  %v4544_v52 = vadd.f32 %v4494_v34, %v1324_v36  ;;  %3288 = vmatmul.mubr.bf16.vlgmr.msra.gmra.mrb[48].mxu1 %v1561_v22  ;;  %v1534_v12 = vmul.f32 %v1502_v11, %v4501_v8 }
 0x2f4   : > { %v1501_v53 = vmul.f32 0.5, %v1469_v42  ;;  %3643 = vtanh.f32 %v1414_v62  ;;  %v1415_v31 = vmul.f32 0.5, %v4540_v45  ;;  %v1532_v25 = vmul.f32 %v1500_v57, %v4504_v17 }
 0x2f5   : > { %v1535_v58 = vmul.f32 %v1503_v35, %v4508_v59  ;;  %3645 = vtanh.f32 %v1412_v50  ;;  %v1413_v60 = vmul.f32 0.5, %v4544_v52 }
 0x2f6   : > { %v3636_v47 = vpop.eup %3635  ;;  %v1533_v33 = vmul.f32 %v1501_v53, %v4512_v10  ;;  %3647 = vtanh.f32 %v1415_v31 }
 0x2f7   : > { %v3638_v48 = vpop.eup %3637  ;;  %v1474_v32 = vadd.f32 1.0, %v3636_v47  ;;  %3649 = vtanh.f32 %v1413_v60  ;;  %v3257_v27 = vpop.f32.mrb[32].mxu0  ;;  %v1563_v28 = vpack.c.bf16 %v1535_v58, %v1534_v12 }
 0x2f8   : > { %v3640_v44 = vpop.eup %3639  ;;  %v1472_v40 = vadd.f32 1.0, %v3638_v48  ;;  %v4553_v8 = vadd.f32 %v3257_v27, %v4494_v34  ;;  %v1337_v59 = vpop.f32.mrb[33].mxu0  ;;  %v1562_v15 = vpack.c.bf16 %v1533_v33, %v1532_v25 }
 0x2f9   : > { %v3642_v7 = vpop.eup %3641  ;;  %v1506_v46 = vmul.f32 0.5, %v1474_v32  ;;  %v1475_v54 = vadd.f32 1.0, %v3640_v44  ;;  %v4556_v17 = vadd.f32 %v4494_v34, %v1337_v59  ;;  %v3258_v10 = vpop.f32.mrb[34].mxu0 }
 0x2fa   : > { %v1504_v19 = vmul.f32 0.5, %v1472_v40  ;;  %v1473_v49 = vadd.f32 1.0, %v3642_v7  ;;  %v1418_v63 = vmul.f32 0.5, %v4553_v8  ;;  %v4560_v14 = vadd.f32 %v3258_v10, %v4494_v34  ;;  %v1340_v20 = vpop.f32.mrb[35].mxu0  ;;  %3291 = vmatprep.mubr.bf16.mxu1 %v1562_v15 }
 0x2fb   : > { %v1507_v43 = vmul.f32 0.5, %v1475_v54  ;;  %v1416_v13 = vmul.f32 0.5, %v4556_v17  ;;  %v4564_v24 = vadd.f32 %v4494_v34, %v1340_v20  ;;  %3292 = vmatmul.mubr.bf16.gmra.mrb[52].mxu1 %v1563_v28  ;;  %v1538_v30 = vmul.f32 %v1506_v46, %v4517_v37 }
 0x2fc   : > { %v1505_v61 = vmul.f32 0.5, %v1473_v49  ;;  %3651 = vtanh.f32 %v1418_v63  ;;  %v1419_v29 = vmul.f32 0.5, %v4560_v14  ;;  %v1536_v39 = vmul.f32 %v1504_v19, %v4520_v1 }
 0x2fd   : > { %v1539_v3 = vmul.f32 %v1507_v43, %v4524_v21  ;;  %3653 = vtanh.f32 %v1416_v13  ;;  %v1417_v38 = vmul.f32 0.5, %v4564_v24 }
 0x2fe   : > { %v3644_v5 = vpop.eup %3643  ;;  %v1537_v16 = vmul.f32 %v1505_v61, %v4528_v26  ;;  %3655 = vtanh.f32 %v1419_v29 }
 0x2ff   : > { %v3646_v22 = vpop.eup %3645  ;;  %v1478_v2 = vadd.f32 1.0, %v3644_v5  ;;  %3657 = vtanh.f32 %v1417_v38  ;;  %v3261_v0 = vpop.f32.mrb[36].mxu0  ;;  %v1565_v6 = vpack.c.bf16 %v1539_v3, %v1538_v30 }
 0x300   : > { %v3648_v55 = vpop.eup %3647  ;;  %v1476_v23 = vadd.f32 1.0, %v3646_v22  ;;  %v4573_v37 = vadd.f32 %v3261_v0, %v4494_v34  ;;  %v1353_v21 = vpop.f32.mrb[37].mxu0  ;;  %v1564_v56 = vpack.c.bf16 %v1537_v16, %v1536_v39 }
 0x301   : > { %v3650_v4 = vpop.eup %3649  ;;  %v1510_v11 = vmul.f32 0.5, %v1478_v2  ;;  %v1479_v18 = vadd.f32 1.0, %v3648_v55  ;;  %v4576_v1 = vadd.f32 %v4494_v34, %v1353_v21  ;;  %v3262_v26 = vpop.f32.mrb[38].mxu0 }
 0x302   : > { %v1508_v41 = vmul.f32 0.5, %v1476_v23  ;;  %v1477_v57 = vadd.f32 1.0, %v3650_v4  ;;  %v1422_v42 = vmul.f32 0.5, %v4573_v37  ;;  %v4580_v62 = vadd.f32 %v3262_v26, %v4494_v34  ;;  %v1356_v36 = vpop.f32.mrb[39].mxu0  ;;  %3295 = vmatprep.mubr.bf16.mxu1 %v1564_v56 }
 0x303   : > { %v1511_v35 = vmul.f32 0.5, %v1479_v18  ;;  %v1420_v50 = vmul.f32 0.5, %v4576_v1  ;;  %v4584_v53 = vadd.f32 %v4494_v34, %v1356_v36  ;;  %3296 = vmatmul.mubr.bf16.gmra.mrb[56].mxu1 %v1565_v6  ;;  %v1542_v58 = vmul.f32 %v1510_v11, %v4533_v9 }
 0x304   : > { %v1509_v31 = vmul.f32 0.5, %v1477_v57  ;;  %3659 = vtanh.f32 %v1422_v42  ;;  %v1423_v12 = vmul.f32 0.5, %v4580_v62  ;;  %v1540_v33 = vmul.f32 %v1508_v41, %v4536_v51 }
 0x305   : > { %v1543_v60 = vmul.f32 %v1511_v35, %v4540_v45  ;;  %3661 = vtanh.f32 %v1420_v50  ;;  %v1421_v47 = vmul.f32 0.5, %v4584_v53 }
 0x306   : > { %v3652_v25 = vpop.eup %3651  ;;  %v1541_v48 = vmul.f32 %v1509_v31, %v4544_v52  ;;  %3663 = vtanh.f32 %v1423_v12 }
 0x307   : > { %v3654_v32 = vpop.eup %3653  ;;  %v1482_v27 = vadd.f32 1.0, %v3652_v25  ;;  %3665 = vtanh.f32 %v1421_v47  ;;  %v3265_v28 = vpop.f32.mrb[40].mxu0  ;;  %v1567_v44 = vpack.c.bf16 %v1543_v60, %v1542_v58 }
 0x308   : > { %v3656_v40 = vpop.eup %3655  ;;  %v1480_v59 = vadd.f32 1.0, %v3654_v32  ;;  %v4593_v9 = vadd.f32 %v3265_v28, %v4494_v34  ;;  %v1369_v45 = vpop.f32.mrb[41].mxu0  ;;  %v1566_v15 = vpack.c.bf16 %v1541_v48, %v1540_v33 }
 0x309   : > { %v3658_v7 = vpop.eup %3657  ;;  %v1514_v46 = vmul.f32 0.5, %v1482_v27  ;;  %v1483_v54 = vadd.f32 1.0, %v3656_v40  ;;  %v4596_v51 = vadd.f32 %v4494_v34, %v1369_v45  ;;  %v3266_v52 = vpop.f32.mrb[42].mxu0 }
 0x30a   : > { %v1512_v10 = vmul.f32 0.5, %v1480_v59  ;;  %v1481_v19 = vadd.f32 1.0, %v3658_v7  ;;  %v1426_v49 = vmul.f32 0.5, %v4593_v9  ;;  %v4600_v63 = vadd.f32 %v3266_v52, %v4494_v34  ;;  %v1372_v20 = vpop.f32.mrb[43].mxu0  ;;  %3299 = vmatprep.mubr.bf16.mxu1 %v1566_v15 }
 0x30b   : > { %v1515_v43 = vmul.f32 0.5, %v1483_v54  ;;  %v1424_v13 = vmul.f32 0.5, %v4596_v51  ;;  %v4604_v61 = vadd.f32 %v4494_v34, %v1372_v20  ;;  %3300 = vmatmul.mubr.bf16.gmra.mrb[60].mxu1 %v1567_v44  ;;  %v1546_v3 = vmul.f32 %v1514_v46, %v4553_v8 }
 0x30c   : > { %v1513_v29 = vmul.f32 0.5, %v1481_v19  ;;  %3667 = vtanh.f32 %v1426_v49  ;;  %v1427_v30 = vmul.f32 0.5, %v4600_v63  ;;  %v1544_v16 = vmul.f32 %v1512_v10, %v4556_v17 }
 0x30d   : > { %v1547_v38 = vmul.f32 %v1515_v43, %v4560_v14  ;;  %3669 = vtanh.f32 %v1424_v13  ;;  %v1425_v5 = vmul.f32 0.5, %v4604_v61 }
 0x30e   : > { %v3660_v39 = vpop.eup %3659  ;;  %v1545_v22 = vmul.f32 %v1513_v29, %v4564_v24  ;;  %3671 = vtanh.f32 %v1427_v30 }
 0x30f   : > { %v3662_v2 = vpop.eup %3661  ;;  %v1486_v0 = vadd.f32 1.0, %v3660_v39  ;;  %3673 = vtanh.f32 %v1425_v5  ;;  %v3269_v6 = vpop.f32.mrb[44].mxu0  ;;  %v1569_v55 = vpack.c.bf16 %v1547_v38, %v1546_v3 }
 0x310   : > { %v3664_v23 = vpop.eup %3663  ;;  %v1484_v21 = vadd.f32 1.0, %v3662_v2  ;;  %v4613_v8 = vadd.f32 %v3269_v6, %v4494_v34  ;;  %v1385_v14 = vpop.f32.mrb[45].mxu0  ;;  %v1568_v56 = vpack.c.bf16 %v1545_v22, %v1544_v16 }
 0x311   : > { %v3666_v4 = vpop.eup %3665  ;;  %v1518_v11 = vmul.f32 0.5, %v1486_v0  ;;  %v1487_v18 = vadd.f32 1.0, %v3664_v23  ;;  %v1386_v17 = vadd.f32 %v4494_v34, %v1385_v14  ;;  %v3270_v26 = vpop.f32.mrb[46].mxu0  ;;  %v3489_v23 = vld [vmem:[%s5199_s3 + $0xf0] sm:$0xff]  }
 0x312   : > { %v1516_v24 = vmul.f32 0.5, %v1484_v21  ;;  %v1485_v41 = vadd.f32 1.0, %v3666_v4  ;;  %v1430_v57 = vmul.f32 0.5, %v4613_v8  ;;  %v1397_v42 = vadd.f32 %v3270_v26, %v4494_v34  ;;  %v1388_v36 = vpop.f32.mrb[47].mxu0  ;;  %3303 = vmatprep.mubr.bf16.mxu1 %v1568_v56  ;;  %v3490_v21 = vld [vmem:[%s5199_s3 + $0xf8] sm:$0xff]  }
 0x313   : > { %v1519_v35 = vmul.f32 0.5, %v1487_v18  ;;  %v1428_v50 = vmul.f32 0.5, %v1386_v17  ;;  %v1389_v31 = vadd.f32 %v4494_v34, %v1388_v36  ;;  %3304 = vmatmul.mubr.bf16.gmra.mrb[64].mxu1 %v1569_v55  ;;  %v1550_v60 = vmul.f32 %v1518_v11, %v4573_v37  ;;  %v3488_v55 = vld [vmem:[%s5199_s3 + $0xe8] sm:$0xff]  }
 0x314   : > { %v1517_v12 = vmul.f32 0.5, %v1485_v41  ;;  %3675 = vtanh.f32 %v1430_v57  ;;  %v1431_v58 = vmul.f32 0.5, %v1397_v42  ;;  %v1548_v48 = vmul.f32 %v1516_v24, %v4576_v1  ;;  %3329 = vmatprep.subr.bf16.mxu0 %v3488_v55 }
 0x315   : > { %v1551_v47 = vmul.f32 %v1519_v35, %v4580_v62  ;;  %3677 = vtanh.f32 %v1428_v50  ;;  %v1429_v25 = vmul.f32 0.5, %v1389_v31  ;;  %3330 = vmatpush3.bf16.msra.mxu0 %v3488_v55 }
 0x316   : > { %v3668_v33 = vpop.eup %3667  ;;  %v1549_v32 = vmul.f32 %v1517_v12, %v4584_v53  ;;  %3679 = vtanh.f32 %v1431_v58  ;;  %3331 = vmatprep.subr.bf16.mxu0 %v3489_v23 }
 0x317   : > { %v3670_v27 = vpop.eup %3669  ;;  %v1490_v28 = vadd.f32 1.0, %v3668_v33  ;;  %3681 = vtanh.f32 %v1429_v25  ;;  %v1571_v34 = vpack.c.bf16 %v1551_v47, %v1550_v60 }
 0x318   : > { %v3672_v44 = vpop.eup %3671  ;;  %v1488_v40 = vadd.f32 1.0, %v3670_v27  ;;  %v1570_v59 = vpack.c.bf16 %v1549_v32, %v1548_v48 }
 0x319   : > { %v3674_v45 = vpop.eup %3673  ;;  %v1522_v15 = vmul.f32 0.5, %v1490_v28  ;;  %v1491_v37 = vadd.f32 1.0, %v3672_v44  ;;  %3332 = vmatpush3.bf16.msra.mxu0 %v3489_v23 }
 0x31a   : > { %v1520_v7 = vmul.f32 0.5, %v1488_v40  ;;  %v1489_v62 = vadd.f32 1.0, %v3674_v45  ;;  %3307 = vmatprep.mubr.bf16.mxu1 %v1570_v59  ;;  %3333 = vmatprep.subr.bf16.mxu0 %v3490_v21 }
 0x31b   : > { %v1523_v46 = vmul.f32 0.5, %v1491_v37  ;;  %3308 = vmatmul.mubr.bf16.gmra.mrb[68].mxu1 %v1571_v34  ;;  %v1554_v1 = vmul.f32 %v1522_v15, %v4593_v9 }
 0x31c   : > { %v1521_v54 = vmul.f32 0.5, %v1489_v62  ;;  %v1552_v10 = vmul.f32 %v1520_v7, %v4596_v51 }
 0x31d   : > { %v1555_v53 = vmul.f32 %v1523_v46, %v4600_v63  ;;  %3334 = vmatpush3.bf16.msra.mxu0 %v3490_v21 }
 0x31e   : > { %v3676_v52 = vpop.eup %3675  ;;  %v1553_v19 = vmul.f32 %v1521_v54, %v4604_v61 }
 0x31f   : > { %v3678_v49 = vpop.eup %3677  ;;  %v1494_v20 = vadd.f32 1.0, %v3676_v52  ;;  %v1573_v43 = vpack.c.bf16 %v1555_v53, %v1554_v1 }
 0x320   : > { %v3680_v13 = vpop.eup %3679  ;;  %v1492_v29 = vadd.f32 1.0, %v3678_v49  ;;  %v1572_v30 = vpack.c.bf16 %v1553_v19, %v1552_v10 }
 0x321   : > { %v3682_v3 = vpop.eup %3681  ;;  %v1526_v38 = vmul.f32 0.5, %v1494_v20  ;;  %v1495_v5 = vadd.f32 1.0, %v3680_v13 }
 0x322   : > { %v1524_v39 = vmul.f32 0.5, %v1492_v29  ;;  %v1493_v16 = vadd.f32 1.0, %v3682_v3  ;;  %3311 = vmatprep.mubr.bf16.mxu1 %v1572_v30 }
 0x323   : > { %v1527_v9 = vmul.f32 0.5, %v1495_v5  ;;  %3312 = vmatmul.mubr.bf16.gmra.mrb[72].mxu1 %v1573_v43  ;;  %v1558_v22 = vmul.f32 %v1526_v38, %v4613_v8  ;;  %v4640_v8 = vld [vmem:[%s5200_s4 + $0x2] ss:$0 sm:$0xff] }
 0x324   : > { %v1525_v63 = vmul.f32 0.5, %v1493_v16  ;;  %v1556_v2 = vmul.f32 %v1524_v39, %v1386_v17 }
 0x325   : > { %v1559_v51 = vmul.f32 %v1527_v9, %v1397_v42 }
 0x326   : > { %v1557_v61 = vmul.f32 %v1525_v63, %v1389_v31 }
 0x327   : > { %v1575_v0 = vpack.c.bf16 %v1559_v51, %v1558_v22 }
 0x328   : > { %v1574_v6 = vpack.c.bf16 %v1557_v61, %v1556_v2 }
 0x32a   : > { %3315 = vmatprep.mubr.bf16.mxu1 %v1574_v6 }
 0x32b   : > { %3316 = vmatmul.mubr.bf16.gmra.mrb[76].mxu1 %v1575_v0 }
 0x3c6   : > { %v3289_v14 = vpop.f32.mrb[48].mxu1 }
 0x3c7   : > { %v1692_v56 = vadd.f32 %v3289_v14, %v4640_v8  ;;  %v1683_v4 = vpop.f32.mrb[49].mxu1 }
 0x3c8   : > { %v1684_v11 = vadd.f32 %v4640_v8, %v1683_v4  ;;  %v3290_v18 = vpop.f32.mrb[50].mxu1 }
 0x3c9   : > { %v1812_v17 = vmul.f32 0.5, %v1692_v56  ;;  %v1695_v26 = vadd.f32 %v3290_v18, %v4640_v8  ;;  %v1686_v24 = vpop.f32.mrb[51].mxu1 }
 0x3ca   : > { %v1810_v41 = vmul.f32 0.5, %v1684_v11  ;;  %v1687_v57 = vadd.f32 %v4640_v8, %v1686_v24 }
 0x3cb   : > { %3683 = vtanh.f32 %v1812_v17  ;;  %v1813_v42 = vmul.f32 0.5, %v1695_v26 }
 0x3cc   : > { %3685 = vtanh.f32 %v1810_v41  ;;  %v1811_v36 = vmul.f32 0.5, %v1687_v57 }
 0x3cd   : > { %3687 = vtanh.f32 %v1813_v42 }
 0x3ce   : > { %3689 = vtanh.f32 %v1811_v36  ;;  %v3293_v35 = vpop.f32.mrb[52].mxu1 }
 0x3cf   : > { %v4647_v50 = vadd.f32 %v3293_v35, %v4640_v8  ;;  %v1699_v31 = vpop.f32.mrb[53].mxu1 }
 0x3d0   : > { %v4650_v12 = vadd.f32 %v4640_v8, %v1699_v31  ;;  %v3294_v58 = vpop.f32.mrb[54].mxu1 }
 0x3d1   : > { %v1816_v60 = vmul.f32 0.5, %v4647_v50  ;;  %v4654_v47 = vadd.f32 %v3294_v58, %v4640_v8  ;;  %v1702_v25 = vpop.f32.mrb[55].mxu1 }
 0x3d2   : > { %v1814_v33 = vmul.f32 0.5, %v4650_v12  ;;  %v4658_v48 = vadd.f32 %v4640_v8, %v1702_v25 }
 0x3d3   : > { %3691 = vtanh.f32 %v1816_v60  ;;  %v1817_v32 = vmul.f32 0.5, %v4654_v47 }
 0x3d4   : > { %3693 = vtanh.f32 %v1814_v33  ;;  %v1815_v27 = vmul.f32 0.5, %v4658_v48 }
 0x3d5   : > { %v3684_v28 = vpop.eup %3683  ;;  %3695 = vtanh.f32 %v1817_v32 }
 0x3d6   : > { %v3686_v34 = vpop.eup %3685  ;;  %v1876_v44 = vadd.f32 1.0, %v3684_v28  ;;  %3697 = vtanh.f32 %v1815_v27  ;;  %v3297_v40 = vpop.f32.mrb[56].mxu1 }
 0x3d7   : > { %v3688_v59 = vpop.eup %3687  ;;  %v1874_v45 = vadd.f32 1.0, %v3686_v34  ;;  %v4663_v15 = vadd.f32 %v3297_v40, %v4640_v8  ;;  %v1715_v37 = vpop.f32.mrb[57].mxu1 }
 0x3d8   : > { %v3690_v7 = vpop.eup %3689  ;;  %v1908_v62 = vmul.f32 0.5, %v1876_v44  ;;  %v1877_v46 = vadd.f32 1.0, %v3688_v59  ;;  %v4666_v54 = vadd.f32 %v4640_v8, %v1715_v37  ;;  %v3298_v1 = vpop.f32.mrb[58].mxu1 }
 0x3d9   : > { %v1906_v53 = vmul.f32 0.5, %v1874_v45  ;;  %v1875_v52 = vadd.f32 1.0, %v3690_v7  ;;  %v1820_v10 = vmul.f32 0.5, %v4663_v15  ;;  %v4670_v19 = vadd.f32 %v3298_v1, %v4640_v8  ;;  %v1718_v49 = vpop.f32.mrb[59].mxu1 }
 0x3da   : > { %v1909_v20 = vmul.f32 0.5, %v1877_v46  ;;  %v1818_v43 = vmul.f32 0.5, %v4666_v54  ;;  %v4674_v13 = vadd.f32 %v4640_v8, %v1718_v49  ;;  %v1940_v3 = vmul.f32 %v1908_v62, %v1692_v56 }
 0x3db   : > { %v1907_v29 = vmul.f32 0.5, %v1875_v52  ;;  %3699 = vtanh.f32 %v1820_v10  ;;  %v1821_v30 = vmul.f32 0.5, %v4670_v19  ;;  %v1938_v16 = vmul.f32 %v1906_v53, %v1684_v11 }
 0x3dc   : > { %v1941_v38 = vmul.f32 %v1909_v20, %v1695_v26  ;;  %3701 = vtanh.f32 %v1818_v43  ;;  %v1819_v5 = vmul.f32 0.5, %v4674_v13 }
 0x3dd   : > { %v3692_v39 = vpop.eup %3691  ;;  %v1939_v9 = vmul.f32 %v1907_v29, %v1687_v57  ;;  %3703 = vtanh.f32 %v1821_v30 }
 0x3de   : > { %v3694_v63 = vpop.eup %3693  ;;  %v1971_v22 = vpack.c.bf16 %v1941_v38, %v1940_v3  ;;  %v1880_v51 = vadd.f32 1.0, %v3692_v39  ;;  %3705 = vtanh.f32 %v1819_v5  ;;  %v3301_v2 = vpop.f32.mrb[60].mxu1 }
 0x3df   : > { %v3696_v61 = vpop.eup %3695  ;;  %v1878_v0 = vadd.f32 1.0, %v3694_v63  ;;  %v4679_v6 = vadd.f32 %v3301_v2, %v4640_v8  ;;  %v1731_v55 = vpop.f32.mrb[61].mxu1  ;;  %v1970_v23 = vpack.c.bf16 %v1939_v9, %v1938_v16 }
 0x3e0   : > { %v3698_v21 = vpop.eup %3697  ;;  %v1912_v14 = vmul.f32 0.5, %v1880_v51  ;;  %v1881_v56 = vadd.f32 1.0, %v3696_v61  ;;  %v4682_v4 = vadd.f32 %v4640_v8, %v1731_v55  ;;  %v3302_v11 = vpop.f32.mrb[62].mxu1 }
 0x3e1   : > { %v1910_v18 = vmul.f32 0.5, %v1878_v0  ;;  %v1879_v17 = vadd.f32 1.0, %v3698_v21  ;;  %v1824_v26 = vmul.f32 0.5, %v4679_v6  ;;  %v4686_v24 = vadd.f32 %v3302_v11, %v4640_v8  ;;  %v1734_v41 = vpop.f32.mrb[63].mxu1  ;;  %3335 = vmatprep.mubr.bf16.mxu0 %v1970_v23 }
 0x3e2   : > { %v1913_v57 = vmul.f32 0.5, %v1881_v56  ;;  %v1822_v42 = vmul.f32 0.5, %v4682_v4  ;;  %v4690_v36 = vadd.f32 %v4640_v8, %v1734_v41  ;;  %3336 = vmatmul.mubr.bf16.vlgmr.msra.gmra.mrb[48].mxu0 %v1971_v22  ;;  %v1944_v58 = vmul.f32 %v1912_v14, %v4647_v50 }
 0x3e3   : > { %v1911_v35 = vmul.f32 0.5, %v1879_v17  ;;  %3707 = vtanh.f32 %v1824_v26  ;;  %v1825_v31 = vmul.f32 0.5, %v4686_v24  ;;  %v1942_v32 = vmul.f32 %v1910_v18, %v4650_v12 }
 0x3e4   : > { %v1945_v60 = vmul.f32 %v1913_v57, %v4654_v47  ;;  %3709 = vtanh.f32 %v1822_v42  ;;  %v1823_v25 = vmul.f32 0.5, %v4690_v36 }
 0x3e5   : > { %v3700_v33 = vpop.eup %3699  ;;  %v1943_v27 = vmul.f32 %v1911_v35, %v4658_v48  ;;  %3711 = vtanh.f32 %v1825_v31 }
 0x3e6   : > { %v3702_v28 = vpop.eup %3701  ;;  %v1884_v34 = vadd.f32 1.0, %v3700_v33  ;;  %3713 = vtanh.f32 %v1823_v25  ;;  %v3305_v44 = vpop.f32.mrb[64].mxu1  ;;  %v1973_v40 = vpack.c.bf16 %v1945_v60, %v1944_v58 }
 0x3e7   : > { %v3704_v59 = vpop.eup %3703  ;;  %v1882_v45 = vadd.f32 1.0, %v3702_v28  ;;  %v4699_v50 = vadd.f32 %v3305_v44, %v4640_v8  ;;  %v1747_v47 = vpop.f32.mrb[65].mxu1  ;;  %v1972_v37 = vpack.c.bf16 %v1943_v27, %v1942_v32 }
 0x3e8   : > { %v3706_v7 = vpop.eup %3705  ;;  %v1916_v62 = vmul.f32 0.5, %v1884_v34  ;;  %v1885_v46 = vadd.f32 1.0, %v3704_v59  ;;  %v4702_v12 = vadd.f32 %v4640_v8, %v1747_v47  ;;  %v3306_v48 = vpop.f32.mrb[66].mxu1 }
 0x3e9   : > { %v1914_v1 = vmul.f32 0.5, %v1882_v45  ;;  %v1883_v53 = vadd.f32 1.0, %v3706_v7  ;;  %v1828_v52 = vmul.f32 0.5, %v4699_v50  ;;  %v4706_v10 = vadd.f32 %v3306_v48, %v4640_v8  ;;  %v1750_v49 = vpop.f32.mrb[67].mxu1  ;;  %3339 = vmatprep.mubr.bf16.mxu0 %v1972_v37 }
 0x3ea   : > { %v1917_v20 = vmul.f32 0.5, %v1885_v46  ;;  %v1826_v43 = vmul.f32 0.5, %v4702_v12  ;;  %v4710_v29 = vadd.f32 %v4640_v8, %v1750_v49  ;;  %3340 = vmatmul.mubr.bf16.gmra.mrb[52].mxu0 %v1973_v40  ;;  %v1948_v38 = vmul.f32 %v1916_v62, %v4663_v15 }
 0x3eb   : > { %v1915_v30 = vmul.f32 0.5, %v1883_v53  ;;  %3715 = vtanh.f32 %v1828_v52  ;;  %v1829_v3 = vmul.f32 0.5, %v4706_v10  ;;  %v1946_v9 = vmul.f32 %v1914_v1, %v4666_v54 }
 0x3ec   : > { %v1949_v5 = vmul.f32 %v1917_v20, %v4670_v19  ;;  %3717 = vtanh.f32 %v1826_v43  ;;  %v1827_v39 = vmul.f32 0.5, %v4710_v29 }
 0x3ed   : > { %v3708_v16 = vpop.eup %3707  ;;  %v1947_v63 = vmul.f32 %v1915_v30, %v4674_v13  ;;  %3719 = vtanh.f32 %v1829_v3 }
 0x3ee   : > { %v3710_v22 = vpop.eup %3709  ;;  %v1888_v51 = vadd.f32 1.0, %v3708_v16  ;;  %3721 = vtanh.f32 %v1827_v39  ;;  %v3309_v2 = vpop.f32.mrb[68].mxu1  ;;  %v1975_v61 = vpack.c.bf16 %v1949_v5, %v1948_v38 }
 0x3ef   : > { %v3712_v0 = vpop.eup %3711  ;;  %v1886_v55 = vadd.f32 1.0, %v3710_v22  ;;  %v4719_v15 = vadd.f32 %v3309_v2, %v4640_v8  ;;  %v1763_v19 = vpop.f32.mrb[69].mxu1  ;;  %v1974_v23 = vpack.c.bf16 %v1947_v63, %v1946_v9 }
 0x3f0   : > { %v3714_v21 = vpop.eup %3713  ;;  %v1920_v14 = vmul.f32 0.5, %v1888_v51  ;;  %v1889_v56 = vadd.f32 1.0, %v3712_v0  ;;  %v4722_v54 = vadd.f32 %v4640_v8, %v1763_v19  ;;  %v3310_v13 = vpop.f32.mrb[70].mxu1 }
 0x3f1   : > { %v1918_v11 = vmul.f32 0.5, %v1886_v55  ;;  %v1887_v18 = vadd.f32 1.0, %v3714_v21  ;;  %v1832_v17 = vmul.f32 0.5, %v4719_v15  ;;  %v4726_v26 = vadd.f32 %v3310_v13, %v4640_v8  ;;  %v1766_v41 = vpop.f32.mrb[71].mxu1  ;;  %3343 = vmatprep.mubr.bf16.mxu0 %v1974_v23 }
 0x3f2   : > { %v1921_v57 = vmul.f32 0.5, %v1889_v56  ;;  %v1830_v42 = vmul.f32 0.5, %v4722_v54  ;;  %v4730_v35 = vadd.f32 %v4640_v8, %v1766_v41  ;;  %3344 = vmatmul.mubr.bf16.gmra.mrb[56].mxu0 %v1975_v61  ;;  %v1952_v60 = vmul.f32 %v1920_v14, %v4679_v6 }
 0x3f3   : > { %v1919_v31 = vmul.f32 0.5, %v1887_v18  ;;  %3723 = vtanh.f32 %v1832_v17  ;;  %v1833_v58 = vmul.f32 0.5, %v4726_v26  ;;  %v1950_v27 = vmul.f32 %v1918_v11, %v4682_v4 }
 0x3f4   : > { %v1953_v25 = vmul.f32 %v1921_v57, %v4686_v24  ;;  %3725 = vtanh.f32 %v1830_v42  ;;  %v1831_v33 = vmul.f32 0.5, %v4730_v35 }
 0x3f5   : > { %v3716_v32 = vpop.eup %3715  ;;  %v1951_v28 = vmul.f32 %v1919_v31, %v4690_v36  ;;  %3727 = vtanh.f32 %v1833_v58 }
 0x3f6   : > { %v3718_v34 = vpop.eup %3717  ;;  %v1892_v44 = vadd.f32 1.0, %v3716_v32  ;;  %3729 = vtanh.f32 %v1831_v33  ;;  %v3313_v40 = vpop.f32.mrb[72].mxu1  ;;  %v1977_v59 = vpack.c.bf16 %v1953_v25, %v1952_v60 }
 0x3f7   : > { %v3720_v45 = vpop.eup %3719  ;;  %v1890_v47 = vadd.f32 1.0, %v3718_v34  ;;  %v4739_v6 = vadd.f32 %v3313_v40, %v4640_v8  ;;  %v1779_v24 = vpop.f32.mrb[73].mxu1  ;;  %v1976_v37 = vpack.c.bf16 %v1951_v28, %v1950_v27 }
 0x3f8   : > { %v3722_v7 = vpop.eup %3721  ;;  %v1924_v62 = vmul.f32 0.5, %v1892_v44  ;;  %v1893_v46 = vadd.f32 1.0, %v3720_v45  ;;  %v4742_v4 = vadd.f32 %v4640_v8, %v1779_v24  ;;  %v3314_v36 = vpop.f32.mrb[74].mxu1 }
 0x3f9   : > { %v1922_v48 = vmul.f32 0.5, %v1890_v47  ;;  %v1891_v1 = vadd.f32 1.0, %v3722_v7  ;;  %v1836_v53 = vmul.f32 0.5, %v4739_v6  ;;  %v4746_v52 = vadd.f32 %v3314_v36, %v4640_v8  ;;  %v1782_v49 = vpop.f32.mrb[75].mxu1  ;;  %3347 = vmatprep.mubr.bf16.mxu0 %v1976_v37 }
 0x3fa   : > { %v1925_v20 = vmul.f32 0.5, %v1893_v46  ;;  %v1834_v43 = vmul.f32 0.5, %v4742_v4  ;;  %v4750_v30 = vadd.f32 %v4640_v8, %v1782_v49  ;;  %3348 = vmatmul.mubr.bf16.gmra.mrb[60].mxu0 %v1977_v59  ;;  %v1956_v5 = vmul.f32 %v1924_v62, %v4699_v50 }
 0x3fb   : > { %v1923_v3 = vmul.f32 0.5, %v1891_v1  ;;  %3731 = vtanh.f32 %v1836_v53  ;;  %v1837_v38 = vmul.f32 0.5, %v4746_v52  ;;  %v1954_v63 = vmul.f32 %v1922_v48, %v4702_v12 }
 0x3fc   : > { %v1957_v39 = vmul.f32 %v1925_v20, %v4706_v10  ;;  %3733 = vtanh.f32 %v1834_v43  ;;  %v1835_v16 = vmul.f32 0.5, %v4750_v30 }
 0x3fd   : > { %v3724_v9 = vpop.eup %3723  ;;  %v1955_v22 = vmul.f32 %v1923_v3, %v4710_v29  ;;  %3735 = vtanh.f32 %v1837_v38 }
 0x3fe   : > { %v3726_v51 = vpop.eup %3725  ;;  %v1896_v2 = vadd.f32 1.0, %v3724_v9  ;;  %3737 = vtanh.f32 %v1835_v16  ;;  %v3317_v61 = vpop.f32.mrb[76].mxu1  ;;  %v1979_v0 = vpack.c.bf16 %v1957_v39, %v1956_v5 }
 0x3ff   : > { %v3728_v55 = vpop.eup %3727  ;;  %v1894_v19 = vadd.f32 1.0, %v3726_v51  ;;  %v4759_v50 = vadd.f32 %v3317_v61, %v4640_v8  ;;  %v1795_v10 = vpop.f32.mrb[77].mxu1  ;;  %v1978_v23 = vpack.c.bf16 %v1955_v22, %v1954_v63 }
 0x400   : > { %v3730_v21 = vpop.eup %3729  ;;  %v1928_v14 = vmul.f32 0.5, %v1896_v2  ;;  %v1897_v56 = vadd.f32 1.0, %v3728_v55  ;;  %v1796_v12 = vadd.f32 %v4640_v8, %v1795_v10  ;;  %v3318_v13 = vpop.f32.mrb[78].mxu1 }
 0x401   : > { %v1926_v29 = vmul.f32 0.5, %v1894_v19  ;;  %v1895_v11 = vadd.f32 1.0, %v3730_v21  ;;  %v1840_v18 = vmul.f32 0.5, %v4759_v50  ;;  %v1807_v17 = vadd.f32 %v3318_v13, %v4640_v8  ;;  %v1798_v41 = vpop.f32.mrb[79].mxu1  ;;  %3351 = vmatprep.mubr.bf16.mxu0 %v1978_v23 }
 0x402   : > { %v1929_v57 = vmul.f32 0.5, %v1897_v56  ;;  %v1838_v42 = vmul.f32 0.5, %v1796_v12  ;;  %v1799_v31 = vadd.f32 %v4640_v8, %v1798_v41  ;;  %3352 = vmatmul.mubr.bf16.gmra.mrb[64].mxu0 %v1979_v0  ;;  %v1960_v25 = vmul.f32 %v1928_v14, %v4719_v15  ;;  %v4777_v0 = vld [vmem:[%s5200_s4 + $0x3] ss:$0 sm:$0xff] }
 0x403   : > { %v1927_v58 = vmul.f32 0.5, %v1895_v11  ;;  %3739 = vtanh.f32 %v1840_v18  ;;  %v1841_v60 = vmul.f32 0.5, %v1807_v17  ;;  %v1958_v28 = vmul.f32 %v1926_v29, %v4722_v54 }
 0x404   : > { %v1961_v33 = vmul.f32 %v1929_v57, %v4726_v26  ;;  %3741 = vtanh.f32 %v1838_v42  ;;  %v1839_v32 = vmul.f32 0.5, %v1799_v31 }
 0x405   : > { %v3732_v27 = vpop.eup %3731  ;;  %v1959_v34 = vmul.f32 %v1927_v58, %v4730_v35  ;;  %3743 = vtanh.f32 %v1841_v60 }
 0x406   : > { %v3734_v44 = vpop.eup %3733  ;;  %v1900_v40 = vadd.f32 1.0, %v3732_v27  ;;  %3745 = vtanh.f32 %v1839_v32  ;;  %v1981_v8 = vpack.c.bf16 %v1961_v33, %v1960_v25 }
 0x407   : > { %v3736_v59 = vpop.eup %3735  ;;  %v1898_v45 = vadd.f32 1.0, %v3734_v44  ;;  %v1980_v47 = vpack.c.bf16 %v1959_v34, %v1958_v28 }
 0x408   : > { %v3738_v24 = vpop.eup %3737  ;;  %v1932_v37 = vmul.f32 0.5, %v1900_v40  ;;  %v1901_v15 = vadd.f32 1.0, %v3736_v59 }
 0x409   : > { %v1930_v7 = vmul.f32 0.5, %v1898_v45  ;;  %v1899_v26 = vadd.f32 1.0, %v3738_v24  ;;  %3355 = vmatprep.mubr.bf16.mxu0 %v1980_v47 }
 0x40a   : > { %v1933_v62 = vmul.f32 0.5, %v1901_v15  ;;  %3356 = vmatmul.mubr.bf16.gmra.mrb[68].mxu0 %v1981_v8  ;;  %v1964_v54 = vmul.f32 %v1932_v37, %v4739_v6 }
 0x40b   : > { %v1931_v46 = vmul.f32 0.5, %v1899_v26  ;;  %v1962_v48 = vmul.f32 %v1930_v7, %v4742_v4 }
 0x40c   : > { %v1965_v35 = vmul.f32 %v1933_v62, %v4746_v52 }
 0x40d   : > { %v3740_v36 = vpop.eup %3739  ;;  %v1963_v1 = vmul.f32 %v1931_v46, %v4750_v30 }
 0x40e   : > { %v3742_v53 = vpop.eup %3741  ;;  %v1904_v49 = vadd.f32 1.0, %v3740_v36  ;;  %v1983_v20 = vpack.c.bf16 %v1965_v35, %v1964_v54  ;;  %v4812_v36 = vld [vmem:[%s5201_s5] ss:$0 sm:$0xff] }
 0x40f   : > { %v3744_v43 = vpop.eup %3743  ;;  %v1902_v3 = vadd.f32 1.0, %v3742_v53  ;;  %v1982_v38 = vpack.c.bf16 %v1963_v1, %v1962_v48 }
 0x410   : > { %v3746_v5 = vpop.eup %3745  ;;  %v1936_v39 = vmul.f32 0.5, %v1904_v49  ;;  %v1905_v16 = vadd.f32 1.0, %v3744_v43 }
 0x411   : > { %v1934_v9 = vmul.f32 0.5, %v1902_v3  ;;  %v1903_v63 = vadd.f32 1.0, %v3746_v5  ;;  %3359 = vmatprep.mubr.bf16.mxu0 %v1982_v38 }
 0x412   : > { %v1937_v6 = vmul.f32 0.5, %v1905_v16  ;;  %3360 = vmatmul.mubr.bf16.gmra.mrb[72].mxu0 %v1983_v20  ;;  %v1968_v22 = vmul.f32 %v1936_v39, %v4759_v50 }
 0x413   : > { %v1935_v52 = vmul.f32 0.5, %v1903_v63  ;;  %v1966_v51 = vmul.f32 %v1934_v9, %v1796_v12 }
 0x414   : > { %v1969_v4 = vmul.f32 %v1937_v6, %v1807_v17 }
 0x415   : > { %v1967_v30 = vmul.f32 %v1935_v52, %v1799_v31 }
 0x416   : > { %v1985_v2 = vpack.c.bf16 %v1969_v4, %v1968_v22 }
 0x417   : > { %v1984_v61 = vpack.c.bf16 %v1967_v30, %v1966_v51 }
 0x419   : > { %3363 = vmatprep.mubr.bf16.mxu0 %v1984_v61 }
 0x41a   : > { %3364 = vmatmul.mubr.bf16.gmra.mrb[76].mxu0 %v1985_v2 }
 0x4b5   : > { %v3337_v55 = vpop.f32.mrb[48].mxu0 }
 0x4b6   : > { %v2102_v19 = vadd.f32 %v3337_v55, %v4777_v0  ;;  %v2093_v10 = vpop.f32.mrb[49].mxu0 }
 0x4b7   : > { %v2094_v23 = vadd.f32 %v4777_v0, %v2093_v10  ;;  %v3338_v21 = vpop.f32.mrb[50].mxu0 }
 0x4b8   : > { %v2222_v50 = vmul.f32 0.5, %v2102_v19  ;;  %v2105_v14 = vadd.f32 %v3338_v21, %v4777_v0  ;;  %v2096_v56 = vpop.f32.mrb[51].mxu0 }
 0x4b9   : > { %v2220_v12 = vmul.f32 0.5, %v2094_v23  ;;  %v2097_v13 = vadd.f32 %v4777_v0, %v2096_v56 }
 0x4ba   : > { %3747 = vtanh.f32 %v2222_v50  ;;  %v2223_v29 = vmul.f32 0.5, %v2105_v14 }
 0x4bb   : > { %3749 = vtanh.f32 %v2220_v12  ;;  %v2221_v11 = vmul.f32 0.5, %v2097_v13 }
 0x4bc   : > { %3751 = vtanh.f32 %v2223_v29 }
 0x4bd   : > { %3753 = vtanh.f32 %v2221_v11  ;;  %v3341_v18 = vpop.f32.mrb[52].mxu0 }
 0x4be   : > { %v4784_v17 = vadd.f32 %v3341_v18, %v4777_v0  ;;  %v2109_v41 = vpop.f32.mrb[53].mxu0 }
 0x4bf   : > { %v4787_v57 = vadd.f32 %v4777_v0, %v2109_v41  ;;  %v3342_v42 = vpop.f32.mrb[54].mxu0 }
 0x4c0   : > { %v2226_v31 = vmul.f32 0.5, %v4784_v17  ;;  %v4791_v58 = vadd.f32 %v3342_v42, %v4777_v0  ;;  %v2112_v60 = vpop.f32.mrb[55].mxu0 }
 0x4c1   : > { %v2224_v25 = vmul.f32 0.5, %v4787_v57  ;;  %v4795_v33 = vadd.f32 %v4777_v0, %v2112_v60 }
 0x4c2   : > { %3755 = vtanh.f32 %v2226_v31  ;;  %v2227_v32 = vmul.f32 0.5, %v4791_v58 }
 0x4c3   : > { %3757 = vtanh.f32 %v2224_v25  ;;  %v2225_v27 = vmul.f32 0.5, %v4795_v33 }
 0x4c4   : > { %v3748_v28 = vpop.eup %3747  ;;  %3759 = vtanh.f32 %v2227_v32 }
 0x4c5   : > { %v3750_v34 = vpop.eup %3749  ;;  %3761 = vtanh.f32 %v2225_v27  ;;  %v3345_v44 = vpop.f32.mrb[56].mxu0  ;;  %v2286_v40 = vadd.f32 1.0, %v3748_v28 }
 0x4c6   : > { %v3752_v8 = vpop.eup %3751  ;;  %v4800_v59 = vadd.f32 %v3345_v44, %v4777_v0  ;;  %v2125_v45 = vpop.f32.mrb[57].mxu0  ;;  %v2284_v47 = vadd.f32 1.0, %v3750_v34 }
 0x4c7   : > { %v3754_v24 = vpop.eup %3753  ;;  %v2287_v37 = vadd.f32 1.0, %v3752_v8  ;;  %v4803_v15 = vadd.f32 %v4777_v0, %v2125_v45  ;;  %v3346_v7 = vpop.f32.mrb[58].mxu0  ;;  %v2318_v26 = vmul.f32 0.5, %v2286_v40 }
 0x4c8   : > { %v2285_v62 = vadd.f32 1.0, %v3754_v24  ;;  %v2230_v46 = vmul.f32 0.5, %v4800_v59  ;;  %v4807_v54 = vadd.f32 %v3346_v7, %v4777_v0  ;;  %v2128_v35 = vpop.f32.mrb[59].mxu0  ;;  %v2316_v48 = vmul.f32 0.5, %v2284_v47 }
 0x4c9   : > { %v2319_v1 = vmul.f32 0.5, %v2287_v37  ;;  %v2228_v53 = vmul.f32 0.5, %v4803_v15  ;;  %v4816_v49 = vadd.f32 %v4777_v0, %v2128_v35  ;;  %v2350_v20 = vmul.f32 %v2318_v26, %v2102_v19 }
 0x4ca   : > { %v2317_v43 = vmul.f32 0.5, %v2285_v62  ;;  %3763 = vtanh.f32 %v2230_v46  ;;  %v2231_v3 = vmul.f32 0.5, %v4807_v54  ;;  %v2348_v38 = vmul.f32 %v2316_v48, %v2094_v23 }
 0x4cb   : > { %v2351_v5 = vmul.f32 %v2319_v1, %v2105_v14  ;;  %3765 = vtanh.f32 %v2228_v53  ;;  %v2229_v39 = vmul.f32 0.5, %v4816_v49  ;;  %v2389_v16 = vmul.f32 %v4812_v36, %v2350_v20 }
 0x4cc   : > { %v3756_v9 = vpop.eup %3755  ;;  %v2349_v63 = vmul.f32 %v2317_v43, %v2097_v13  ;;  %3767 = vtanh.f32 %v2231_v3  ;;  %v2387_v6 = vmul.f32 %v4812_v36, %v2348_v38 }
 0x4cd   : > { %v3758_v52 = vpop.eup %3757  ;;  %v2290_v22 = vadd.f32 1.0, %v3756_v9  ;;  %3769 = vtanh.f32 %v2229_v39  ;;  %2423 = vadd.xlane.f32.xlu1 %v2389_v16  ;;  %v3349_v4 = vpop.f32.mrb[60].mxu0  ;;  %v2390_v55 = vmul.f32 %v4812_v36, %v2351_v5 }
 0x4ce   : > { %v3760_v51 = vpop.eup %3759  ;;  %v2288_v30 = vadd.f32 1.0, %v3758_v52  ;;  %v4823_v2 = vadd.f32 %v3349_v4, %v4777_v0  ;;  %v2141_v61 = vpop.f32.mrb[61].mxu0  ;;  %2419 = vadd.xlane.f32.xlu0 %v2387_v6  ;;  %v2388_v14 = vmul.f32 %v4812_v36, %v2349_v63 }
 0x4cf   : > { %v3762_v19 = vpop.eup %3761  ;;  %v2322_v10 = vmul.f32 0.5, %v2290_v22  ;;  %v2291_v23 = vadd.f32 1.0, %v3760_v51  ;;  %v4827_v21 = vadd.f32 %v4777_v0, %v2141_v61  ;;  %v3350_v50 = vpop.f32.mrb[62].mxu0 }
 0x4d0   : > { %v2320_v56 = vmul.f32 0.5, %v2288_v30  ;;  %v2289_v12 = vadd.f32 1.0, %v3762_v19  ;;  %v2234_v13 = vmul.f32 0.5, %v4823_v2  ;;  %v4832_v29 = vadd.f32 %v3350_v50, %v4777_v0  ;;  %v2144_v11 = vpop.f32.mrb[63].mxu0 }
 0x4d1   : > { %v2354_v18 = vmul.f32 %v2322_v10, %v4784_v17  ;;  %v2323_v41 = vmul.f32 0.5, %v2291_v23  ;;  %v2232_v42 = vmul.f32 0.5, %v4827_v21  ;;  %v4837_v31 = vadd.f32 %v4777_v0, %v2144_v11  ;;  %2425 = vadd.xlane.f32.xlu1 %v2390_v55 }
 0x4d2   : > { %v2352_v60 = vmul.f32 %v2320_v56, %v4787_v57  ;;  %v2321_v25 = vmul.f32 0.5, %v2289_v12  ;;  %3771 = vtanh.f32 %v2234_v13  ;;  %v2235_v32 = vmul.f32 0.5, %v4832_v29  ;;  %2421 = vadd.xlane.f32.xlu0 %v2388_v14 }
 0x4d3   : > { %v2355_v27 = vmul.f32 %v2323_v41, %v4791_v58  ;;  %3773 = vtanh.f32 %v2232_v42  ;;  %v2233_v28 = vmul.f32 0.5, %v4837_v31  ;;  %v2393_v17 = vmul.f32 %v4812_v36, %v2354_v18 }
 0x4d4   : > { %v3764_v34 = vpop.eup %3763  ;;  %v2353_v44 = vmul.f32 %v2321_v25, %v4795_v33  ;;  %3775 = vtanh.f32 %v2235_v32  ;;  %v2391_v7 = vmul.f32 %v4812_v36, %v2352_v60 }
 0x4d5   : > { %v3766_v40 = vpop.eup %3765  ;;  %v2294_v8 = vadd.f32 1.0, %v3764_v34  ;;  %3777 = vtanh.f32 %v2233_v28  ;;  %v3353_v57 = vpop.f32.mrb[64].mxu0  ;;  %v2394_v45 = vmul.f32 %v4812_v36, %v2355_v27 }
 0x4d6   : > { %v3768_v47 = vpop.eup %3767  ;;  %v2292_v24 = vadd.f32 1.0, %v3766_v40  ;;  %v4847_v37 = vadd.f32 %v3353_v57, %v4777_v0  ;;  %v2157_v58 = vpop.f32.mrb[65].mxu0  ;;  %2431 = vadd.xlane.f32.xlu0 %v2393_v17  ;;  %v2392_v48 = vmul.f32 %v4812_v36, %v2353_v44 }
 0x4d7   : > { %v3770_v26 = vpop.eup %3769  ;;  %v2326_v62 = vmul.f32 0.5, %v2294_v8  ;;  %v2295_v46 = vadd.f32 1.0, %v3768_v47  ;;  %v4851_v33 = vadd.f32 %v4777_v0, %v2157_v58  ;;  %2433 = vadd.xlane.f32.xlu1 %v2394_v45  ;;  %v3354_v35 = vpop.f32.mrb[66].mxu0 }
 0x4d8   : > { %v2324_v1 = vmul.f32 0.5, %v2292_v24  ;;  %v2293_v53 = vadd.f32 1.0, %v3770_v26  ;;  %v2238_v20 = vmul.f32 0.5, %v4847_v37  ;;  %v4856_v43 = vadd.f32 %v3354_v35, %v4777_v0  ;;  %v2160_v3 = vpop.f32.mrb[67].mxu0 }
 0x4d9   : > { %v2358_v38 = vmul.f32 %v2326_v62, %v4800_v59  ;;  %v2327_v5 = vmul.f32 0.5, %v2295_v46  ;;  %v2236_v39 = vmul.f32 0.5, %v4851_v33  ;;  %v4861_v16 = vadd.f32 %v4777_v0, %v2160_v3 }
 0x4da   : > { %v2356_v9 = vmul.f32 %v2324_v1, %v4803_v15  ;;  %v2325_v63 = vmul.f32 0.5, %v2293_v53  ;;  %3779 = vtanh.f32 %v2238_v20  ;;  %v2239_v6 = vmul.f32 0.5, %v4856_v43  ;;  %2427 = vadd.xlane.f32.xlu0 %v2391_v7 }
 0x4db   : > { %v2359_v52 = vmul.f32 %v2327_v5, %v4807_v54  ;;  %3781 = vtanh.f32 %v2236_v39  ;;  %v2237_v22 = vmul.f32 0.5, %v4861_v16  ;;  %2429 = vadd.xlane.f32.xlu1 %v2392_v48  ;;  %v2397_v59 = vmul.f32 %v4812_v36, %v2358_v38 }
 0x4dc   : > { %v3772_v4 = vpop.eup %3771  ;;  %v2357_v51 = vmul.f32 %v2325_v63, %v4816_v49  ;;  %3783 = vtanh.f32 %v2239_v6  ;;  %v2395_v50 = vmul.f32 %v4812_v36, %v2356_v9 }
 0x4dd   : > { %v3774_v30 = vpop.eup %3773  ;;  %v2298_v61 = vadd.f32 1.0, %v3772_v4  ;;  %3785 = vtanh.f32 %v2237_v22  ;;  %v3357_v15 = vpop.f32.mrb[68].mxu0  ;;  %v2398_v55 = vmul.f32 %v4812_v36, %v2359_v52 }
 0x4de   : > { %v3776_v19 = vpop.eup %3775  ;;  %v2296_v10 = vadd.f32 1.0, %v3774_v30  ;;  %v4871_v54 = vadd.f32 %v3357_v15, %v4777_v0  ;;  %v2173_v23 = vpop.f32.mrb[69].mxu0  ;;  %2439 = vadd.xlane.f32.xlu0 %v2397_v59  ;;  %v2396_v11 = vmul.f32 %v4812_v36, %v2357_v51 }
 0x4df   : > { %v3778_v14 = vpop.eup %3777  ;;  %v2330_v56 = vmul.f32 0.5, %v2298_v61  ;;  %v2299_v12 = vadd.f32 1.0, %v3776_v19  ;;  %v4875_v49 = vadd.f32 %v4777_v0, %v2173_v23  ;;  %v3358_v13 = vpop.f32.mrb[70].mxu0  ;;  %2441 = vadd.xlane.f32.xlu1 %v2398_v55 }
 0x4e0   : > { %v2328_v18 = vmul.f32 0.5, %v2296_v10  ;;  %v2297_v41 = vadd.f32 1.0, %v3778_v14  ;;  %v2242_v42 = vmul.f32 0.5, %v4871_v54  ;;  %v4880_v60 = vadd.f32 %v3358_v13, %v4777_v0  ;;  %v2176_v25 = vpop.f32.mrb[71].mxu0 }
 0x4e1   : > { %v2362_v32 = vmul.f32 %v2330_v56, %v4823_v2  ;;  %v2331_v27 = vmul.f32 0.5, %v2299_v12  ;;  %v2240_v28 = vmul.f32 0.5, %v4875_v49  ;;  %v4885_v17 = vadd.f32 %v4777_v0, %v2176_v25 }
 0x4e2   : > { %v2360_v34 = vmul.f32 %v2328_v18, %v4827_v21  ;;  %v2329_v44 = vmul.f32 0.5, %v2297_v41  ;;  %3787 = vtanh.f32 %v2242_v42  ;;  %v2243_v40 = vmul.f32 0.5, %v4880_v60  ;;  %2435 = vadd.xlane.f32.xlu0 %v2395_v50 }
 0x4e3   : > { %v2363_v8 = vmul.f32 %v2331_v27, %v4832_v29  ;;  %3789 = vtanh.f32 %v2240_v28  ;;  %v2241_v57 = vmul.f32 0.5, %v4885_v17  ;;  %2437 = vadd.xlane.f32.xlu1 %v2396_v11  ;;  %v2401_v2 = vmul.f32 %v4812_v36, %v2362_v32 }
 0x4e4   : > { %v3780_v45 = vpop.eup %3779  ;;  %v2361_v47 = vmul.f32 %v2329_v44, %v4837_v31  ;;  %3791 = vtanh.f32 %v2243_v40  ;;  %v2399_v35 = vmul.f32 %v4812_v36, %v2360_v34 }
 0x4e5   : > { %v3782_v24 = vpop.eup %3781  ;;  %v2302_v58 = vadd.f32 1.0, %v3780_v45  ;;  %3793 = vtanh.f32 %v2241_v57  ;;  %v3361_v21 = vpop.f32.mrb[72].mxu0  ;;  %v2402_v7 = vmul.f32 %v4812_v36, %v2363_v8 }
 0x4e6   : > { %v3784_v26 = vpop.eup %3783  ;;  %v2300_v62 = vadd.f32 1.0, %v3782_v24  ;;  %v4895_v29 = vadd.f32 %v3361_v21, %v4777_v0  ;;  %v2189_v46 = vpop.f32.mrb[73].mxu0  ;;  %2447 = vadd.xlane.f32.xlu0 %v2401_v2  ;;  %v2400_v3 = vmul.f32 %v4812_v36, %v2361_v47 }
 0x4e7   : > { %v3786_v48 = vpop.eup %3785  ;;  %v2334_v1 = vmul.f32 0.5, %v2302_v58  ;;  %v2303_v53 = vadd.f32 1.0, %v3784_v26  ;;  %v4899_v31 = vadd.f32 %v4777_v0, %v2189_v46  ;;  %v3362_v20 = vpop.f32.mrb[74].mxu0  ;;  %2449 = vadd.xlane.f32.xlu1 %v2402_v7 }
 0x4e8   : > { %v2332_v38 = vmul.f32 0.5, %v2300_v62  ;;  %v2301_v5 = vadd.f32 1.0, %v3786_v48  ;;  %v2246_v39 = vmul.f32 0.5, %v4895_v29  ;;  %v4904_v9 = vadd.f32 %v3362_v20, %v4777_v0  ;;  %v2192_v63 = vpop.f32.mrb[75].mxu0 }
 0x4e9   : > { %v2366_v6 = vmul.f32 %v2334_v1, %v4847_v37  ;;  %v2335_v52 = vmul.f32 0.5, %v2303_v53  ;;  %v2244_v22 = vmul.f32 0.5, %v4899_v31  ;;  %v4909_v59 = vadd.f32 %v4777_v0, %v2192_v63 }
 0x4ea   : > { %v2364_v4 = vmul.f32 %v2332_v38, %v4851_v33  ;;  %v2333_v51 = vmul.f32 0.5, %v2301_v5  ;;  %3795 = vtanh.f32 %v2246_v39  ;;  %v2247_v30 = vmul.f32 0.5, %v4904_v9  ;;  %2443 = vadd.xlane.f32.xlu0 %v2399_v35 }
 0x4eb   : > { %v2367_v61 = vmul.f32 %v2335_v52, %v4856_v43  ;;  %3797 = vtanh.f32 %v2244_v22  ;;  %v2245_v15 = vmul.f32 0.5, %v4909_v59  ;;  %2445 = vadd.xlane.f32.xlu1 %v2400_v3  ;;  %v2405_v37 = vmul.f32 %v4812_v36, %v2366_v6 }
 0x4ec   : > { %v3788_v55 = vpop.eup %3787  ;;  %v2365_v19 = vmul.f32 %v2333_v51, %v4861_v16  ;;  %3799 = vtanh.f32 %v2247_v30  ;;  %v2403_v13 = vmul.f32 %v4812_v36, %v2364_v4 }
 0x4ed   : > { %v3790_v10 = vpop.eup %3789  ;;  %v2306_v23 = vadd.f32 1.0, %v3788_v55  ;;  %3801 = vtanh.f32 %v2245_v15  ;;  %v3365_v33 = vpop.f32.mrb[76].mxu0  ;;  %v2406_v50 = vmul.f32 %v4812_v36, %v2367_v61 }
 0x4ee   : > { %v3792_v14 = vpop.eup %3791  ;;  %v2304_v56 = vadd.f32 1.0, %v3790_v10  ;;  %v4919_v43 = vadd.f32 %v3365_v33, %v4777_v0  ;;  %v2205_v12 = vpop.f32.mrb[77].mxu0  ;;  %2455 = vadd.xlane.f32.xlu0 %v2405_v37  ;;  %v2404_v25 = vmul.f32 %v4812_v36, %v2365_v19 }
 0x4ef   : > { %v3794_v11 = vpop.eup %3793  ;;  %v2338_v18 = vmul.f32 0.5, %v2306_v23  ;;  %v2307_v41 = vadd.f32 1.0, %v3792_v14  ;;  %v4923_v16 = vadd.f32 %v4777_v0, %v2205_v12  ;;  %v3366_v42 = vpop.f32.mrb[78].mxu0  ;;  %2457 = vadd.xlane.f32.xlu1 %v2406_v50 }
 0x4f0   : > { %v2336_v32 = vmul.f32 0.5, %v2304_v56  ;;  %v2305_v27 = vadd.f32 1.0, %v3794_v11  ;;  %v2250_v28 = vmul.f32 0.5, %v4919_v43  ;;  %v4928_v34 = vadd.f32 %v3366_v42, %v4777_v0  ;;  %v2208_v44 = vpop.f32.mrb[79].mxu0 }
 0x4f1   : > { %v2370_v40 = vmul.f32 %v2338_v18, %v4871_v54  ;;  %v2339_v8 = vmul.f32 0.5, %v2307_v41  ;;  %v2248_v57 = vmul.f32 0.5, %v4923_v16  ;;  %v2209_v2 = vadd.f32 %v4777_v0, %v2208_v44 }
 0x4f2   : > { %v2337_v45 = vmul.f32 0.5, %v2305_v27  ;;  %3803 = vtanh.f32 %v2250_v28  ;;  %v2251_v47 = vmul.f32 0.5, %v4928_v34  ;;  %2451 = vadd.xlane.f32.xlu0 %v2403_v13  ;;  %v2368_v54 = vmul.f32 %v2336_v32, %v4875_v49 }
 0x4f3   : > { %v2371_v24 = vmul.f32 %v2339_v8, %v4880_v60  ;;  %3805 = vtanh.f32 %v2248_v57  ;;  %v2249_v58 = vmul.f32 0.5, %v2209_v2  ;;  %2453 = vadd.xlane.f32.xlu1 %v2404_v25  ;;  %v2409_v21 = vmul.f32 %v4812_v36, %v2370_v40 }
 0x4f4   : > { %v3796_v7 = vpop.eup %3795  ;;  %3807 = vtanh.f32 %v2251_v47  ;;  %v2369_v62 = vmul.f32 %v2337_v45, %v4885_v17  ;;  %v2407_v38 = vmul.f32 %v4812_v36, %v2368_v54 }
 0x4f5   : > { %v3798_v26 = vpop.eup %3797  ;;  %v2310_v0 = vadd.f32 1.0, %v3796_v7  ;;  %3809 = vtanh.f32 %v2249_v58  ;;  %v2410_v46 = vmul.f32 %v4812_v36, %v2371_v24 }
 0x4f6   : > { %v3800_v35 = vpop.eup %3799  ;;  %v2308_v48 = vadd.f32 1.0, %v3798_v26  ;;  %2463 = vadd.xlane.f32.xlu0 %v2409_v21  ;;  %v2408_v17 = vmul.f32 %v4812_v36, %v2369_v62 }
 0x4f7   : > { %v3802_v60 = vpop.eup %3801  ;;  %v2342_v1 = vmul.f32 0.5, %v2310_v0  ;;  %v2311_v53 = vadd.f32 1.0, %v3800_v35  ;;  %2465 = vadd.xlane.f32.xlu1 %v2410_v46 }
 0x4f8   : > { %v2340_v20 = vmul.f32 0.5, %v2308_v48  ;;  %v2309_v3 = vadd.f32 1.0, %v3802_v60 }
 0x4f9   : > { %v2374_v49 = vmul.f32 %v2342_v1, %v4895_v29  ;;  %v2343_v5 = vmul.f32 0.5, %v2311_v53 }
 0x4fa   : > { %v2341_v39 = vmul.f32 0.5, %v2309_v3  ;;  %2459 = vadd.xlane.f32.xlu0 %v2407_v38  ;;  %v2372_v22 = vmul.f32 %v2340_v20, %v4899_v31 }
 0x4fb   : > { %v2375_v63 = vmul.f32 %v2343_v5, %v4904_v9  ;;  %2461 = vadd.xlane.f32.xlu1 %v2408_v17  ;;  %v2413_v6 = vmul.f32 %v4812_v36, %v2374_v49 }
 0x4fc   : > { %v3804_v52 = vpop.eup %3803  ;;  %v2373_v51 = vmul.f32 %v2341_v39, %v4909_v59  ;;  %v2411_v23 = vmul.f32 %v4812_v36, %v2372_v22 }
 0x4fd   : > { %v3806_v4 = vpop.eup %3805  ;;  %v2314_v30 = vadd.f32 1.0, %v3804_v52  ;;  %v2414_v61 = vmul.f32 %v4812_v36, %v2375_v63 }
 0x4fe   : > { %v3808_v29 = vpop.eup %3807  ;;  %v2312_v15 = vadd.f32 1.0, %v3806_v4  ;;  %2471 = vadd.xlane.f32.xlu0 %v2413_v6  ;;  %v2412_v33 = vmul.f32 %v4812_v36, %v2373_v51 }
 0x4ff   : > { %v3810_v37 = vpop.eup %3809  ;;  %v2315_v55 = vadd.f32 1.0, %v3808_v29  ;;  %2473 = vadd.xlane.f32.xlu1 %v2414_v61  ;;  %v2346_v19 = vmul.f32 0.5, %v2314_v30 }
 0x500   : > { %v2344_v9 = vmul.f32 0.5, %v2312_v15  ;;  %v2313_v10 = vadd.f32 1.0, %v3810_v37 }
 0x501   : > { %v2347_v59 = vmul.f32 0.5, %v2315_v55  ;;  %v2378_v14 = vmul.f32 %v2346_v19, %v4919_v43 }
 0x502   : > { %v2376_v31 = vmul.f32 %v2344_v9, %v4923_v16  ;;  %v2345_v50 = vmul.f32 0.5, %v2313_v10  ;;  %2467 = vadd.xlane.f32.xlu0 %v2411_v23  ;;  %v4957_v16 = vld [vmem:[#allocation2] ss:$0 sm:$0xff] }
 0x503   : > { %2469 = vadd.xlane.f32.xlu1 %v2412_v33  ;;  %v2379_v13 = vmul.f32 %v2347_v59, %v4928_v34  ;;  %v2417_v18 = vmul.f32 %v4812_v36, %v2378_v14 }
 0x504   : > { %v2377_v56 = vmul.f32 %v2345_v50, %v2209_v2  ;;  %v2415_v12 = vmul.f32 %v4812_v36, %v2376_v31 }
 0x505   : > { %v2418_v41 = vmul.f32 %v4812_v36, %v2379_v13 }
 0x506   : > { %2475 = vadd.xlane.f32.xlu0 %v2415_v12  ;;  %v2416_v11 = vmul.f32 %v4812_v36, %v2377_v56 }
 0x508   : > { %2477 = vadd.xlane.f32.xlu1 %v2416_v11 }
 0x50a   : > { %2479 = vadd.xlane.f32.xlu0 %v2417_v18 }
 0x50c   : > { %2481 = vadd.xlane.f32.xlu1 %v2418_v41 }
 0x55a   : > { %v2424_v43 = vpop.xlane.xlu1 %2423 }
 0x55b   : > { %v2492_v42 = vadd.f32 %v4957_v16, %v2424_v43  ;;  %v2420_v25 = vpop.xlane.xlu0 %2419 }
 0x55c   : > { %v2490_v32 = vadd.f32 %v4957_v16, %v2420_v25 }
 0x55d   : > { %2525 = vst.msk [vmem:[%s4961_s11 + $0x10] sm:$0xff] %vm2522_vm3, %v2492_v42 }
 0x55e   : > { %2523 = vst.msk [vmem:[%s4961_s11] sm:$0xff] %vm2522_vm3, %v2490_v32  ;;  %v2426_v36 = vpop.xlane.xlu1 %2425 }
 0x55f   : > { %v2493_v27 = vadd.f32 %v4957_v16, %v2426_v36  ;;  %v2422_v28 = vpop.xlane.xlu0 %2421 }
 0x560   : > { %v2491_v34 = vadd.f32 %v4957_v16, %v2422_v28 }
 0x561   : > { %2526 = vst.msk [vmem:[%s4961_s11 + $0x18] sm:$0xff] %vm2522_vm3, %v2493_v27 }
 0x562   : > { %2524 = vst.msk [vmem:[%s4961_s11 + $0x8] sm:$0xff] %vm2522_vm3, %v2491_v34 }
 0x563   : > { %v2432_v44 = vpop.xlane.xlu0 %2431 }
 0x564   : > { %v2496_v40 = vadd.f32 %v4957_v16, %v2432_v44  ;;  %v2434_v8 = vpop.xlane.xlu1 %2433 }
 0x565   : > { %v2497_v57 = vadd.f32 %v4957_v16, %v2434_v8 }
 0x566   : > { %2529 = vst.msk [vmem:[%s4961_s11 + $0x30] sm:$0xff] %vm2522_vm3, %v2496_v40 }
 0x567   : > { %2530 = vst.msk [vmem:[%s4961_s11 + $0x38] sm:$0xff] %vm2522_vm3, %v2497_v57  ;;  %v2428_v2 = vpop.xlane.xlu0 %2427 }
 0x568   : > { %v2494_v45 = vadd.f32 %v4957_v16, %v2428_v2  ;;  %v2430_v47 = vpop.xlane.xlu1 %2429 }
 0x569   : > { %v2495_v24 = vadd.f32 %v4957_v16, %v2430_v47 }
 0x56a   : > { %2527 = vst.msk [vmem:[%s4961_s11 + $0x20] sm:$0xff] %vm2522_vm3, %v2494_v45 }
 0x56b   : > { %2528 = vst.msk [vmem:[%s4961_s11 + $0x28] sm:$0xff] %vm2522_vm3, %v2495_v24  ;;  %v2440_v58 = vpop.xlane.xlu0 %2439 }
 0x56c   : > { %v2500_v21 = vadd.f32 %v4957_v16, %v2440_v58  ;;  %v2442_v7 = vpop.xlane.xlu1 %2441 }
 0x56d   : > { %v2501_v54 = vadd.f32 %v4957_v16, %v2442_v7 }
 0x56e   : > { %2533 = vst.msk [vmem:[%s4961_s11 + $0x50] sm:$0xff] %vm2522_vm3, %v2500_v21 }
 0x56f   : > { %2534 = vst.msk [vmem:[%s4961_s11 + $0x58] sm:$0xff] %vm2522_vm3, %v2501_v54  ;;  %v2436_v26 = vpop.xlane.xlu0 %2435 }
 0x570   : > { %v2498_v62 = vadd.f32 %v4957_v16, %v2436_v26  ;;  %v2438_v0 = vpop.xlane.xlu1 %2437 }
 0x571   : > { %v2499_v46 = vadd.f32 %v4957_v16, %v2438_v0 }
 0x572   : > { %2531 = vst.msk [vmem:[%s4961_s11 + $0x40] sm:$0xff] %vm2522_vm3, %v2498_v62 }
 0x573   : > { %2532 = vst.msk [vmem:[%s4961_s11 + $0x48] sm:$0xff] %vm2522_vm3, %v2499_v46  ;;  %v2448_v35 = vpop.xlane.xlu0 %2447 }
 0x574   : > { %v2504_v48 = vadd.f32 %v4957_v16, %v2448_v35  ;;  %v2450_v60 = vpop.xlane.xlu1 %2449 }
 0x575   : > { %v2505_v1 = vadd.f32 %v4957_v16, %v2450_v60 }
 0x576   : > { %2537 = vst.msk [vmem:[%s4961_s11 + $0x70] sm:$0xff] %vm2522_vm3, %v2504_v48 }
 0x577   : > { %2538 = vst.msk [vmem:[%s4961_s11 + $0x78] sm:$0xff] %vm2522_vm3, %v2505_v1  ;;  %v2444_v53 = vpop.xlane.xlu0 %2443 }
 0x578   : > { %v2502_v20 = vadd.f32 %v4957_v16, %v2444_v53  ;;  %v2446_v3 = vpop.xlane.xlu1 %2445 }
 0x579   : > { %v2503_v38 = vadd.f32 %v4957_v16, %v2446_v3 }
 0x57a   : > { %2535 = vst.msk [vmem:[%s4961_s11 + $0x60] sm:$0xff] %vm2522_vm3, %v2502_v20 }
 0x57b   : > { %2536 = vst.msk [vmem:[%s4961_s11 + $0x68] sm:$0xff] %vm2522_vm3, %v2503_v38  ;;  %v2456_v49 = vpop.xlane.xlu0 %2455 }
 0x57c   : > { %v2508_v5 = vadd.f32 %v4957_v16, %v2456_v49  ;;  %v2458_v17 = vpop.xlane.xlu1 %2457 }
 0x57d   : > { %v2509_v39 = vadd.f32 %v4957_v16, %v2458_v17 }
 0x57e   : > { %2541 = vst.msk [vmem:[%s4961_s11 + $0x90] sm:$0xff] %vm2522_vm3, %v2508_v5 }
 0x57f   : > { %2542 = vst.msk [vmem:[%s4961_s11 + $0x98] sm:$0xff] %vm2522_vm3, %v2509_v39  ;;  %v2452_v63 = vpop.xlane.xlu0 %2451 }
 0x580   : > { %v2506_v6 = vadd.f32 %v4957_v16, %v2452_v63  ;;  %v2454_v52 = vpop.xlane.xlu1 %2453 }
 0x581   : > { %v2507_v22 = vadd.f32 %v4957_v16, %v2454_v52 }
 0x582   : > { %2539 = vst.msk [vmem:[%s4961_s11 + $0x80] sm:$0xff] %vm2522_vm3, %v2506_v6 }
 0x583   : > { %2540 = vst.msk [vmem:[%s4961_s11 + $0x88] sm:$0xff] %vm2522_vm3, %v2507_v22  ;;  %v2464_v4 = vpop.xlane.xlu0 %2463 }
 0x584   : > { %v2512_v51 = vadd.f32 %v4957_v16, %v2464_v4  ;;  %v2466_v30 = vpop.xlane.xlu1 %2465 }
 0x585   : > { %v2513_v61 = vadd.f32 %v4957_v16, %v2466_v30 }
 0x586   : > { %2545 = vst.msk [vmem:[%s4961_s11 + $0xb0] sm:$0xff] %vm2522_vm3, %v2512_v51 }
 0x587   : > { %2546 = vst.msk [vmem:[%s4961_s11 + $0xb8] sm:$0xff] %vm2522_vm3, %v2513_v61  ;;  %v2460_v29 = vpop.xlane.xlu0 %2459 }
 0x588   : > { %v2510_v15 = vadd.f32 %v4957_v16, %v2460_v29  ;;  %v2462_v37 = vpop.xlane.xlu1 %2461 }
 0x589   : > { %v2511_v55 = vadd.f32 %v4957_v16, %v2462_v37 }
 0x58a   : > { %2543 = vst.msk [vmem:[%s4961_s11 + $0xa0] sm:$0xff] %vm2522_vm3, %v2510_v15 }
 0x58b   : > { %2544 = vst.msk [vmem:[%s4961_s11 + $0xa8] sm:$0xff] %vm2522_vm3, %v2511_v55  ;;  %v2472_v19 = vpop.xlane.xlu0 %2471 }
 0x58c   : > { %v2516_v9 = vadd.f32 %v4957_v16, %v2472_v19  ;;  %v2474_v10 = vpop.xlane.xlu1 %2473 }
 0x58d   : > { %v2517_v23 = vadd.f32 %v4957_v16, %v2474_v10 }
 0x58e   : > { %2549 = vst.msk [vmem:[%s4961_s11 + $0xd0] sm:$0xff] %vm2522_vm3, %v2516_v9 }
 0x58f   : > { %2550 = vst.msk [vmem:[%s4961_s11 + $0xd8] sm:$0xff] %vm2522_vm3, %v2517_v23  ;;  %v2468_v33 = vpop.xlane.xlu0 %2467 }
 0x590   : > { %v2514_v31 = vadd.f32 %v4957_v16, %v2468_v33  ;;  %v2470_v59 = vpop.xlane.xlu1 %2469 }
 0x591   : > { %v2515_v50 = vadd.f32 %v4957_v16, %v2470_v59 }
 0x592   : > { %2547 = vst.msk [vmem:[%s4961_s11 + $0xc0] sm:$0xff] %vm2522_vm3, %v2514_v31 }
 0x593   : > { %2548 = vst.msk [vmem:[%s4961_s11 + $0xc8] sm:$0xff] %vm2522_vm3, %v2515_v50  ;;  %v2476_v14 = vpop.xlane.xlu0 %2475 }
 0x594   : > { %v2518_v56 = vadd.f32 %v4957_v16, %v2476_v14 }
 0x595   : > { %v2478_v12 = vpop.xlane.xlu1 %2477 }
 0x596   : > { %2551 = vst.msk [vmem:[%s4961_s11 + $0xe0] sm:$0xff] %vm2522_vm3, %v2518_v56  ;;  %v2519_v13 = vadd.f32 %v4957_v16, %v2478_v12  ;;  %2561 = sbr.rel (!%p3968_p4) target bundleno = 1493 (0x5d5), region = 52 }
 0x597   : > { %v2480_v11 = vpop.xlane.xlu0 %2479 }
 0x598   : > { %2552 = vst.msk [vmem:[%s4961_s11 + $0xe8] sm:$0xff] %vm2522_vm3, %v2519_v13  ;;  %v2520_v18 = vadd.f32 %v4957_v16, %v2480_v11 }
 0x599   : > { %v2482_v41 = vpop.xlane.xlu1 %2481 }
 0x59a   : > { %2553 = vst.msk [vmem:[%s4961_s11 + $0xf0] sm:$0xff] %vm2522_vm3, %v2520_v18  ;;  %v2521_v43 = vadd.f32 %v4957_v16, %v2482_v41 }
 0x59c   : > { %2554 = vst.msk [vmem:[%s4961_s11 + $0xf8] sm:$0xff] %vm2522_vm3, %v2521_v43 }
 0x59d   : > { %s5214_s26 = smov (!%p2564_p8, %s2563_s26), 32 }
 0x59e   : > { %s3010_s17 = sshll.u32 %s5214_s26, 7 }
 0x59f   : > { %p3013_p9 = scmp.eq.s32.totalorder %s3010_s17, 0 }
 0x5a0   : > { %s5070_s18 = sshrl.u32 (!%p3013_p9), %s5214_s26, 5 }
 0x5a1   : > { %2572 = sbr.rel (%p3013_p9) target bundleno = 1493 (0x5d5), region = 56  ;;  %p3014_p10 = scmp.le.s32.totalorder (!%p3013_p9), %s5070_s18, 0 }
 0x5a8   : > { %2850 = sbr.rel (%p3014_p10) target bundleno = 1472 (0x5c0), region = 138  ;;  %s5205_s6 = smov (!%p3014_p10), %s5064_s16 }
 0x5a9   : > { %s5206_s10 = smov (!%p3014_p10), %s4961_s11  ;;  %s5079_s13 = smov (!%p3014_p10), 0  }
 0x5aa   : > { %s5081_s19 = smov (!%p3014_p10), 0  }
 0x5af LB: >> { %v2696_v16 = vld [vmem:[%s3873_s10] sm:$0xff]  ;;  %v2698_v42 = vld [vmem:[%s3873_s10 + $0x8] sm:$0xff]  ;;  %v2700_v25 = vld [vmem:[%s3873_s10 + $0x10] sm:$0xff]  ;;  %s2760_s20 = sadd.s32 1, %s3877_s13  ;;  %s2690_s19 = sadd.s32 1, %s3881_s19   ;;  %s3881_s19 = sphi %s5081_s19, %s2690_s19   ;;  %s3877_s13 = sphi %s5079_s13, %s5209_s13   ;;  %s3873_s10 = sphi %s5206_s10, %s5208_s10   ;;  %s3869_s6 = sphi %s5205_s6, %s5207_s6  }
 0x5b0   : >> { %2697 = vst [vmem:[%s3869_s6] sm:$0xff] %v2696_v16  ;;  %2699 = vst [vmem:[%s3869_s6 + $0x8] sm:$0xff] %v2698_v42  ;;  %v2702_v32 = vld [vmem:[%s3873_s10 + $0x18] sm:$0xff]  ;;  %v2704_v36 = vld [vmem:[%s3873_s10 + $0x20] sm:$0xff]  ;;  %p2761_p11 = scmp.ge.s32.totalorder %s2760_s20, %s5070_s18  ;;  %p2689_p12 = scmp.ge.s32.totalorder %s2690_s19, %s5070_s18 }
 0x5b1   : >> { %2701 = vst [vmem:[%s3869_s6 + $0x10] sm:$0xff] %v2700_v25  ;;  %v2706_v27 = vld [vmem:[%s3873_s10 + $0x28] sm:$0xff]  ;;  %2703 = vst [vmem:[%s3869_s6 + $0x18] sm:$0xff] %v2702_v32  ;;  %v2708_v28 = vld [vmem:[%s3873_s10 + $0x30] sm:$0xff] }
 0x5b2   : >> { %2705 = vst [vmem:[%s3869_s6 + $0x20] sm:$0xff] %v2704_v36  ;;  %2707 = vst [vmem:[%s3869_s6 + $0x28] sm:$0xff] %v2706_v27  ;;  %v2710_v34 = vld [vmem:[%s3873_s10 + $0x38] sm:$0xff]  ;;  %v2712_v44 = vld [vmem:[%s3873_s10 + $0x40] sm:$0xff]  ;;  %s5216_s20 = smov (%p2761_p11, %s2760_s20), 0 }
 0x5b3   : >> { %2709 = vst [vmem:[%s3869_s6 + $0x30] sm:$0xff] %v2708_v28  ;;  %2711 = vst [vmem:[%s3869_s6 + $0x38] sm:$0xff] %v2710_v34  ;;  %v2714_v40 = vld [vmem:[%s3873_s10 + $0x48] sm:$0xff]  ;;  %v2716_v8 = vld [vmem:[%s3873_s10 + $0x50] sm:$0xff]  ;;  %s3015_s21 = sshll.u32 %s5216_s20, 8  ;;  %s5209_s13 = smov %s5216_s20 }
 0x5b4   : >> { %2713 = vst [vmem:[%s3869_s6 + $0x40] sm:$0xff] %v2712_v44  ;;  %v2718_v57 = vld [vmem:[%s3873_s10 + $0x58] sm:$0xff]  ;;  %2715 = vst [vmem:[%s3869_s6 + $0x48] sm:$0xff] %v2714_v40  ;;  %v2720_v2 = vld [vmem:[%s3873_s10 + $0x60] sm:$0xff]  ;;  %s5137_s22 = scalar_lea.vmem %s4961_s11, %s3015_s21 [#allocation3]   ;;  %s2766_s23 = scalar_lea.vmem %s5064_s16, %s3015_s21  }
 0x5b5   : >> { %2717 = vst [vmem:[%s3869_s6 + $0x50] sm:$0xff] %v2716_v8  ;;  %2719 = vst [vmem:[%s3869_s6 + $0x58] sm:$0xff] %v2718_v57  ;;  %v2722_v45 = vld [vmem:[%s3873_s10 + $0x68] sm:$0xff]  ;;  %v2724_v47 = vld [vmem:[%s3873_s10 + $0x70] sm:$0xff] }
 0x5b6   : >> { %2721 = vst [vmem:[%s3869_s6 + $0x60] sm:$0xff] %v2720_v2  ;;  %2723 = vst [vmem:[%s3869_s6 + $0x68] sm:$0xff] %v2722_v45  ;;  %v2726_v24 = vld [vmem:[%s3873_s10 + $0x78] sm:$0xff]  ;;  %v2728_v58 = vld [vmem:[%s3873_s10 + $0x80] sm:$0xff] }
 0x5b7   : >> { %2725 = vst [vmem:[%s3869_s6 + $0x70] sm:$0xff] %v2724_v47  ;;  %v2730_v21 = vld [vmem:[%s3873_s10 + $0x88] sm:$0xff]  ;;  %2727 = vst [vmem:[%s3869_s6 + $0x78] sm:$0xff] %v2726_v24  ;;  %v2732_v7 = vld [vmem:[%s3873_s10 + $0x90] sm:$0xff] }
 0x5b8   : >> { %2729 = vst [vmem:[%s3869_s6 + $0x80] sm:$0xff] %v2728_v58  ;;  %2731 = vst [vmem:[%s3869_s6 + $0x88] sm:$0xff] %v2730_v21  ;;  %v2734_v54 = vld [vmem:[%s3873_s10 + $0x98] sm:$0xff]  ;;  %v2736_v26 = vld [vmem:[%s3873_s10 + $0xa0] sm:$0xff] }
 0x5b9   : >> { %2733 = vst [vmem:[%s3869_s6 + $0x90] sm:$0xff] %v2732_v7  ;;  %2735 = vst [vmem:[%s3869_s6 + $0x98] sm:$0xff] %v2734_v54  ;;  %v2738_v62 = vld [vmem:[%s3873_s10 + $0xa8] sm:$0xff]  ;;  %v2740_v0 = vld [vmem:[%s3873_s10 + $0xb0] sm:$0xff]  ;;  %2692 = sbr.rel (!%p2689_p12) target bundleno = 1455 (0x5af), region = 144 }
 0x5ba   : >> { %2737 = vst [vmem:[%s3869_s6 + $0xa0] sm:$0xff] %v2736_v26  ;;  %v2742_v46 = vld [vmem:[%s3873_s10 + $0xb8] sm:$0xff]  ;;  %2739 = vst [vmem:[%s3869_s6 + $0xa8] sm:$0xff] %v2738_v62  ;;  %v2744_v35 = vld [vmem:[%s3873_s10 + $0xc0] sm:$0xff] }
 0x5bb   : >> { %2741 = vst [vmem:[%s3869_s6 + $0xb0] sm:$0xff] %v2740_v0  ;;  %2743 = vst [vmem:[%s3869_s6 + $0xb8] sm:$0xff] %v2742_v46  ;;  %v2746_v48 = vld [vmem:[%s3873_s10 + $0xc8] sm:$0xff]  ;;  %v2748_v60 = vld [vmem:[%s3873_s10 + $0xd0] sm:$0xff] }
 0x5bc   : >> { %2745 = vst [vmem:[%s3869_s6 + $0xc0] sm:$0xff] %v2744_v35  ;;  %2747 = vst [vmem:[%s3869_s6 + $0xc8] sm:$0xff] %v2746_v48  ;;  %v2750_v1 = vld [vmem:[%s3873_s10 + $0xd8] sm:$0xff]  ;;  %v2752_v53 = vld [vmem:[%s3873_s10 + $0xe0] sm:$0xff] }
 0x5bd   : >> { %2749 = vst [vmem:[%s3869_s6 + $0xd0] sm:$0xff] %v2748_v60  ;;  %v2754_v20 = vld [vmem:[%s3873_s10 + $0xe8] sm:$0xff]  ;;  %2751 = vst [vmem:[%s3869_s6 + $0xd8] sm:$0xff] %v2750_v1  ;;  %v2756_v3 = vld [vmem:[%s3873_s10 + $0xf0] sm:$0xff] }
 0x5be   : >> { %2753 = vst [vmem:[%s3869_s6 + $0xe0] sm:$0xff] %v2752_v53  ;;  %2755 = vst [vmem:[%s3869_s6 + $0xe8] sm:$0xff] %v2754_v20  ;;  %v2758_v38 = vld [vmem:[%s3873_s10 + $0xf8] sm:$0xff]  ;;  %s5208_s10 = smov %s5137_s22 }
 0x5bf   : >> { %2757 = vst [vmem:[%s3869_s6 + $0xf0] sm:$0xff] %v2756_v3  ;;  %2759 = vst [vmem:[%s3869_s6 + $0xf8] sm:$0xff] %v2758_v38  ;;  %s5207_s6 = smov %s2766_s23 }
 0x5c0 PF: > { %s5178_s24 = sand.u32 31, %s5214_s26   ;;  %s3026_s25 = sshll.u32 %s5070_s18, 8 }
 0x5c1   : > { %s2771_s28 = scalar_lea.vmem %s4961_s11, %s3026_s25 [#allocation3]   ;;  %s2773_s30 = scalar_lea.vmem %s5064_s16, %s3026_s25  }
 0x5c2   : > { %p3020_p13 = scmp.le.s32.totalorder %s5178_s24, 0 }
 0x5c3   : > { %s3883_s8 = smov (!%p3020_p13), %s2773_s30   ;;  %s3887_s12 = smov (!%p3020_p13), %s2771_s28  }
 0x5c4   : > { %2864 = sbr.rel (%p3020_p13) target bundleno = 1493 (0x5d5), region = 149  ;;  %s3891_s14 = smov (!%p3020_p13), 0  }
 0x5c5   : > { %s3895_s15 = smov (!%p3020_p13), 0  }
 0x5cb LB: >> { %v2783_v49 = vld [vmem:[%s3889_s12] sm:$0xff]  ;;  %s2785_s26 = sadd.s32 1, %s3893_s14  ;;  %s2777_s15 = sadd.s32 1, %s3897_s15   ;;  %s3897_s15 = sphi %s3895_s15, %s2777_s15   ;;  %s3893_s14 = sphi %s3891_s14, %s3892_s14   ;;  %s3889_s12 = sphi %s3887_s12, %s2790_s12   ;;  %s3885_s8 = sphi %s3883_s8, %s2791_s8  }
 0x5cc   : >> { %2784 = vst [vmem:[%s3885_s8] sm:$0xff] %v2783_v49  ;;  %p2786_p0 = scmp.ge.s32.totalorder %s2785_s26, %s5178_s24  ;;  %p2776_p1 = scmp.ge.s32.totalorder %s2777_s15, %s5178_s24 }
 0x5ce   : >> { %s5218_s26 = smov (%p2786_p0, %s2785_s26), 0  ;;  %2779 = sbr.rel (!%p2776_p1) target bundleno = 1483 (0x5cb), region = 155 }
 0x5cf   : >> { %s3021_s11 = sshll.u32 %s5218_s26, 3  ;;  %s3892_s14 = smov %s5218_s26  }
 0x5d0   : >> { %s2790_s12 = scalar_lea.vmem %s2771_s28, %s3021_s11 [#allocation3]   ;;  %s2791_s8 = scalar_lea.vmem %s2773_s30, %s3021_s11  }
 0x5d5 PF: > { %p16_p2 = scmp.ge.s32.totalorder %s3958_s29, 4   ;;  %s5210_s26 = smov %s3861_s27 }
 0x5d6   : > { %s5211_s27 = smov %s3966_s9  ;;  %s5212_s28 = smov %s3958_s29 }
 0x5d7   :  { %18 = sbr.rel (!%p16_p2) target bundleno = 5 (0x5), region = 166 }

</bundles_post_ra>
